<compile_context>
chip_gen: v7x
topology: tpu7x:2x2x1
jax: 0.10.0
libtpu: 0.0.40
codegen_flags: <defaults>
</compile_context>

<pallas_src>
import math
import functools

import jax
import jax.numpy as jnp
from jax.experimental import pallas as pl
from jax.experimental.pallas import tpu as pltpu


def _mha_kernel(x_ref, wqkv_ref, wo_ref, b_ref, out_ref, attn_ref, *, h, d_k):
    # One grid step handles Bb (batch*group) elements at once.
    Bb = x_ref.shape[1]
    L = x_ref.shape[2]
    dm3 = x_ref.shape[3]
    dm = dm3 // 3

    # Fold (Bb, L) into one row axis -> single fused QKV matmul on the MXU.
    x = x_ref[0].reshape(Bb * L, dm3)                          # (Bb*L, 3dm)
    qkv = (jnp.dot(x, wqkv_ref[...], preferred_element_type=jnp.float32)
           + b_ref[0:1, :])                                    # (Bb*L, 3dm)

    qkv3 = qkv.reshape(Bb, L, dm3)
    q3 = qkv3[:, :, 0 * dm:1 * dm]                             # already scaled by 1/(sqrt(d_k)*150)
    k3 = qkv3[:, :, 1 * dm:2 * dm]
    v3 = qkv3[:, :, 2 * dm:3 * dm]

    head_outs = []
    for hd in range(h):                                        # h=4 static iterations
        sl = slice(hd * d_k, (hd + 1) * d_k)
        q_h = q3[:, :, sl]                                     # (Bb, L, d_k)
        k_h = k3[:, :, sl]
        v_h = v3[:, :, sl]

        # Batched over Bb: (Bb, L, L). Scale already folded into q_h.
        scores = jnp.einsum('bld,bmd->blm', q_h, k_h,
                            preferred_element_type=jnp.float32)

        m = jnp.max(scores, axis=-1, keepdims=True)
        e = jnp.exp(scores - m)
        s = jnp.sum(e, axis=-1, keepdims=True)
        p = e * (1.0 / s)                                      # exact reciprocal (tolerance-safe)

        # Store directly in final (batch, head, L, L) layout -> wrapper reshape only.
        attn_ref[0, :, hd] = p

        # mean over query rows first: mean_l(P @ V) == mean_l(P) @ V  (L x fewer FLOPs)
        p_mean = jnp.mean(p, axis=1, keepdims=True)            # (Bb, 1, L)
        o_h = jnp.einsum('bql,bld->bqd', p_mean, v_h,
                         preferred_element_type=jnp.float32)   # (Bb, 1, d_k)
        head_outs.append(o_h[:, 0, :])                         # (Bb, d_k)

    # Head-major concat; the wrapper permuted W_o columns so this ordering matches
    # PyTorch's transpose(2,3).view(...) (d_k-major) flatten.
    x_vec = jnp.concatenate(head_outs, axis=-1)                # (Bb, dm)

    out_ref[0] = (jnp.dot(x_vec, wo_ref[...], preferred_element_type=jnp.float32)
                  + b_ref[1:2, :dm])                           # (Bb, dm)


def _detect_num_blocks(B6):
    """NB=2 only when the chip has two TensorCores (v7x); single grid step otherwise."""
    try:
        kind = jax.devices()[0].device_kind.lower()
    except Exception:
        kind = ""
    two_tensorcores = ("v7" in kind) or ("7x" in kind)
    if two_tensorcores and B6 >= 2 and B6 % 2 == 0:
        return 2
    return 1


def mha_forward(xq, xk, xv, params, *, h, num_blocks=None):
    nb, G, L, dm = xq.shape
    d_k = dm // h
    B6 = nb * G

    NB = _detect_num_blocks(B6) if num_blocks is None else num_blocks
    Bb = B6 // NB

    # --- wrapper-side parameter prep (one-time transforms) ---------------------------
    scale = 1.0 / (math.sqrt(d_k) * 150.0)
    wq_t = params["Wq"].T * scale            # fold softmax scale into the Q projection
    wk_t = params["Wk"].T
    wv_t = params["Wv"].T
    z = jnp.zeros((dm, dm), jnp.float32)
    w_qkv = jnp.block([[wq_t, z, z],
                       [z, wk_t, z],
                       [z, z, wv_t]])        # (3dm, 3dm) block-diagonal

    # Permute W_o columns from d_k-major (PyTorch flatten order) to head-major
    # (kernel concat order), then transpose.
    wo_perm = params["Wo"].reshape(dm, d_k, h).transpose(0, 2, 1).reshape(dm, dm)
    wo_t = wo_perm.T

    b_qkv = jnp.concatenate([params["bq"] * scale, params["bk"], params["bv"]])
    b_out = jnp.concatenate([params["bo"], jnp.zeros((2 * dm,), jnp.float32)])
    bias = jnp.stack([b_qkv, b_out], axis=0)                   # (2, 3dm)

    # --- activations: concat q|k|v features, split batch*group into NB blocks --------
    x_cat = jnp.concatenate([xq, xk, xv], axis=-1).reshape(NB, Bb, L, 3 * dm)

    x_spec = pl.BlockSpec((1, Bb, L, 3 * dm), lambda i: (i, 0, 0, 0))
    wqkv_spec = pl.BlockSpec((3 * dm, 3 * dm), lambda i: (0, 0))
    wo_spec = pl.BlockSpec((dm, dm), lambda i: (0, 0))
    b_spec = pl.BlockSpec((2, 3 * dm), lambda i: (0, 0))

    out_flat, attn_flat = pl.pallas_call(
        functools.partial(_mha_kernel, h=h, d_k=d_k),
        out_shape=(
            jax.ShapeDtypeStruct((NB, Bb, dm), jnp.float32),
            jax.ShapeDtypeStruct((NB, Bb, h, L, L), jnp.float32),
        ),
        grid=(NB,),
        in_specs=[x_spec, wqkv_spec, wo_spec, b_spec],
        out_specs=(
            pl.BlockSpec((1, Bb, dm), lambda i: (i, 0, 0)),
            pl.BlockSpec((1, Bb, h, L, L), lambda i: (i, 0, 0, 0, 0)),
        ),
        compiler_params=pltpu.CompilerParams(
            dimension_semantics=("parallel",)),
    )(x_cat, w_qkv, wo_t, bias)

    # Pure reshapes only (no XLA transpose epilogue).
    out = out_flat.reshape(nb, G, 1, dm)
    attn = attn_flat.reshape(nb, G, h, L, L)
    return out, attn


def mha_reference(xq, xk, xv, params, *, h):
    """Pure-JAX re-implementation of the PyTorch forward (eval mode)."""
    nb, G, L, dm = xq.shape
    d_k = dm // h

    def lin(x, W, b):
        return x @ W.T + b

    def proj(x, W, b):
        y = lin(x, W, b).reshape(nb, G, L, h, d_k)
        return y.transpose(0, 1, 3, 2, 4)                      # (nb, 6, h, L, d_k)

    q = proj(xq, params["Wq"], params["bq"])
    k = proj(xk, params["Wk"], params["bk"])
    v = proj(xv, params["Wv"], params["bv"])

    scores = jnp.matmul(q, jnp.swapaxes(k, -2, -1)) / math.sqrt(d_k)
    p_attn = jax.nn.softmax(scores / 150.0, axis=-1)           # (nb, 6, h, L, L)
    out = jnp.matmul(p_attn, v).mean(axis=3)                   # (nb, 6, h, d_k)
    x = out.transpose(0, 1, 3, 2).reshape(nb, G, 1, h * d_k)   # d_k-major flatten
    final = lin(x, params["Wo"], params["bo"])
    return final, p_attn


if __name__ == "__main__":
    # Small shapes: d_model=32, h=4 heads, d_k=8, seq L=8, batch=2, fixed group dim 6.
    nb, G, L, h, dm = 2, 6, 8, 4, 32

    key = jax.random.PRNGKey(0)
    ks = jax.random.split(key, 12)
    bound = 1.0 / math.sqrt(dm)

    def u(k, shape):
        return jax.random.uniform(k, shape, jnp.float32, -bound, bound)

    params = {
        "Wq": u(ks[0], (dm, dm)), "bq": u(ks[1], (dm,)),
        "Wk": u(ks[2], (dm, dm)), "bk": u(ks[3], (dm,)),
        "Wv": u(ks[4], (dm, dm)), "bv": u(ks[5], (dm,)),
        "Wo": u(ks[6], (dm, dm)), "bo": u(ks[7], (dm,)),
    }

    xq = jax.random.normal(ks[8], (nb, G, L, dm), jnp.float32)
    xk = jax.random.normal(ks[9], (nb, G, L, dm), jnp.float32)
    xv = jax.random.normal(ks[10], (nb, G, L, dm), jnp.float32)

    out, attn = mha_forward(xq, xk, xv, params, h=h)
    out = jax.block_until_ready(out)
    attn = jax.block_until_ready(attn)

    ref_out, ref_attn = mha_reference(xq, xk, xv, params, h=h)

    assert out.shape == (nb, G, 1, dm) and attn.shape == (nb, G, h, L, L)
    assert jnp.allclose(out, ref_out, atol=2e-4, rtol=2e-4)
    assert jnp.allclose(attn, ref_attn, atol=2e-4, rtol=2e-4)

    print("KERNEL_OK")
</pallas_src>

<mosaic_0001>
module attributes {stable_mosaic.version = 11 : i64} {
  func.func @_mha_kernel(%arg0: i32, %arg1: memref<1x12x8x96xf32, #tpu.memory_space<vmem>>, %arg2: memref<96x96xf32, #tpu.memory_space<vmem>>, %arg3: memref<32x32xf32, #tpu.memory_space<vmem>>, %arg4: memref<2x96xf32, #tpu.memory_space<vmem>>, %arg5: memref<1x12x32xf32, #tpu.memory_space<vmem>>, %arg6: memref<1x12x4x8x8xf32, #tpu.memory_space<vmem>>) attributes {dimension_semantics = [#tpu.dimension_semantics<parallel>], iteration_bounds = array<i64: 1>, scalar_prefetch = 0 : i64, scratch_operands = 0 : i64, tpu.core_type = #tpu.core_type<tc>, window_params = [{transform_indices = @transform_0, window_bounds = array<i64: 1, 12, 8, 96>}, {pipeline_mode = #tpu.pipeline_mode<synchronous>, transform_indices = @transform_1, window_bounds = array<i64: 96, 96>}, {pipeline_mode = #tpu.pipeline_mode<synchronous>, transform_indices = @transform_2, window_bounds = array<i64: 32, 32>}, {pipeline_mode = #tpu.pipeline_mode<synchronous>, transform_indices = @transform_3, window_bounds = array<i64: 2, 96>}, {transform_indices = @transform_4, window_bounds = array<i64: 1, 12, 32>}, {transform_indices = @transform_5, window_bounds = array<i64: 1, 12, 4, 8, 8>}]} {
    %c0 = arith.constant 0 : index
    %c0_0 = arith.constant 0 : index
    %c0_1 = arith.constant 0 : index
    %c0_2 = arith.constant 0 : index
    %0 = vector.load %arg1[%c0, %c0_0, %c0_1, %c0_2] : memref<1x12x8x96xf32, #tpu.memory_space<vmem>>, vector<1x12x8x96xf32>
    %1 = vector.shape_cast %0 : vector<1x12x8x96xf32> to vector<12x8x96xf32>
    %2 = vector.shape_cast %1 : vector<12x8x96xf32> to vector<96x96xf32>
    %c0_3 = arith.constant 0 : index
    %c0_4 = arith.constant 0 : index
    %3 = vector.load %arg2[%c0_3, %c0_4] : memref<96x96xf32, #tpu.memory_space<vmem>>, vector<96x96xf32>
    %cst = arith.constant dense<0.000000e+00> : vector<96x96xf32>
    %4 = tpu.matmul %2, %3, %cst {dimension_numbers = #tpu.dot_dimension_numbers<[1], [0], [0], [1], [0, 0, 1, 1], [], []>} : vector<96x96xf32>, vector<96x96xf32>, vector<96x96xf32> -> vector<96x96xf32>
    %c0_5 = arith.constant 0 : index
    %c0_6 = arith.constant 0 : index
    %5 = vector.load %arg4[%c0_5, %c0_6] : memref<2x96xf32, #tpu.memory_space<vmem>>, vector<1x96xf32>
    %6 = vector.broadcast %5 : vector<1x96xf32> to vector<96x96xf32>
    %7 = arith.addf %4, %6 : vector<96x96xf32>
    %8 = vector.shape_cast %7 : vector<96x96xf32> to vector<12x8x96xf32>
    %9 = vector.extract_strided_slice %8 {offsets = [0, 0, 0], sizes = [12, 8, 32], strides = [1, 1, 1]} : vector<12x8x96xf32> to vector<12x8x32xf32>
    %10 = vector.extract_strided_slice %8 {offsets = [0, 0, 32], sizes = [12, 8, 32], strides = [1, 1, 1]} : vector<12x8x96xf32> to vector<12x8x32xf32>
    %11 = vector.extract_strided_slice %8 {offsets = [0, 0, 64], sizes = [12, 8, 32], strides = [1, 1, 1]} : vector<12x8x96xf32> to vector<12x8x32xf32>
    %12 = vector.extract_strided_slice %9 {offsets = [0, 0, 0], sizes = [12, 8, 8], strides = [1, 1, 1]} : vector<12x8x32xf32> to vector<12x8x8xf32>
    %13 = vector.extract_strided_slice %10 {offsets = [0, 0, 0], sizes = [12, 8, 8], strides = [1, 1, 1]} : vector<12x8x32xf32> to vector<12x8x8xf32>
    %14 = vector.extract_strided_slice %11 {offsets = [0, 0, 0], sizes = [12, 8, 8], strides = [1, 1, 1]} : vector<12x8x32xf32> to vector<12x8x8xf32>
    "tpu.trace_start"() <{level = 10 : i32, message = "bld,bmd->blm"}> : () -> ()
    %cst_7 = arith.constant dense<0.000000e+00> : vector<12x8x8xf32>
    %15 = tpu.matmul %12, %13, %cst_7 {dimension_numbers = #tpu.dot_dimension_numbers<[2], [2], [1], [1], [0, 0, 0, 1, 1, 1], [0], [0]>} : vector<12x8x8xf32>, vector<12x8x8xf32>, vector<12x8x8xf32> -> vector<12x8x8xf32>
    "tpu.trace_stop"() : () -> ()
    %cst_8 = arith.constant dense<0xFF800000> : vector<12x8xf32>
    %16 = vector.multi_reduction <maximumf>, %15, %cst_8 [2] : vector<12x8x8xf32> to vector<12x8xf32>
    %17 = vector.shape_cast %16 : vector<12x8xf32> to vector<12x8x1xf32>
    %18 = vector.broadcast %17 : vector<12x8x1xf32> to vector<12x8x8xf32>
    %19 = arith.subf %15, %18 : vector<12x8x8xf32>
    %20 = math.exp %19 : vector<12x8x8xf32>
    %cst_9 = arith.constant dense<0.000000e+00> : vector<12x8xf32>
    %21 = vector.multi_reduction <add>, %20, %cst_9 [2] : vector<12x8x8xf32> to vector<12x8xf32>
    %22 = vector.shape_cast %21 : vector<12x8xf32> to vector<12x8x1xf32>
    %cst_10 = arith.constant 1.000000e+00 : f32
    %23 = vector.broadcast %cst_10 : f32 to vector<12x8x1xf32>
    %24 = arith.divf %23, %22 : vector<12x8x1xf32>
    %25 = vector.broadcast %24 : vector<12x8x1xf32> to vector<12x8x8xf32>
    %26 = arith.mulf %20, %25 : vector<12x8x8xf32>
    %c0_11 = arith.constant 0 : index
    %c0_12 = arith.constant 0 : index
    %c0_13 = arith.constant 0 : index
    %c0_14 = arith.constant 0 : index
    %c0_15 = arith.constant 0 : index
    %27 = vector.load %arg6[%c0_11, %c0_12, %c0_13, %c0_14, %c0_15] : memref<1x12x4x8x8xf32, #tpu.memory_space<vmem>>, vector<1x12x1x8x8xf32>
    %28 = vector.shape_cast %27 : vector<1x12x1x8x8xf32> to vector<12x8x8xf32>
    %29 = vector.shape_cast %26 : vector<12x8x8xf32> to vector<1x12x1x8x8xf32>
    tpu.vector_store %arg6[%c0_11, %c0_12, %c0_13, %c0_14, %c0_15], %29 {strides = array<i32>} : memref<1x12x4x8x8xf32, #tpu.memory_space<vmem>>, vector<1x12x1x8x8xf32>,
    %cst_16 = arith.constant dense<0.000000e+00> : vector<12x8xf32>
    %30 = vector.multi_reduction <add>, %26, %cst_16 [1] : vector<12x8x8xf32> to vector<12x8xf32>
    %31 = vector.shape_cast %30 : vector<12x8xf32> to vector<12x1x8xf32>
    %cst_17 = arith.constant 8.000000e+00 : f32
    %32 = vector.broadcast %cst_17 : f32 to vector<12x1x8xf32>
    %33 = arith.divf %31, %32 : vector<12x1x8xf32>
    "tpu.trace_start"() <{level = 10 : i32, message = "bql,bld->bqd"}> : () -> ()
    %cst_18 = arith.constant dense<0.000000e+00> : vector<12x1x8xf32>
    %34 = tpu.matmul %33, %14, %cst_18 {dimension_numbers = #tpu.dot_dimension_numbers<[2], [1], [1], [2], [0, 0, 0, 1, 1, 2], [0], [0]>} : vector<12x1x8xf32>, vector<12x8x8xf32>, vector<12x1x8xf32> -> vector<12x1x8xf32>
    "tpu.trace_stop"() : () -> ()
    %35 = vector.shape_cast %34 : vector<12x1x8xf32> to vector<12x8xf32>
    %36 = vector.extract_strided_slice %9 {offsets = [0, 0, 8], sizes = [12, 8, 8], strides = [1, 1, 1]} : vector<12x8x32xf32> to vector<12x8x8xf32>
    %37 = vector.extract_strided_slice %10 {offsets = [0, 0, 8], sizes = [12, 8, 8], strides = [1, 1, 1]} : vector<12x8x32xf32> to vector<12x8x8xf32>
    %38 = vector.extract_strided_slice %11 {offsets = [0, 0, 8], sizes = [12, 8, 8], strides = [1, 1, 1]} : vector<12x8x32xf32> to vector<12x8x8xf32>
    "tpu.trace_start"() <{level = 10 : i32, message = "bld,bmd->blm"}> : () -> ()
    %cst_19 = arith.constant dense<0.000000e+00> : vector<12x8x8xf32>
    %39 = tpu.matmul %36, %37, %cst_19 {dimension_numbers = #tpu.dot_dimension_numbers<[2], [2], [1], [1], [0, 0, 0, 1, 1, 1], [0], [0]>} : vector<12x8x8xf32>, vector<12x8x8xf32>, vector<12x8x8xf32> -> vector<12x8x8xf32>
    "tpu.trace_stop"() : () -> ()
    %cst_20 = arith.constant dense<0xFF800000> : vector<12x8xf32>
    %40 = vector.multi_reduction <maximumf>, %39, %cst_20 [2] : vector<12x8x8xf32> to vector<12x8xf32>
    %41 = vector.shape_cast %40 : vector<12x8xf32> to vector<12x8x1xf32>
    %42 = vector.broadcast %41 : vector<12x8x1xf32> to vector<12x8x8xf32>
    %43 = arith.subf %39, %42 : vector<12x8x8xf32>
    %44 = math.exp %43 : vector<12x8x8xf32>
    %cst_21 = arith.constant dense<0.000000e+00> : vector<12x8xf32>
    %45 = vector.multi_reduction <add>, %44, %cst_21 [2] : vector<12x8x8xf32> to vector<12x8xf32>
    %46 = vector.shape_cast %45 : vector<12x8xf32> to vector<12x8x1xf32>
    %cst_22 = arith.constant 1.000000e+00 : f32
    %47 = vector.broadcast %cst_22 : f32 to vector<12x8x1xf32>
    %48 = arith.divf %47, %46 : vector<12x8x1xf32>
    %49 = vector.broadcast %48 : vector<12x8x1xf32> to vector<12x8x8xf32>
    %50 = arith.mulf %44, %49 : vector<12x8x8xf32>
    %c0_23 = arith.constant 0 : index
    %c0_24 = arith.constant 0 : index
    %c1 = arith.constant 1 : index
    %c0_25 = arith.constant 0 : index
    %c0_26 = arith.constant 0 : index
    %51 = vector.load %arg6[%c0_23, %c0_24, %c1, %c0_25, %c0_26] : memref<1x12x4x8x8xf32, #tpu.memory_space<vmem>>, vector<1x12x1x8x8xf32>
    %52 = vector.shape_cast %51 : vector<1x12x1x8x8xf32> to vector<12x8x8xf32>
    %53 = vector.shape_cast %50 : vector<12x8x8xf32> to vector<1x12x1x8x8xf32>
    tpu.vector_store %arg6[%c0_23, %c0_24, %c1, %c0_25, %c0_26], %53 {strides = array<i32>} : memref<1x12x4x8x8xf32, #tpu.memory_space<vmem>>, vector<1x12x1x8x8xf32>,
    %cst_27 = arith.constant dense<0.000000e+00> : vector<12x8xf32>
    %54 = vector.multi_reduction <add>, %50, %cst_27 [1] : vector<12x8x8xf32> to vector<12x8xf32>
    %55 = vector.shape_cast %54 : vector<12x8xf32> to vector<12x1x8xf32>
    %cst_28 = arith.constant 8.000000e+00 : f32
    %56 = vector.broadcast %cst_28 : f32 to vector<12x1x8xf32>
    %57 = arith.divf %55, %56 : vector<12x1x8xf32>
    "tpu.trace_start"() <{level = 10 : i32, message = "bql,bld->bqd"}> : () -> ()
    %cst_29 = arith.constant dense<0.000000e+00> : vector<12x1x8xf32>
    %58 = tpu.matmul %57, %38, %cst_29 {dimension_numbers = #tpu.dot_dimension_numbers<[2], [1], [1], [2], [0, 0, 0, 1, 1, 2], [0], [0]>} : vector<12x1x8xf32>, vector<12x8x8xf32>, vector<12x1x8xf32> -> vector<12x1x8xf32>
    "tpu.trace_stop"() : () -> ()
    %59 = vector.shape_cast %58 : vector<12x1x8xf32> to vector<12x8xf32>
    %60 = vector.extract_strided_slice %9 {offsets = [0, 0, 16], sizes = [12, 8, 8], strides = [1, 1, 1]} : vector<12x8x32xf32> to vector<12x8x8xf32>
    %61 = vector.extract_strided_slice %10 {offsets = [0, 0, 16], sizes = [12, 8, 8], strides = [1, 1, 1]} : vector<12x8x32xf32> to vector<12x8x8xf32>
    %62 = vector.extract_strided_slice %11 {offsets = [0, 0, 16], sizes = [12, 8, 8], strides = [1, 1, 1]} : vector<12x8x32xf32> to vector<12x8x8xf32>
    "tpu.trace_start"() <{level = 10 : i32, message = "bld,bmd->blm"}> : () -> ()
    %cst_30 = arith.constant dense<0.000000e+00> : vector<12x8x8xf32>
    %63 = tpu.matmul %60, %61, %cst_30 {dimension_numbers = #tpu.dot_dimension_numbers<[2], [2], [1], [1], [0, 0, 0, 1, 1, 1], [0], [0]>} : vector<12x8x8xf32>, vector<12x8x8xf32>, vector<12x8x8xf32> -> vector<12x8x8xf32>
    "tpu.trace_stop"() : () -> ()
    %cst_31 = arith.constant dense<0xFF800000> : vector<12x8xf32>
    %64 = vector.multi_reduction <maximumf>, %63, %cst_31 [2] : vector<12x8x8xf32> to vector<12x8xf32>
    %65 = vector.shape_cast %64 : vector<12x8xf32> to vector<12x8x1xf32>
    %66 = vector.broadcast %65 : vector<12x8x1xf32> to vector<12x8x8xf32>
    %67 = arith.subf %63, %66 : vector<12x8x8xf32>
    %68 = math.exp %67 : vector<12x8x8xf32>
    %cst_32 = arith.constant dense<0.000000e+00> : vector<12x8xf32>
    %69 = vector.multi_reduction <add>, %68, %cst_32 [2] : vector<12x8x8xf32> to vector<12x8xf32>
    %70 = vector.shape_cast %69 : vector<12x8xf32> to vector<12x8x1xf32>
    %cst_33 = arith.constant 1.000000e+00 : f32
    %71 = vector.broadcast %cst_33 : f32 to vector<12x8x1xf32>
    %72 = arith.divf %71, %70 : vector<12x8x1xf32>
    %73 = vector.broadcast %72 : vector<12x8x1xf32> to vector<12x8x8xf32>
    %74 = arith.mulf %68, %73 : vector<12x8x8xf32>
    %c0_34 = arith.constant 0 : index
    %c0_35 = arith.constant 0 : index
    %c2 = arith.constant 2 : index
    %c0_36 = arith.constant 0 : index
    %c0_37 = arith.constant 0 : index
    %75 = vector.load %arg6[%c0_34, %c0_35, %c2, %c0_36, %c0_37] : memref<1x12x4x8x8xf32, #tpu.memory_space<vmem>>, vector<1x12x1x8x8xf32>
    %76 = vector.shape_cast %75 : vector<1x12x1x8x8xf32> to vector<12x8x8xf32>
    %77 = vector.shape_cast %74 : vector<12x8x8xf32> to vector<1x12x1x8x8xf32>
    tpu.vector_store %arg6[%c0_34, %c0_35, %c2, %c0_36, %c0_37], %77 {strides = array<i32>} : memref<1x12x4x8x8xf32, #tpu.memory_space<vmem>>, vector<1x12x1x8x8xf32>,
    %cst_38 = arith.constant dense<0.000000e+00> : vector<12x8xf32>
    %78 = vector.multi_reduction <add>, %74, %cst_38 [1] : vector<12x8x8xf32> to vector<12x8xf32>
    %79 = vector.shape_cast %78 : vector<12x8xf32> to vector<12x1x8xf32>
    %cst_39 = arith.constant 8.000000e+00 : f32
    %80 = vector.broadcast %cst_39 : f32 to vector<12x1x8xf32>
    %81 = arith.divf %79, %80 : vector<12x1x8xf32>
    "tpu.trace_start"() <{level = 10 : i32, message = "bql,bld->bqd"}> : () -> ()
    %cst_40 = arith.constant dense<0.000000e+00> : vector<12x1x8xf32>
    %82 = tpu.matmul %81, %62, %cst_40 {dimension_numbers = #tpu.dot_dimension_numbers<[2], [1], [1], [2], [0, 0, 0, 1, 1, 2], [0], [0]>} : vector<12x1x8xf32>, vector<12x8x8xf32>, vector<12x1x8xf32> -> vector<12x1x8xf32>
    "tpu.trace_stop"() : () -> ()
    %83 = vector.shape_cast %82 : vector<12x1x8xf32> to vector<12x8xf32>
    %84 = vector.extract_strided_slice %9 {offsets = [0, 0, 24], sizes = [12, 8, 8], strides = [1, 1, 1]} : vector<12x8x32xf32> to vector<12x8x8xf32>
    %85 = vector.extract_strided_slice %10 {offsets = [0, 0, 24], sizes = [12, 8, 8], strides = [1, 1, 1]} : vector<12x8x32xf32> to vector<12x8x8xf32>
    %86 = vector.extract_strided_slice %11 {offsets = [0, 0, 24], sizes = [12, 8, 8], strides = [1, 1, 1]} : vector<12x8x32xf32> to vector<12x8x8xf32>
    "tpu.trace_start"() <{level = 10 : i32, message = "bld,bmd->blm"}> : () -> ()
    %cst_41 = arith.constant dense<0.000000e+00> : vector<12x8x8xf32>
    %87 = tpu.matmul %84, %85, %cst_41 {dimension_numbers = #tpu.dot_dimension_numbers<[2], [2], [1], [1], [0, 0, 0, 1, 1, 1], [0], [0]>} : vector<12x8x8xf32>, vector<12x8x8xf32>, vector<12x8x8xf32> -> vector<12x8x8xf32>
    "tpu.trace_stop"() : () -> ()
    %cst_42 = arith.constant dense<0xFF800000> : vector<12x8xf32>
    %88 = vector.multi_reduction <maximumf>, %87, %cst_42 [2] : vector<12x8x8xf32> to vector<12x8xf32>
    %89 = vector.shape_cast %88 : vector<12x8xf32> to vector<12x8x1xf32>
    %90 = vector.broadcast %89 : vector<12x8x1xf32> to vector<12x8x8xf32>
    %91 = arith.subf %87, %90 : vector<12x8x8xf32>
    %92 = math.exp %91 : vector<12x8x8xf32>
    %cst_43 = arith.constant dense<0.000000e+00> : vector<12x8xf32>
    %93 = vector.multi_reduction <add>, %92, %cst_43 [2] : vector<12x8x8xf32> to vector<12x8xf32>
    %94 = vector.shape_cast %93 : vector<12x8xf32> to vector<12x8x1xf32>
    %cst_44 = arith.constant 1.000000e+00 : f32
    %95 = vector.broadcast %cst_44 : f32 to vector<12x8x1xf32>
    %96 = arith.divf %95, %94 : vector<12x8x1xf32>
    %97 = vector.broadcast %96 : vector<12x8x1xf32> to vector<12x8x8xf32>
    %98 = arith.mulf %92, %97 : vector<12x8x8xf32>
    %c0_45 = arith.constant 0 : index
    %c0_46 = arith.constant 0 : index
    %c3 = arith.constant 3 : index
    %c0_47 = arith.constant 0 : index
    %c0_48 = arith.constant 0 : index
    %99 = vector.load %arg6[%c0_45, %c0_46, %c3, %c0_47, %c0_48] : memref<1x12x4x8x8xf32, #tpu.memory_space<vmem>>, vector<1x12x1x8x8xf32>
    %100 = vector.shape_cast %99 : vector<1x12x1x8x8xf32> to vector<12x8x8xf32>
    %101 = vector.shape_cast %98 : vector<12x8x8xf32> to vector<1x12x1x8x8xf32>
    tpu.vector_store %arg6[%c0_45, %c0_46, %c3, %c0_47, %c0_48], %101 {strides = array<i32>} : memref<1x12x4x8x8xf32, #tpu.memory_space<vmem>>, vector<1x12x1x8x8xf32>,
    %cst_49 = arith.constant dense<0.000000e+00> : vector<12x8xf32>
    %102 = vector.multi_reduction <add>, %98, %cst_49 [1] : vector<12x8x8xf32> to vector<12x8xf32>
    %103 = vector.shape_cast %102 : vector<12x8xf32> to vector<12x1x8xf32>
    %cst_50 = arith.constant 8.000000e+00 : f32
    %104 = vector.broadcast %cst_50 : f32 to vector<12x1x8xf32>
    %105 = arith.divf %103, %104 : vector<12x1x8xf32>
    "tpu.trace_start"() <{level = 10 : i32, message = "bql,bld->bqd"}> : () -> ()
    %cst_51 = arith.constant dense<0.000000e+00> : vector<12x1x8xf32>
    %106 = tpu.matmul %105, %86, %cst_51 {dimension_numbers = #tpu.dot_dimension_numbers<[2], [1], [1], [2], [0, 0, 0, 1, 1, 2], [0], [0]>} : vector<12x1x8xf32>, vector<12x8x8xf32>, vector<12x1x8xf32> -> vector<12x1x8xf32>
    "tpu.trace_stop"() : () -> ()
    %107 = vector.shape_cast %106 : vector<12x1x8xf32> to vector<12x8xf32>
    %108 = tpu.concatenate %35, %59, %83, %107 in 1 : vector<12x8xf32>, vector<12x8xf32>, vector<12x8xf32>, vector<12x8xf32> -> vector<12x32xf32>
    %c0_52 = arith.constant 0 : index
    %c0_53 = arith.constant 0 : index
    %109 = vector.load %arg3[%c0_52, %c0_53] : memref<32x32xf32, #tpu.memory_space<vmem>>, vector<32x32xf32>
    %cst_54 = arith.constant dense<0.000000e+00> : vector<12x32xf32>
    %110 = tpu.matmul %108, %109, %cst_54 {dimension_numbers = #tpu.dot_dimension_numbers<[1], [0], [0], [1], [0, 0, 1, 1], [], []>} : vector<12x32xf32>, vector<32x32xf32>, vector<12x32xf32> -> vector<12x32xf32>
    %c1_55 = arith.constant 1 : index
    %c0_56 = arith.constant 0 : index
    %111 = vector.load %arg4[%c1_55, %c0_56] : memref<2x96xf32, #tpu.memory_space<vmem>>, vector<1x32xf32>
    %112 = vector.broadcast %111 : vector<1x32xf32> to vector<12x32xf32>
    %113 = arith.addf %110, %112 : vector<12x32xf32>
    %c0_57 = arith.constant 0 : index
    %c0_58 = arith.constant 0 : index
    %c0_59 = arith.constant 0 : index
    %114 = vector.load %arg5[%c0_57, %c0_58, %c0_59] : memref<1x12x32xf32, #tpu.memory_space<vmem>>, vector<1x12x32xf32>
    %115 = vector.shape_cast %114 : vector<1x12x32xf32> to vector<12x32xf32>
    %116 = vector.shape_cast %113 : vector<12x32xf32> to vector<1x12x32xf32>
    tpu.vector_store %arg5[%c0_57, %c0_58, %c0_59], %116 {strides = array<i32>} : memref<1x12x32xf32, #tpu.memory_space<vmem>>, vector<1x12x32xf32>,
    return
  }
  func.func @transform_0(%arg0: i32) -> (i32, i32, i32, i32) {
    %c0_i32 = arith.constant 0 : i32
    %c0_i32_0 = arith.constant 0 : i32
    %c0_i32_1 = arith.constant 0 : i32
    %c0_i32_2 = arith.constant 0 : i32
    return %arg0, %c0_i32, %c0_i32_0, %c0_i32_1 : i32, i32, i32, i32
  }
  func.func @transform_1(%arg0: i32) -> (i32, i32) {
    %c0_i32 = arith.constant 0 : i32
    %c0_i32_0 = arith.constant 0 : i32
    %c0_i32_1 = arith.constant 0 : i32
    return %c0_i32, %c0_i32_0 : i32, i32
  }
  func.func @transform_2(%arg0: i32) -> (i32, i32) {
    %c0_i32 = arith.constant 0 : i32
    %c0_i32_0 = arith.constant 0 : i32
    %c0_i32_1 = arith.constant 0 : i32
    return %c0_i32, %c0_i32_0 : i32, i32
  }
  func.func @transform_3(%arg0: i32) -> (i32, i32) {
    %c0_i32 = arith.constant 0 : i32
    %c0_i32_0 = arith.constant 0 : i32
    %c0_i32_1 = arith.constant 0 : i32
    return %c0_i32, %c0_i32_0 : i32, i32
  }
  func.func @transform_4(%arg0: i32) -> (i32, i32, i32) {
    %c0_i32 = arith.constant 0 : i32
    %c0_i32_0 = arith.constant 0 : i32
    %c0_i32_1 = arith.constant 0 : i32
    return %arg0, %c0_i32, %c0_i32_0 : i32, i32, i32
  }
  func.func @transform_5(%arg0: i32) -> (i32, i32, i32, i32, i32) {
    %c0_i32 = arith.constant 0 : i32
    %c0_i32_0 = arith.constant 0 : i32
    %c0_i32_1 = arith.constant 0 : i32
    %c0_i32_2 = arith.constant 0 : i32
    %c0_i32_3 = arith.constant 0 : i32
    return %arg0, %c0_i32, %c0_i32_0, %c0_i32_1, %c0_i32_2 : i32, i32, i32, i32, i32
  }
}

</mosaic_0001>

<bundles_post_ra>
// kernel: tpu_custom_call.1
= control target key start
LH: loop header
LB: loop body
LE: loop exit
PB: predicated region body
PF: predicated region fallthrough
CT: control target
= control target key end

     0   :  { %11 = vsyncpa [#allocation3], 0  ;;  %s11893_s0 = inlined_call_operand.hbm [shape: f32[1,12,8,96], index: 0, kind: input, shape index: {}]   ;;  %s11894_s1 = inlined_call_operand.hbm [shape: f32[96,96], index: 1, kind: input, shape index: {}]   ;;  %s11895_s2 = inlined_call_operand.hbm [shape: f32[32,32], index: 2, kind: input, shape index: {}]   ;;  %s11896_s3 = inlined_call_operand.vmem [shape: f32[2,96], index: 3, kind: input, shape index: {}]   ;;  %s11897_s4 = inlined_call_operand.vmem [shape: f32[1,12,32], index: 4, kind: output, shape index: {0}]   ;;  %s11898_s5 = inlined_call_operand.vmem [shape: f32[1,12,4,8,8], index: 5, kind: output, shape index: {1}]  }
   0x1   :  { %12 = vsyncpa [#allocation5], 0  ;;  %s10176_s18 = smov [#allocation4]   ;;  %s10177_s20 = smov [#allocation2]  }
   0x2   :  { %s30_s19 = sshll.u32 %s10176_s18, 4  ;;  %s18_s21 = sshll.u32 %s10177_s20, 4  ;;  %s31_s19 = int_to_ptr.vmem [resolvable:$true] %s30_s19  ;;  %s10226_s21 = int_to_ptr.vmem [resolvable:$true] %s18_s21 }
   0x3   :  { %s10106_s24 = scalar_lea.hbm %s11894_s1, 1536 }
   0x4   :  { %p10107_p0 = scmp.ne.s32.totalorder %s11894_s1, %s10106_s24  ;;  %p10110_p1 = scmp.lt.u32.totalorder %s10106_s24, %s11894_s1 }
   0x6   :  { %p10112_p2 = pnand %p10110_p1, %p10107_p0 }
   0x8   :  { %10115 = shalt.err (!%p10112_p2)
}
   0x9   :  { %s10116_s29 = scalar_lea.vmem %s31_s19, 1536  ;;  %p10121_p4 = scmp.lt.s32.totalorder %s31_s19, %s31_s19 }
   0xa   :  { %p10117_p3 = scmp.ne.s32.totalorder %s31_s19, %s10116_s29  ;;  %p10122_p5 = scmp.lt.s32.totalorder %s10116_s29, %s10116_s29 }
   0xc   :  { %p10123_p6 = por %p10122_p5, %p10121_p4 }
   0xe   :  { %p10124_p7 = pnand %p10123_p6, %p10117_p3 }
  0x10   :  { %10127 = shalt.err (!%p10124_p7)
}
  0x11   :  { %s10178_s30 = smov 128   ;;  %s10179_s6 = smov 8  }
  0x12   :  { %36 = dma.hbm_to_vmem [thread:$0]  %s11894_s1, 1536, %s31_s19, [#allocation5], %s10178_s30, %s10178_s30, %s10179_s6  }
  0x13   :  { %s10128_s11 = scalar_lea.hbm %s11893_s0, 1536 }
  0x14   :  { %p10129_p8 = scmp.ne.s32.totalorder %s11893_s0, %s10128_s11  ;;  %p10132_p9 = scmp.lt.u32.totalorder %s10128_s11, %s11893_s0 }
  0x16   :  { %p10134_p10 = pnand %p10132_p9, %p10129_p8 }
  0x18   :  { %10137 = shalt.err (!%p10134_p10)
}
  0x19   :  { %s10138_s16 = scalar_lea.vmem %s10226_s21, 1536  ;;  %p10143_p12 = scmp.lt.s32.totalorder %s10226_s21, %s10226_s21 }
  0x1a   :  { %p10139_p11 = scmp.ne.s32.totalorder %s10226_s21, %s10138_s16  ;;  %p10144_p13 = scmp.lt.s32.totalorder %s10138_s16, %s10138_s16 }
  0x1c   :  { %p10145_p0 = por %p10144_p13, %p10143_p12 }
  0x1e   :  { %p10146_p1 = pnand %p10145_p0, %p10139_p11 }
  0x20   :  { %10149 = shalt.err (!%p10146_p1)
}
  0x21   :  { %24 = dma.hbm_to_vmem [thread:$0]  %s11893_s0, 1536, %s10226_s21, [#allocation3], %s10178_s30, %s10178_s30, %s10179_s6  }
  0x22   :  { %s10180_s18 = smov [#allocation6]   ;;  %s10150_s23 = scalar_lea.hbm %s11895_s2, 512 }
  0x23   :  { %s42_s19 = sshll.u32 %s10180_s18, 4  ;;  %p10151_p2 = scmp.ne.s32.totalorder %s11895_s2, %s10150_s23  ;;  %s43_s19 = int_to_ptr.vmem [resolvable:$true] %s42_s19 }
  0x24   :  { %p10154_p3 = scmp.lt.u32.totalorder %s10150_s23, %s11895_s2 }
  0x26   :  { %p10156_p4 = pnand %p10154_p3, %p10151_p2 }
  0x28   :  { %10159 = shalt.err (!%p10156_p4)
}
  0x29   :  { %s10160_s28 = scalar_lea.vmem %s43_s19, 512  ;;  %p10165_p6 = scmp.lt.s32.totalorder %s43_s19, %s43_s19 }
  0x2a   :  { %p10161_p5 = scmp.ne.s32.totalorder %s43_s19, %s10160_s28  ;;  %p10166_p7 = scmp.lt.s32.totalorder %s10160_s28, %s10160_s28 }
  0x2c   :  { %p10167_p8 = por %p10166_p7, %p10165_p6 }
  0x2e   :  { %p10168_p9 = pnand %p10167_p8, %p10161_p5 }
  0x30   :  { %10171 = shalt.err (!%p10168_p9)
}
  0x31   :  { %48 = dma.hbm_to_vmem [thread:$0]  %s11895_s2, 512, %s43_s19, [#allocation5], %s10178_s30, %s10178_s30, %s10179_s6  }
  0x32   :  { %10172 = dma.done.wait [#allocation3], 1536  }
  0x33   :  { %10173 = vsyncadd [#allocation3], 4294965760 }
  0x34   :  { %10174 = dma.done.wait [#allocation5], 2048  }
  0x35   :  { %10175 = vsyncadd [#allocation5], 4294965248  ;;  %v72_v0 = vld [vmem:[#allocation4] sm:$0xff]  ;;  %v73_v1 = vld [vmem:[#allocation4 + $0x8] sm:$0xff]  ;;  %vm89_vm0 = vcmask 785408   ;;  %v10181_v30 = vmov 0.0  }
  0x36   :  { %v74_v2 = vld [vmem:[#allocation4 + $0x10] sm:$0xff]  ;;  %v9862_v3 = vpack.c.bf16 %v73_v1, %v72_v0  ;;  %v75_v4 = vld [vmem:[#allocation4 + $0x18] sm:$0xff]  ;;  %v76_v6 = vld [vmem:[#allocation4 + $0x20] sm:$0xff]  ;;  %9371 = vmatprep.subr.mxu1 %v10181_v30  ;;  %vm10182_vm1 = vmmov 0   ;;  %s10183_s30 = smov 96   ;;  %s10184_s7 = smov 64  }
  0x37   :  { %v9866_v5 = vpack.c.bf16 %v75_v4, %v74_v2  ;;  %v77_v7 = vld [vmem:[#allocation4 + $0x28] sm:$0xff]  ;;  %v60_v8 = vld [vmem:[#allocation2] sm:$0xff]  ;;  %v78_v10 = vld [vmem:[#allocation4 + $0x30] sm:$0xff]  ;;  %9373 = vmatprep.mubr.msk.f32.mxu1 %vm10182_vm1, %v10181_v30  ;;  %vm254_vm2 = vcmask 64512   ;;  %s10185_s8 = smov 88   ;;  %s10186_s9 = smov 120  }
  0x38   :  { %9863 = vmatprep.subr.bf16.mxu0 %v9862_v3  ;;  %v9870_v9 = vpack.c.bf16 %v77_v7, %v76_v6  ;;  %9353 = vmatprep.mubr.msk.f32.mxu0 %vm89_vm0, %v60_v8  ;;  %v79_v11 = vld [vmem:[#allocation4 + $0x38] sm:$0xff]  ;;  %v80_v13 = vld [vmem:[#allocation4 + $0x40] sm:$0xff]  ;;  %v81_v14 = vld [vmem:[#allocation4 + $0x48] sm:$0xff]  ;;  %s10187_s10 = smov 56   ;;  %vm8657_vm3 = vcmask 1041409   ;;  %vm8660_vm4 = vcmask 1042434  }
  0x39   :  { %9865 = vmatpush3.bf16.msra.mxu0 %v9862_v3  ;;  %v9874_v12 = vpack.c.bf16 %v79_v11, %v78_v10  ;;  %v9878_v15 = vpack.c.bf16 %v81_v14, %v80_v13  ;;  %v82_v16 = vld [vmem:[#allocation4 + $0x50] sm:$0xff]  ;;  %v83_v17 = vld [vmem:[#allocation4 + $0x58] sm:$0xff]  ;;  %v61_v19 = vld [vmem:[#allocation2 + $0x8] sm:$0xff]  ;;  %vm8663_vm5 = vcmask 1043459   ;;  %vm8666_vm6 = vcmask 1044484   ;;  %s10190_s12 = smov 48  }
  0x3a   :  { %9867 = vmatprep.subr.bf16.mxu0 %v9866_v5  ;;  %v9882_v18 = vpack.c.bf16 %v83_v17, %v82_v16  ;;  %v62_v20 = vld [vmem:[#allocation2 + $0x10] sm:$0xff]  ;;  %v63_v21 = vld [vmem:[#allocation2 + $0x18] sm:$0xff]  ;;  %v64_v22 = vld [vmem:[#allocation2 + $0x20] sm:$0xff]  ;;  %vm8669_vm7 = vcmask 1045509   ;;  %vm8672_vm8 = vcmask 1046534   ;;  %vm8675_vm9 = vcmask 1047559  }
  0x3b   :  { %v65_v23 = vld [vmem:[#allocation2 + $0x28] sm:$0xff]  ;;  %v66_v24 = vld [vmem:[#allocation2 + $0x30] sm:$0xff]  ;;  %v67_v25 = vld [vmem:[#allocation2 + $0x38] sm:$0xff]  ;;  %vm8804_vm10 = vcmask 195584   ;;  %vm8801_vm11 = vcmask 130048   ;;  %vm8816_vm12 = vcmask 261120  }
  0x3c   :  { %v68_v26 = vld [vmem:[#allocation2 + $0x40] sm:$0xff]  ;;  %v69_v27 = vld [vmem:[#allocation2 + $0x48] sm:$0xff]  ;;  %v70_v28 = vld [vmem:[#allocation2 + $0x50] sm:$0xff]  ;;  %vm8899_vm13 = vcmask 257024  }
  0x3d   :  { %9869 = vmatpush3.bf16.msra.mxu0 %v9866_v5  ;;  %v71_v29 = vld [vmem:[#allocation2 + $0x58] sm:$0xff]  ;;  %v8911_v31 = vld [vmem:[%s11896_s3] ss:$0 sm:$0xff] }
  0x3e   :  { %9871 = vmatprep.subr.bf16.mxu0 %v9870_v9 }
  0x41   :  { %9873 = vmatpush3.bf16.msra.mxu0 %v9870_v9 }
  0x42   :  { %9875 = vmatprep.subr.bf16.mxu0 %v9874_v12 }
  0x45   :  { %9877 = vmatpush3.bf16.msra.mxu0 %v9874_v12 }
  0x46   :  { %9879 = vmatprep.subr.bf16.mxu0 %v9878_v15 }
  0x49   :  { %9881 = vmatpush3.bf16.msra.mxu0 %v9878_v15 }
  0x4a   :  { %9883 = vmatprep.subr.bf16.mxu0 %v9882_v18 }
  0x4d   :  { %9885 = vmatpush3.bf16.msra.mxu0 %v9882_v18 }
  0x4e   :  { %9426 = vmatprep.subr.mxu0 %v10181_v30 }
  0x50   :  { %9354 = vmatmul.mubr.msk.f32.vlgmr.msra.gmra.mrb[0].mxu0 %vm89_vm0, %v61_v19 }
  0x51   :  { %9356 = vmatprep.mubr.msk.f32.mxu0 %vm89_vm0, %v62_v20 }
  0x54   :  { %9357 = vmatmul.mubr.msk.f32.gmra.mrb[2].mxu0 %vm89_vm0, %v63_v21 }
  0x55   :  { %9359 = vmatprep.mubr.msk.f32.mxu0 %vm89_vm0, %v64_v22 }
  0x58   :  { %9360 = vmatmul.mubr.msk.f32.gmra.mrb[4].mxu0 %vm89_vm0, %v65_v23 }
  0x59   :  { %9362 = vmatprep.mubr.msk.f32.mxu0 %vm89_vm0, %v66_v24 }
  0x5c   :  { %9363 = vmatmul.mubr.msk.f32.gmra.mrb[6].mxu0 %vm89_vm0, %v67_v25 }
  0x5d   :  { %9365 = vmatprep.mubr.msk.f32.mxu0 %vm89_vm0, %v68_v26 }
  0x60   :  { %9366 = vmatmul.mubr.msk.f32.gmra.mrb[8].mxu0 %vm89_vm0, %v69_v27 }
  0x61   :  { %9368 = vmatprep.mubr.msk.f32.mxu0 %vm89_vm0, %v70_v28 }
  0x64   :  { %9369 = vmatmul.mubr.msk.f32.gmra.mrb[10].mxu0 %vm89_vm0, %v71_v29 }
  0x65   :  { %9428 = vmatprep.mubr.msk.f32.mxu0 %vm10182_vm1, %v10181_v30 }
 0x123   :  { %v9355_v32 = vpop.f32.mrb[0].mxu0 }
 0x124   :  { %v192_v33 = vpop.f32.mrb[1].mxu0  ;;  %v10303_v37 = vadd.f32 %v9355_v32, %v8911_v31 }
 0x125   :  { %v10299_v34 = vadd.f32 %v8911_v31, %v192_v33 }
 0x127   :  { %v9358_v35 = vpop.f32.mrb[2].mxu0  ;;  %252 = vrot.lane.b32.xlu0 %v10299_v34, %s10183_s30 }
 0x128   :  { %v202_v36 = vpop.f32.mrb[3].mxu0  ;;  %v10307_v39 = vadd.f32 %v9358_v35, %v8911_v31 }
 0x129   :  { %v10305_v38 = vadd.f32 %v8911_v31, %v202_v36 }
 0x12b   :  { %407 = vrot.lane.b32.xlu1 %v10305_v38, %s10183_s30  ;;  %330 = vrot.lane.b32.xlu0 %v10303_v37, %s10183_s30  ;;  %v9361_v40 = vpop.f32.mrb[4].mxu0 }
 0x12c   :  { %v212_v41 = vpop.f32.mrb[5].mxu0  ;;  %v10317_v43 = vadd.f32 %v9361_v40, %v8911_v31 }
 0x12d   :  { %v10313_v42 = vadd.f32 %v8911_v31, %v212_v41 }
 0x12f   :  { %484 = vrot.lane.b32.xlu1 %v10307_v39, %s10183_s30  ;;  %v9364_v44 = vpop.f32.mrb[6].mxu0  ;;  %561 = vrot.lane.b32.xlu0 %v10313_v42, %s10183_s30 }
 0x130   :  { %v222_v45 = vpop.f32.mrb[7].mxu0  ;;  %v10325_v47 = vadd.f32 %v9364_v44, %v8911_v31 }
 0x131   :  { %v10321_v46 = vadd.f32 %v8911_v31, %v222_v45 }
 0x133   :  { %638 = vrot.lane.b32.xlu1 %v10317_v43, %s10183_s30  ;;  %v9367_v48 = vpop.f32.mrb[8].mxu0  ;;  %715 = vrot.lane.b32.xlu0 %v10321_v46, %s10183_s30 }
 0x134   :  { %v232_v49 = vpop.f32.mrb[9].mxu0  ;;  %v10333_v51 = vadd.f32 %v9367_v48, %v8911_v31 }
 0x135   :  { %v10329_v50 = vadd.f32 %v8911_v31, %v232_v49 }
 0x137   :  { %792 = vrot.lane.b32.xlu1 %v10325_v47, %s10183_s30  ;;  %v9370_v52 = vpop.f32.mrb[10].mxu0  ;;  %869 = vrot.lane.b32.xlu0 %v10329_v50, %s10183_s30 }
 0x138   :  { %v242_v53 = vpop.f32.mrb[11].mxu0  ;;  %v10341_v55 = vadd.f32 %v9370_v52, %v8911_v31 }
 0x139   :  { %v10337_v54 = vadd.f32 %v8911_v31, %v242_v53 }
 0x13b   :  { %946 = vrot.lane.b32.xlu1 %v10333_v51, %s10183_s30  ;;  %1023 = vrot.lane.b32.xlu0 %v10337_v54, %s10183_s30 }
 0x13f   :  { %1100 = vrot.lane.b32.xlu1 %v10341_v55, %s10183_s30 }
 0x143   :  { %1429 = vrot.lane.b32.xlu1 %v10299_v34, %s10184_s7 }
 0x199   :  { %v253_v56 = vpop.permute.xlu0 %252 }
 0x19a   :  { %9372 = vmatpush3.xpose.msk.msra.mxu1 %vm254_vm2, %v253_v56 }
 0x19b   :  { %9376 = vmatprep.subr.mxu1 %v10181_v30 }
 0x19d   :  { %v408_v57 = vpop.permute.xlu1 %407  ;;  %9374 = vmatmul.mubr.msk.f32.vlgmr.msra.gmra.mrb[0].mxu1 %vm254_vm2, %v10299_v34  ;;  %v331_v58 = vpop.permute.xlu0 %330 }
 0x19e   :  { %9377 = vmatpush3.xpose.msk.msra.mxu1 %vm254_vm2, %v331_v58  ;;  %9378 = vmatprep.mubr.msk.f32.mxu1 %vm10182_vm1, %v10181_v30 }
 0x19f   :  { %9381 = vmatprep.subr.mxu1 %v10181_v30 }
 0x1a1   :  { %v485_v59 = vpop.permute.xlu1 %484  ;;  %9379 = vmatmul.mubr.msk.f32.vlgmr.msra.gmra.mrb[2].mxu1 %vm254_vm2, %v10303_v37  ;;  %v562_v61 = vpop.permute.xlu0 %561 }
 0x1a2   :  { %9382 = vmatpush3.xpose.msk.msra.mxu1 %vm254_vm2, %v408_v57  ;;  %9383 = vmatprep.mubr.msk.f32.mxu1 %vm10182_vm1, %v10181_v30 }
 0x1a3   :  { %9386 = vmatprep.subr.mxu1 %v10181_v30 }
 0x1a5   :  { %v639_v60 = vpop.permute.xlu1 %638  ;;  %9384 = vmatmul.mubr.msk.f32.vlgmr.msra.gmra.mrb[4].mxu1 %vm254_vm2, %v10305_v38  ;;  %v716_v0 = vpop.permute.xlu0 %715 }
 0x1a6   :  { %9387 = vmatpush3.xpose.msk.msra.mxu1 %vm254_vm2, %v485_v59  ;;  %9388 = vmatprep.mubr.msk.f32.mxu1 %vm10182_vm1, %v10181_v30 }
 0x1a7   :  { %9391 = vmatprep.subr.mxu1 %v10181_v30 }
 0x1a9   :  { %v793_v62 = vpop.permute.xlu1 %792  ;;  %9389 = vmatmul.mubr.msk.f32.vlgmr.msra.gmra.mrb[6].mxu1 %vm254_vm2, %v10307_v39  ;;  %v870_v2 = vpop.permute.xlu0 %869 }
 0x1aa   :  { %9392 = vmatpush3.xpose.msk.msra.mxu1 %vm254_vm2, %v562_v61  ;;  %9393 = vmatprep.mubr.msk.f32.mxu1 %vm10182_vm1, %v10181_v30 }
 0x1ab   :  { %9396 = vmatprep.subr.mxu1 %v10181_v30 }
 0x1ad   :  { %v947_v63 = vpop.permute.xlu1 %946  ;;  %9394 = vmatmul.mubr.msk.f32.vlgmr.msra.gmra.mrb[8].mxu1 %vm254_vm2, %v10313_v42  ;;  %v1024_v3 = vpop.permute.xlu0 %1023 }
 0x1ae   :  { %9397 = vmatpush3.xpose.msk.msra.mxu1 %vm254_vm2, %v639_v60  ;;  %9398 = vmatprep.mubr.msk.f32.mxu1 %vm10182_vm1, %v10181_v30 }
 0x1af   :  { %9401 = vmatprep.subr.mxu1 %v10181_v30 }
 0x1b1   :  { %v1101_v1 = vpop.permute.xlu1 %1100  ;;  %9399 = vmatmul.mubr.msk.f32.vlgmr.msra.gmra.mrb[10].mxu1 %vm254_vm2, %v10317_v43 }
 0x1b2   :  { %9402 = vmatpush3.xpose.msk.msra.mxu1 %vm254_vm2, %v716_v0  ;;  %9427 = vmatpush3.xpose.msk.msra.mxu0 %vm254_vm2, %v1101_v1 }
 0x1b3   :  { %9403 = vmatprep.mubr.msk.f32.mxu1 %vm10182_vm1, %v10181_v30  ;;  %9406 = vmatprep.subr.mxu1 %v10181_v30 }
 0x1b4   :  { %9436 = vmatprep.subr.mxu0 %v10181_v30 }
 0x1b5   :  { %9429 = vmatmul.mubr.msk.f32.vlgmr.msra.gmra.mrb[12].mxu0 %vm254_vm2, %v10341_v55  ;;  %9404 = vmatmul.mubr.msk.f32.vlgmr.msra.gmra.mrb[12].mxu1 %vm254_vm2, %v10321_v46  ;;  %v1430_v4 = vpop.permute.xlu1 %1429 }
 0x1b6   :  { %9407 = vmatpush3.xpose.msk.msra.mxu1 %vm254_vm2, %v793_v62  ;;  %9408 = vmatprep.mubr.msk.f32.mxu1 %vm10182_vm1, %v10181_v30 }
 0x1b7   :  { %9411 = vmatprep.subr.mxu1 %v10181_v30  ;;  %9438 = vmatprep.mubr.msk.f32.mxu0 %vm10182_vm1, %v10181_v30 }
 0x1b9   :  { %9409 = vmatmul.mubr.msk.f32.vlgmr.msra.gmra.mrb[14].mxu1 %vm254_vm2, %v10325_v47 }
 0x1ba   :  { %9412 = vmatpush3.xpose.msk.msra.mxu1 %vm254_vm2, %v870_v2  ;;  %9413 = vmatprep.mubr.msk.f32.mxu1 %vm10182_vm1, %v10181_v30 }
 0x1bb   :  { %9416 = vmatprep.subr.mxu1 %v10181_v30 }
 0x1bd   :  { %9414 = vmatmul.mubr.msk.f32.vlgmr.msra.gmra.mrb[16].mxu1 %vm254_vm2, %v10329_v50 }
 0x1be   :  { %9417 = vmatpush3.xpose.msk.msra.mxu1 %vm254_vm2, %v947_v63  ;;  %9418 = vmatprep.mubr.msk.f32.mxu1 %vm10182_vm1, %v10181_v30 }
 0x1bf   :  { %9421 = vmatprep.subr.mxu1 %v10181_v30 }
 0x1c1   :  { %9419 = vmatmul.mubr.msk.f32.vlgmr.msra.gmra.mrb[18].mxu1 %vm254_vm2, %v10333_v51 }
 0x1c2   :  { %9422 = vmatpush3.xpose.msk.msra.mxu1 %vm254_vm2, %v1024_v3  ;;  %9423 = vmatprep.mubr.msk.f32.mxu1 %vm10182_vm1, %v10181_v30 }
 0x1c3   :  { %9431 = vmatprep.subr.mxu1 %v10181_v30 }
 0x1c5   :  { %9424 = vmatmul.mubr.msk.f32.vlgmr.msra.gmra.mrb[20].mxu1 %vm254_vm2, %v10337_v54 }
 0x1c6   :  { %9432 = vmatpush3.msra.mxu1 %v1430_v4  ;;  %9433 = vmatprep.mubr.msk.f32.mxu1 %vm10182_vm1, %v10181_v30 }
 0x1c7   :  { %9441 = vmatprep.subr.mxu1 %v10181_v30 }
 0x270   :  { %v325_v5 = vpop.f32.mrb[0].mxu1 }
 0x271   :  { %v9375_v6 = vpop.f32.mrb[1].mxu1  ;;  %v1176_v7 = vsel %vm254_vm2, %v325_v5, -inf }
 0x272   :  { %1177 = vmax.xlane.f32.xlu0 %v1176_v7 }
 0x274   :  { %v402_v8 = vpop.f32.mrb[2].mxu1 }
 0x275   :  { %v9380_v9 = vpop.f32.mrb[3].mxu1  ;;  %v1179_v10 = vsel %vm254_vm2, %v402_v8, -inf }
 0x276   :  { %1180 = vmax.xlane.f32.xlu1 %v1179_v10 }
 0x278   :  { %v479_v11 = vpop.f32.mrb[4].mxu1 }
 0x279   :  { %v9385_v12 = vpop.f32.mrb[5].mxu1  ;;  %v1182_v13 = vsel %vm254_vm2, %v479_v11, -inf }
 0x27a   :  { %1183 = vmax.xlane.f32.xlu0 %v1182_v13 }
 0x27c   :  { %v556_v14 = vpop.f32.mrb[6].mxu1 }
 0x27d   :  { %v9390_v15 = vpop.f32.mrb[7].mxu1  ;;  %v1185_v16 = vsel %vm254_vm2, %v556_v14, -inf }
 0x27e   :  { %1186 = vmax.xlane.f32.xlu0 %v1185_v16 }
 0x280   :  { %v10426_v17 = vpop.f32.mrb[8].mxu1 }
 0x281   :  { %v9395_v18 = vpop.f32.mrb[9].mxu1  ;;  %v1188_v19 = vsel %vm254_vm2, %v10426_v17, -inf }
 0x282   :  { %1189 = vmax.xlane.f32.xlu1 %v1188_v19 }
 0x284   :  { %v10430_v20 = vpop.f32.mrb[10].mxu1 }
 0x285   :  { %v9400_v21 = vpop.f32.mrb[11].mxu1  ;;  %v1191_v31 = vsel %vm254_vm2, %v10430_v20, -inf }
 0x288   :  { %v10432_v22 = vpop.f32.mrb[12].mxu1  ;;  %v10434_v23 = vpop.f32.mrb[12].mxu0 }
 0x289   :  { %v9405_v24 = vpop.f32.mrb[13].mxu1  ;;  %v9430_v25 = vpop.f32.mrb[13].mxu0  ;;  %v1209_v26 = vsel %vm254_vm2, %v10434_v23, -inf  ;;  %v1194_v27 = vsel %vm254_vm2, %v10432_v22, -inf }
 0x28a   :  { %1210 = vmax.xlane.f32.xlu0 %v1209_v26  ;;  %1195 = vmax.xlane.f32.xlu1 %v1194_v27 }
 0x28c   :  { %v10440_v28 = vpop.f32.mrb[14].mxu1 }
 0x28d   :  { %v9410_v29 = vpop.f32.mrb[15].mxu1  ;;  %v1197_v35 = vsel %vm254_vm2, %v10440_v28, -inf }
 0x28e   :  { %1192 = vmax.xlane.f32.xlu0 %v1191_v31 }
 0x290   :  { %v10444_v32 = vpop.f32.mrb[16].mxu1 }
 0x291   :  { %v9415_v33 = vpop.f32.mrb[17].mxu1  ;;  %v1200_v36 = vsel %vm254_vm2, %v10444_v32, -inf }
 0x292   :  { %1198 = vmax.xlane.f32.xlu0 %v1197_v35  ;;  %1201 = vmax.xlane.f32.xlu1 %v1200_v36 }
 0x294   :  { %v10450_v40 = vpop.f32.mrb[18].mxu1 }
 0x295   :  { %v9420_v41 = vpop.f32.mrb[19].mxu1  ;;  %v1203_v44 = vsel %vm254_vm2, %v10450_v40, -inf }
 0x296   :  { %1204 = vmax.xlane.f32.xlu0 %v1203_v44 }
 0x298   :  { %v10454_v45 = vpop.f32.mrb[20].mxu1 }
 0x299   :  { %v9425_v48 = vpop.f32.mrb[21].mxu1  ;;  %v1206_v49 = vsel %vm254_vm2, %v10454_v45, -inf }
 0x2a3   :  { %1581 = vrot.lane.b32.xlu1 %v10305_v38, %s10184_s7 }
 0x2a7   :  { %1657 = vrot.lane.b32.xlu1 %v10307_v39, %s10184_s7 }
 0x2ab   :  { %1809 = vrot.lane.b32.xlu1 %v10317_v43, %s10184_s7 }
 0x2ac   :  { %1505 = vrot.lane.b32.xlu0 %v10303_v37, %s10184_s7 }
 0x2af   :  { %1961 = vrot.lane.b32.xlu1 %v10325_v47, %s10184_s7 }
 0x2b0   :  { %1733 = vrot.lane.b32.xlu0 %v10313_v42, %s10184_s7 }
 0x2b3   :  { %2113 = vrot.lane.b32.xlu1 %v10333_v51, %s10184_s7 }
 0x2b4   :  { %1885 = vrot.lane.b32.xlu0 %v10321_v46, %s10184_s7 }
 0x2b8   :  { %2037 = vrot.lane.b32.xlu0 %v10329_v50, %s10184_s7 }
 0x2bc   :  { %2189 = vrot.lane.b32.xlu0 %v10337_v54, %s10184_s7 }
 0x2d7   :  { %1207 = vmax.xlane.f32.xlu1 %v1206_v49 }
 0x2e8   :  { %2265 = vrot.lane.b32.xlu1 %v10341_v55, %s10184_s7  ;;  %s10193_s7 = smov 40  }
 0x2ff   :  { %v1178_v52 = vpop.xlane.xlu0 %1177 }
 0x300   :  { %v1212_v53 = vsub.f32 %v325_v5, %v1178_v52 }
 0x302   :  { %v1224_v56 = vmul.f32 1.442695, %v1212_v53 }
 0x303   :  { %v1181_v57 = vpop.xlane.xlu1 %1180 }
 0x304   :  { %9914 = vpow2.f32 %v1224_v56  ;;  %v1213_v58 = vsub.f32 %v402_v8, %v1181_v57 }
 0x306   :  { %v1226_v59 = vmul.f32 1.442695, %v1213_v58 }
 0x307   :  { %v1184_v60 = vpop.xlane.xlu0 %1183 }
 0x308   :  { %9916 = vpow2.f32 %v1226_v59  ;;  %v1214_v61 = vsub.f32 %v479_v11, %v1184_v60 }
 0x30a   :  { %v1228_v62 = vmul.f32 1.442695, %v1214_v61 }
 0x30b   :  { %v1187_v63 = vpop.xlane.xlu0 %1186 }
 0x30c   :  { %9918 = vpow2.f32 %v1228_v62  ;;  %v1215_v0 = vsub.f32 %v556_v14, %v1187_v63 }
 0x30e   :  { %v10480_v1 = vpop.eup %9914  ;;  %v1230_v2 = vmul.f32 1.442695, %v1215_v0 }
 0x30f   :  { %v1190_v3 = vpop.xlane.xlu1 %1189  ;;  %v1248_v4 = vsel %vm254_vm2, %v10480_v1, 0.0 }
 0x310   :  { %9920 = vpow2.f32 %v1230_v2  ;;  %v1216_v5 = vsub.f32 %v10426_v17, %v1190_v3  ;;  %1249 = vadd.xlane.f32.xlu1 %v1248_v4 }
 0x312   :  { %v10485_v6 = vpop.eup %9916  ;;  %v1232_v7 = vmul.f32 1.442695, %v1216_v5 }
 0x313   :  { %v1251_v8 = vsel %vm254_vm2, %v10485_v6, 0.0 }
 0x314   :  { %9922 = vpow2.f32 %v1232_v7  ;;  %1252 = vadd.xlane.f32.xlu0 %v1251_v8 }
 0x316   :  { %v10489_v9 = vpop.eup %9918 }
 0x317   :  { %v1196_v10 = vpop.xlane.xlu1 %1195  ;;  %v1211_v11 = vpop.xlane.xlu0 %1210  ;;  %v1254_v12 = vsel %vm254_vm2, %v10489_v9, 0.0 }
 0x318   :  { %v1218_v13 = vsub.f32 %v10432_v22, %v1196_v10  ;;  %v1223_v14 = vsub.f32 %v10434_v23, %v1211_v11  ;;  %1255 = vadd.xlane.f32.xlu1 %v1254_v12 }
 0x31a   :  { %v10495_v15 = vpop.eup %9920  ;;  %v1236_v16 = vmul.f32 1.442695, %v1218_v13  ;;  %v1246_v17 = vmul.f32 1.442695, %v1223_v14 }
 0x31b   :  { %v1193_v18 = vpop.xlane.xlu0 %1192  ;;  %v1257_v19 = vsel %vm254_vm2, %v10495_v15, 0.0 }
 0x31c   :  { %9924 = vpow2.f32 %v1236_v16  ;;  %v1217_v21 = vsub.f32 %v10430_v20, %v1193_v18  ;;  %1258 = vadd.xlane.f32.xlu0 %v1257_v19 }
 0x31d   :  { %9926 = vpow2.f32 %v1246_v17 }
 0x31e   :  { %v10500_v24 = vpop.eup %9922  ;;  %v1234_v25 = vmul.f32 1.442695, %v1217_v21 }
 0x31f   :  { %v1202_v22 = vpop.xlane.xlu1 %1201  ;;  %v1199_v26 = vpop.xlane.xlu0 %1198  ;;  %v1260_v23 = vsel %vm254_vm2, %v10500_v24, 0.0 }
 0x320   :  { %9928 = vpow2.f32 %v1234_v25  ;;  %v1220_v27 = vsub.f32 %v10444_v32, %v1202_v22  ;;  %v1219_v29 = vsub.f32 %v10440_v28, %v1199_v26  ;;  %1261 = vadd.xlane.f32.xlu1 %v1260_v23 }
 0x322   :  { %v1240_v31 = vmul.f32 1.442695, %v1220_v27  ;;  %v1238_v33 = vmul.f32 1.442695, %v1219_v29 }
 0x323   :  { %v1205_v35 = vpop.xlane.xlu0 %1204  ;;  %v10536_v60 = vpop.permute.xlu1 %1581 }
 0x324   :  { %9930 = vpow2.f32 %v1240_v31  ;;  %v1221_v20 = vsub.f32 %v10450_v40, %v1205_v35 }
 0x325   :  { %9932 = vpow2.f32 %v1238_v33 }
 0x326   :  { %v10507_v36 = vpop.eup %9924  ;;  %v1242_v41 = vmul.f32 1.442695, %v1221_v20 }
 0x327   :  { %v10509_v44 = vpop.eup %9926  ;;  %v1506_v48 = vpop.permute.xlu0 %1505  ;;  %v1266_v49 = vsel %vm254_vm2, %v10507_v36, 0.0 }
 0x328   :  { %9934 = vpow2.f32 %v1242_v41  ;;  %1267 = vadd.xlane.f32.xlu1 %v1266_v49  ;;  %v1281_v28 = vsel %vm254_vm2, %v10509_v44, 0.0  ;;  %9437 = vmatpush3.msra.mxu0 %v1506_v48  ;;  %v10540_v61 = vpop.permute.xlu1 %1657 }
 0x329   :  { %1282 = vadd.xlane.f32.xlu0 %v1281_v28  ;;  %9446 = vmatprep.subr.mxu0 %v10181_v30 }
 0x32a   :  { %v10516_v32 = vpop.eup %9928 }
 0x32b   :  { %v1263_v40 = vsel %vm254_vm2, %v10516_v32, 0.0 }
 0x32c   :  { %v10546_v62 = vpop.permute.xlu1 %1809 }
 0x32d   :  { %1264 = vadd.xlane.f32.xlu0 %v1263_v40 }
 0x32e   :  { %v10520_v52 = vpop.eup %9930 }
 0x32f   :  { %v10522_v53 = vpop.eup %9932  ;;  %v1272_v56 = vsel %vm254_vm2, %v10520_v52, 0.0 }
 0x330   :  { %1273 = vadd.xlane.f32.xlu1 %v1272_v56  ;;  %v1269_v57 = vsel %vm254_vm2, %v10522_v53, 0.0  ;;  %v10550_v63 = vpop.permute.xlu1 %1961 }
 0x331   :  { %1270 = vadd.xlane.f32.xlu0 %v1269_v57 }
 0x332   :  { %v10528_v58 = vpop.eup %9934 }
 0x333   :  { %v1275_v59 = vsel %vm254_vm2, %v10528_v58, 0.0 }
 0x334   :  { %v10556_v0 = vpop.permute.xlu1 %2113 }
 0x335   :  { %1276 = vadd.xlane.f32.xlu0 %v1275_v59 }
 0x341   :  { %2421 = vrot.lane.b32.xlu1 %v10303_v37, %s10185_s8 }
 0x345   :  { %2419 = vrot.lane.b32.xlu1 %v10303_v37, %s10186_s9 }
 0x34b   :  { %2343 = vrot.lane.b32.xlu0 %v10299_v34, %s10185_s8 }
 0x34f   :  { %2341 = vrot.lane.b32.xlu0 %v10299_v34, %s10186_s9 }
 0x353   :  { %2499 = vrot.lane.b32.xlu0 %v10305_v38, %s10185_s8 }
 0x357   :  { %2497 = vrot.lane.b32.xlu0 %v10305_v38, %s10186_s9 }
 0x35b   :  { %2655 = vrot.lane.b32.xlu0 %v10313_v42, %s10185_s8 }
 0x35f   :  { %2653 = vrot.lane.b32.xlu0 %v10313_v42, %s10186_s9 }
 0x363   :  { %2811 = vrot.lane.b32.xlu0 %v10321_v46, %s10185_s8 }
 0x364   :  { %v1208_v2 = vpop.xlane.xlu1 %1207 }
 0x365   :  { %v1222_v3 = vsub.f32 %v10454_v45, %v1208_v2  ;;  %v10587_v45 = vpop.permute.xlu0 %1733 }
 0x367   :  { %v1244_v4 = vmul.f32 1.442695, %v1222_v3  ;;  %2809 = vrot.lane.b32.xlu0 %v10321_v46, %s10186_s9 }
 0x368   :  { %v10601_v11 = vpop.permute.xlu1 %2265 }
 0x369   :  { %9936 = vpow2.f32 %v1244_v4  ;;  %v10593_v8 = vpop.permute.xlu0 %1885 }
 0x36b   :  { %2967 = vrot.lane.b32.xlu0 %v10329_v50, %s10185_s8 }
 0x36d   :  { %v10599_v10 = vpop.permute.xlu0 %2037 }
 0x36f   :  { %2965 = vrot.lane.b32.xlu0 %v10329_v50, %s10186_s9 }
 0x371   :  { %v10605_v12 = vpop.permute.xlu0 %2189 }
 0x373   :  { %v10567_v5 = vpop.eup %9936  ;;  %3123 = vrot.lane.b32.xlu0 %v10337_v54, %s10185_s8 }
 0x374   :  { %v1278_v7 = vsel %vm254_vm2, %v10567_v5, 0.0 }
 0x375   :  { %1279 = vadd.xlane.f32.xlu1 %v1278_v7 }
 0x377   :  { %3121 = vrot.lane.b32.xlu0 %v10337_v54, %s10186_s9 }
 0x37b   :  { %3606 = vrot.lane.b32.xlu0 %v10303_v37, %s10187_s10 }
 0x37f   :  { %3834 = vrot.lane.b32.xlu0 %v10313_v42, %s10187_s10 }
 0x383   :  { %3986 = vrot.lane.b32.xlu0 %v10321_v46, %s10187_s10 }
 0x386   :  { %2577 = vrot.lane.b32.xlu1 %v10307_v39, %s10185_s8 }
 0x387   :  { %4138 = vrot.lane.b32.xlu0 %v10329_v50, %s10187_s10 }
 0x38a   :  { %2575 = vrot.lane.b32.xlu1 %v10307_v39, %s10186_s9 }
 0x38b   :  { %4290 = vrot.lane.b32.xlu0 %v10337_v54, %s10187_s10 }
 0x38e   :  { %2733 = vrot.lane.b32.xlu1 %v10317_v43, %s10185_s8 }
 0x392   :  { %2731 = vrot.lane.b32.xlu1 %v10317_v43, %s10186_s9 }
 0x396   :  { %2889 = vrot.lane.b32.xlu1 %v10325_v47, %s10185_s8 }
 0x39a   :  { %2887 = vrot.lane.b32.xlu1 %v10325_v47, %s10186_s9 }
 0x39d   :  { %v1250_v13 = vpop.xlane.xlu1 %1249 }
 0x39e   :  { %9938 = vrcp.f32 %v1250_v13  ;;  %3045 = vrot.lane.b32.xlu1 %v10333_v51, %s10185_s8 }
 0x3a1   :  { %v1253_v14 = vpop.xlane.xlu0 %1252 }
 0x3a2   :  { %9940 = vrcp.f32 %v1253_v14  ;;  %3043 = vrot.lane.b32.xlu1 %v10333_v51, %s10186_s9 }
 0x3a5   :  { %v1256_v16 = vpop.xlane.xlu1 %1255 }
 0x3a6   :  { %9942 = vrcp.f32 %v1256_v16  ;;  %3201 = vrot.lane.b32.xlu1 %v10341_v55, %s10185_s8  ;;  %s10188_s8 = smov 80  }
 0x3a8   :  { %v9939_v17 = vpop.eup %9938 }
 0x3a9   :  { %v1308_v18 = vmul.f32 %v9939_v17, %v10480_v1  ;;  %v1259_v19 = vpop.xlane.xlu0 %1258 }
 0x3aa   :  { %9944 = vrcp.f32 %v1259_v19  ;;  %3199 = vrot.lane.b32.xlu1 %v10341_v55, %s10186_s9  ;;  %s10189_s9 = smov 112  }
 0x3ab   :  { %1320 = vst.msk [vmem:[%s11898_s5] sm:$0xff] %vm254_vm2, %v1308_v18  ;;  %v1332_v21 = vsel %vm254_vm2, %v1308_v18, 0.0 }
 0x3ac   :  { %v9941_v25 = vpop.eup %9940  ;;  %v1333_v22 = vrot.slane %v1332_v21, 4 }
 0x3ad   :  { %v1309_v26 = vmul.f32 %v9941_v25, %v10485_v6  ;;  %v1262_v23 = vpop.xlane.xlu1 %1261 }
 0x3ae   :  { %v1334_v27 = vadd.f32 %v1333_v22, %v1332_v21  ;;  %9946 = vrcp.f32 %v1262_v23  ;;  %3530 = vrot.lane.b32.xlu1 %v10299_v34, %s10187_s10 }
 0x3af   :  { %1321 = vst.msk [vmem:[%s11898_s5 + $0x20] sm:$0xff] %vm254_vm2, %v1309_v26  ;;  %v1339_v1 = vsel %vm254_vm2, %v1309_v26, 0.0 }
 0x3b0   :  { %v9943_v29 = vpop.eup %9942  ;;  %v1340_v31 = vrot.slane %v1339_v1, 4  ;;  %v1335_v33 = vrot.slane %v1334_v27, 2 }
 0x3b1   :  { %v1310_v35 = vmul.f32 %v9943_v29, %v10489_v9 }
 0x3b2   :  { %v1341_v20 = vadd.f32 %v1340_v31, %v1339_v1  ;;  %3682 = vrot.lane.b32.xlu1 %v10305_v38, %s10187_s10  ;;  %v1336_v6 = vadd.f32 %v1335_v33, %v1334_v27 }
 0x3b3   :  { %1322 = vst.msk [vmem:[%s11898_s5 + $0x40] sm:$0xff] %vm254_vm2, %v1310_v35  ;;  %v1346_v41 = vsel %vm254_vm2, %v1310_v35, 0.0 }
 0x3b4   :  { %v9945_v48 = vpop.eup %9944  ;;  %v1347_v49 = vrot.slane %v1346_v41, 4  ;;  %v1337_v28 = vrot.slane %v1336_v6, 1  ;;  %v1342_v40 = vrot.slane %v1341_v20, 2 }
 0x3b5   :  { %v1311_v56 = vmul.f32 %v9945_v48, %v10495_v15  ;;  %v1268_v57 = vpop.xlane.xlu1 %1267 }
 0x3b6   :  { %v1348_v9 = vadd.f32 %v1347_v49, %v1346_v41  ;;  %9948 = vrcp.f32 %v1268_v57  ;;  %v1283_v59 = vpop.xlane.xlu0 %1282  ;;  %3758 = vrot.lane.b32.xlu1 %v10307_v39, %s10187_s10  ;;  %v1338_v2 = vadd.f32 %v1337_v28, %v1336_v6  ;;  %v1343_v3 = vadd.f32 %v1342_v40, %v1341_v20 }
 0x3b7   :  { %1323 = vst.msk [vmem:[%s11898_s5 + $0x60] sm:$0xff] %vm254_vm2, %v1311_v56  ;;  %v1353_v4 = vsel %vm254_vm2, %v1311_v56, 0.0  ;;  %9950 = vrcp.f32 %v1283_v59 }
 0x3b8   :  { %v9947_v7 = vpop.eup %9946  ;;  %v1354_v13 = vrot.slane %v1353_v4, 4  ;;  %v1417_v15 = vmul.f32 0.125, %v1338_v2  ;;  %v1344_v14 = vrot.slane %v1343_v3, 1  ;;  %v1349_v16 = vrot.slane %v1348_v9, 2 }
 0x3b9   :  { %v1312_v17 = vmul.f32 %v9947_v7, %v10500_v24 }
 0x3ba   :  { %v1355_v18 = vadd.f32 %v1354_v13, %v1353_v4  ;;  %v1265_v19 = vpop.xlane.xlu0 %1264  ;;  %9434 = vmatmul.mubr.msk.f32.vlgmr.msra.gmra.mrb[22].mxu1 %vm254_vm2, %v1417_v15  ;;  %3910 = vrot.lane.b32.xlu1 %v10317_v43, %s10187_s10  ;;  %v1345_v21 = vadd.f32 %v1344_v14, %v1343_v3  ;;  %v1350_v25 = vadd.f32 %v1349_v16, %v1348_v9 }
 0x3bb   :  { %1324 = vst.msk [vmem:[%s11898_s5 + $0x80] sm:$0xff] %vm254_vm2, %v1312_v17  ;;  %v1360_v22 = vsel %vm254_vm2, %v1312_v17, 0.0  ;;  %9952 = vrcp.f32 %v1265_v19  ;;  %9442 = vmatpush3.msra.mxu1 %v10536_v60  ;;  %9443 = vmatprep.mubr.msk.f32.mxu1 %vm10182_vm1, %v10181_v30 }
 0x3bc   :  { %v1361_v24 = vrot.slane %v1360_v22, 4  ;;  %v1418_v26 = vmul.f32 0.125, %v1345_v21  ;;  %9451 = vmatprep.subr.mxu1 %v10181_v30  ;;  %v1351_v23 = vrot.slane %v1350_v25, 1  ;;  %v1356_v27 = vrot.slane %v1355_v18, 2 }
 0x3bd   :  { %v1274_v1 = vpop.xlane.xlu1 %1273 }
 0x3be   :  { %v1362_v29 = vadd.f32 %v1361_v24, %v1360_v22  ;;  %9954 = vrcp.f32 %v1274_v1  ;;  %v1271_v31 = vpop.xlane.xlu0 %1270  ;;  %4062 = vrot.lane.b32.xlu1 %v10325_v47, %s10187_s10  ;;  %9439 = vmatmul.mubr.msk.f32.vlgmr.msra.gmra.mrb[14].mxu0 %vm254_vm2, %v1418_v26  ;;  %v1352_v33 = vadd.f32 %v1351_v23, %v1350_v25  ;;  %v1357_v60 = vadd.f32 %v1356_v27, %v1355_v18 }
 0x3bf   :  { %9956 = vrcp.f32 %v1271_v31  ;;  %9447 = vmatpush3.msra.mxu0 %v10540_v61  ;;  %9448 = vmatprep.mubr.msk.f32.mxu0 %vm10182_vm1, %v10181_v30 }
 0x3c0   :  { %v9949_v35 = vpop.eup %9948  ;;  %v1419_v20 = vmul.f32 0.125, %v1352_v33  ;;  %9456 = vmatprep.subr.mxu0 %v10181_v30  ;;  %v1358_v6 = vrot.slane %v1357_v60, 1  ;;  %v1363_v41 = vrot.slane %v1362_v29, 2 }
 0x3c1   :  { %v9951_v48 = vpop.eup %9950  ;;  %v1314_v49 = vmul.f32 %v9949_v35, %v10507_v36 }
 0x3c2   :  { %v1319_v28 = vmul.f32 %v9951_v48, %v10509_v44  ;;  %v1277_v40 = vpop.xlane.xlu0 %1276  ;;  %4214 = vrot.lane.b32.xlu1 %v10333_v51, %s10187_s10  ;;  %9444 = vmatmul.mubr.msk.f32.vlgmr.msra.gmra.mrb[24].mxu1 %vm254_vm2, %v1419_v20  ;;  %v1359_v61 = vadd.f32 %v1358_v6, %v1357_v60  ;;  %v1364_v56 = vadd.f32 %v1363_v41, %v1362_v29 }
 0x3c3   :  { %1326 = vst.msk [vmem:[%s11898_s5 + $0xc0] sm:$0xff] %vm254_vm2, %v1314_v49  ;;  %v1374_v57 = vsel %vm254_vm2, %v1314_v49, 0.0  ;;  %9958 = vrcp.f32 %v1277_v40  ;;  %9452 = vmatpush3.msra.mxu1 %v10587_v45  ;;  %9453 = vmatprep.mubr.msk.f32.mxu1 %vm10182_vm1, %v10181_v30 }
 0x3c4   :  { %v1375_v36 = vrot.slane %v1374_v57, 4  ;;  %1331 = vst.msk [vmem:[%s11898_s5 + $0x160] sm:$0xff] %vm254_vm2, %v1319_v28  ;;  %v1420_v44 = vmul.f32 0.125, %v1359_v61  ;;  %9461 = vmatprep.subr.mxu1 %v10181_v30  ;;  %v1365_v9 = vrot.slane %v1364_v56, 1  ;;  %v1409_v3 = vsel %vm254_vm2, %v1319_v28, 0.0 }
 0x3c5   :  { %v9953_v59 = vpop.eup %9952  ;;  %v1410_v16 = vrot.slane %v1409_v3, 4 }
 0x3c6   :  { %v1376_v2 = vadd.f32 %v1375_v36, %v1374_v57  ;;  %v1313_v4 = vmul.f32 %v9953_v59, %v10516_v32  ;;  %4366 = vrot.lane.b32.xlu1 %v10341_v55, %s10187_s10  ;;  %9449 = vmatmul.mubr.msk.f32.vlgmr.msra.gmra.mrb[16].mxu0 %vm254_vm2, %v1420_v44  ;;  %v1366_v45 = vadd.f32 %v1365_v9, %v1364_v56 }
 0x3c7   :  { %9457 = vmatpush3.msra.mxu0 %v10546_v62  ;;  %9458 = vmatprep.mubr.msk.f32.mxu0 %vm10182_vm1, %v10181_v30  ;;  %v1411_v26 = vadd.f32 %v1410_v16, %v1409_v3 }
 0x3c8   :  { %v9955_v7 = vpop.eup %9954  ;;  %1325 = vst.msk [vmem:[%s11898_s5 + $0xa0] sm:$0xff] %vm254_vm2, %v1313_v4  ;;  %v1367_v13 = vsel %vm254_vm2, %v1313_v4, 0.0  ;;  %v1421_v32 = vmul.f32 0.125, %v1366_v45  ;;  %v1377_v15 = vrot.slane %v1376_v2, 2  ;;  %9466 = vmatprep.subr.mxu0 %v10181_v30 }
 0x3c9   :  { %v9957_v14 = vpop.eup %9956  ;;  %v1368_v17 = vrot.slane %v1367_v13, 4  ;;  %v1316_v62 = vmul.f32 %v9955_v7, %v10520_v52  ;;  %v1412_v49 = vrot.slane %v1411_v26, 2 }
 0x3ca   :  { %v1315_v18 = vmul.f32 %v9957_v14, %v10522_v53  ;;  %9454 = vmatmul.mubr.msk.f32.vlgmr.msra.gmra.mrb[26].mxu1 %vm254_vm2, %v1421_v32  ;;  %v1378_v19 = vadd.f32 %v1377_v15, %v1376_v2  ;;  %v2344_v15 = vpop.permute.xlu0 %2343 }
 0x3cb   :  { %v1369_v21 = vadd.f32 %v1368_v17, %v1367_v13  ;;  %1328 = vst.msk [vmem:[%s11898_s5 + $0x100] sm:$0xff] %vm254_vm2, %v1316_v62  ;;  %v1388_v25 = vsel %vm254_vm2, %v1316_v62, 0.0  ;;  %9462 = vmatpush3.msra.mxu1 %v10593_v8  ;;  %9463 = vmatprep.mubr.msk.f32.mxu1 %vm10182_vm1, %v10181_v30  ;;  %v1413_v9 = vadd.f32 %v1412_v49, %v1411_v26 }
 0x3cc   :  { %v1389_v22 = vrot.slane %v1388_v25, 4  ;;  %1327 = vst.msk [vmem:[%s11898_s5 + $0xe0] sm:$0xff] %vm254_vm2, %v1315_v18  ;;  %v1381_v52 = vsel %vm254_vm2, %v1315_v18, 0.0  ;;  %9471 = vmatprep.subr.mxu1 %v10181_v30  ;;  %v1379_v53 = vrot.slane %v1378_v19, 1 }
 0x3cd   :  { %v9959_v24 = vpop.eup %9958  ;;  %v1382_v23 = vrot.slane %v1381_v52, 4  ;;  %v1370_v27 = vrot.slane %v1369_v21, 2  ;;  %v1414_v7 = vrot.slane %v1413_v9, 1 }
 0x3ce   :  { %v1390_v1 = vadd.f32 %v1389_v22, %v1388_v25  ;;  %v1317_v8 = vmul.f32 %v9959_v24, %v10528_v58  ;;  %v1380_v29 = vadd.f32 %v1379_v53, %v1378_v19  ;;  %v2342_v16 = vpop.permute.xlu0 %2341 }
 0x3cf   :  { %v1383_v31 = vadd.f32 %v1382_v23, %v1381_v52  ;;  %v1371_v33 = vadd.f32 %v1370_v27, %v1369_v21  ;;  %v1415_v32 = vadd.f32 %v1414_v7, %v1413_v9 }
 0x3d0   :  { %1329 = vst.msk [vmem:[%s11898_s5 + $0x120] sm:$0xff] %vm254_vm2, %v1317_v8  ;;  %v1395_v60 = vsel %vm254_vm2, %v1317_v8, 0.0  ;;  %v1423_v35 = vmul.f32 0.125, %v1380_v29  ;;  %v1391_v20 = vrot.slane %v1390_v1, 2 }
 0x3d1   :  { %v1396_v6 = vrot.slane %v1395_v60, 4  ;;  %v1372_v41 = vrot.slane %v1371_v33, 1  ;;  %v1384_v48 = vrot.slane %v1383_v31, 2 }
 0x3d2   :  { %9464 = vmatmul.mubr.msk.f32.vlgmr.msra.gmra.mrb[28].mxu1 %vm254_vm2, %v1423_v35  ;;  %v1392_v28 = vadd.f32 %v1391_v20, %v1390_v1 }
 0x3d3   :  { %v1397_v58 = vadd.f32 %v1396_v6, %v1395_v60  ;;  %9472 = vmatpush3.msra.mxu1 %v10599_v10  ;;  %v1373_v40 = vadd.f32 %v1372_v41, %v1371_v33  ;;  %9473 = vmatprep.mubr.msk.f32.mxu1 %vm10182_vm1, %v10181_v30  ;;  %v1385_v61 = vadd.f32 %v1384_v48, %v1383_v31 }
 0x3d4   :  { %9481 = vmatprep.subr.mxu1 %v10181_v30  ;;  %v1393_v56 = vrot.slane %v1392_v28, 1 }
 0x3d5   :  { %v1422_v57 = vmul.f32 0.125, %v1373_v40  ;;  %v1386_v36 = vrot.slane %v1385_v61, 1  ;;  %v1398_v44 = vrot.slane %v1397_v58, 2 }
 0x3d6   :  { %v1394_v59 = vadd.f32 %v1393_v56, %v1392_v28 }
 0x3d7   :  { %9459 = vmatmul.mubr.msk.f32.vlgmr.msra.gmra.mrb[18].mxu0 %vm254_vm2, %v1422_v57  ;;  %v1387_v2 = vadd.f32 %v1386_v36, %v1385_v61  ;;  %v1399_v3 = vadd.f32 %v1398_v44, %v1397_v58 }
 0x3d8   :  { %9467 = vmatpush3.msra.mxu0 %v10550_v63  ;;  %9468 = vmatprep.mubr.msk.f32.mxu0 %vm10182_vm1, %v10181_v30  ;;  %v1425_v10 = vmul.f32 0.125, %v1394_v59 }
 0x3d9   :  { %9476 = vmatprep.subr.mxu0 %v10181_v30  ;;  %v1424_v4 = vmul.f32 0.125, %v1387_v2  ;;  %v1400_v45 = vrot.slane %v1399_v3, 1 }
 0x3da   :  { %9474 = vmatmul.mubr.msk.f32.vlgmr.msra.gmra.mrb[30].mxu1 %vm254_vm2, %v1425_v10 }
 0x3db   :  { %9469 = vmatmul.mubr.msk.f32.vlgmr.msra.gmra.mrb[20].mxu0 %vm254_vm2, %v1424_v4  ;;  %9482 = vmatpush3.msra.mxu1 %v10605_v12  ;;  %v1401_v13 = vadd.f32 %v1400_v45, %v1399_v3  ;;  %v2422_v12 = vpop.permute.xlu1 %2421 }
 0x3dc   :  { %9477 = vmatpush3.msra.mxu0 %v10556_v0  ;;  %9478 = vmatprep.mubr.msk.f32.mxu0 %vm10182_vm1, %v10181_v30  ;;  %v1428_v0 = vmul.f32 0.125, %v1415_v32 }
 0x3dd   :  { %9486 = vmatprep.subr.mxu0 %v10181_v30  ;;  %v1426_v63 = vmul.f32 0.125, %v1401_v13  ;;  %9483 = vmatprep.mubr.msk.f32.mxu1 %vm10182_vm1, %v10181_v30 }
 0x3de   :  { %9491 = vmatprep.subr.mxu1 %v10181_v30 }
 0x3df   :  { %9479 = vmatmul.mubr.msk.f32.vlgmr.msra.gmra.mrb[22].mxu0 %vm254_vm2, %v1426_v63  ;;  %v2420_v14 = vpop.permute.xlu1 %2419 }
 0x3e0   :  { %9487 = vmatpush3.msra.mxu0 %v10601_v11  ;;  %9488 = vmatprep.mubr.msk.f32.mxu0 %vm10182_vm1, %v10181_v30  ;;  %v2500_v11 = vpop.permute.xlu0 %2499 }
 0x3e1   :  { %9496 = vmatprep.subr.mxu0 %v10181_v30 }
 0x3e3   :  { %9489 = vmatmul.mubr.msk.f32.vlgmr.msra.gmra.mrb[24].mxu0 %vm254_vm2, %v1428_v0 }
 0x3e4   :  { %9498 = vmatprep.mubr.msk.f32.mxu0 %vm10182_vm1, %v10181_v30  ;;  %v2498_v17 = vpop.permute.xlu0 %2497 }
 0x3e7   :  { %9497 = vmatpush3.xpose.msk.msra.mxu0 %vm254_vm2, %v2422_v12 }
 0x3e8   :  { %9506 = vmatprep.subr.mxu0 %v10181_v30  ;;  %v2656_v62 = vpop.permute.xlu0 %2655 }
 0x3ea   :  { %9499 = vmatmul.mubr.msk.f32.vlgmr.msra.gmra.mrb[26].mxu0 %vm254_vm2, %v2420_v14 }
 0x3eb   :  { %9508 = vmatprep.mubr.msk.f32.mxu0 %vm10182_vm1, %v10181_v30 }
 0x3ec   :  { %v2654_v18 = vpop.permute.xlu0 %2653 }
 0x3f0   :  { %v2812_v25 = vpop.permute.xlu0 %2811 }
 0x3f4   :  { %v2810_v53 = vpop.permute.xlu0 %2809 }
 0x3f8   :  { %v2968_v8 = vpop.permute.xlu0 %2967 }
 0x3fc   :  { %v2966_v60 = vpop.permute.xlu0 %2965 }
 0x400   :  { %v3124_v49 = vpop.permute.xlu0 %3123 }
 0x402   :  { %v1280_v19 = vpop.xlane.xlu1 %1279 }
 0x403   :  { %9960 = vrcp.f32 %v1280_v19 }
 0x404   :  { %v3122_v58 = vpop.permute.xlu0 %3121 }
 0x406   :  { %v2578_v21 = vpop.permute.xlu1 %2577 }
 0x407   :  { %9507 = vmatpush3.xpose.msk.msra.mxu0 %vm254_vm2, %v2578_v21 }
 0x408   :  { %9516 = vmatprep.subr.mxu0 %v10181_v30  ;;  %v3607_v56 = vpop.permute.xlu0 %3606 }
 0x40a   :  { %v2576_v22 = vpop.permute.xlu1 %2575 }
 0x40b   :  { %9509 = vmatmul.mubr.msk.f32.vlgmr.msra.gmra.mrb[28].mxu0 %vm254_vm2, %v2576_v22 }
 0x40c   :  { %9518 = vmatprep.mubr.msk.f32.mxu0 %vm10182_vm1, %v10181_v30 }
 0x40d   :  { %v9961_v52 = vpop.eup %9960 }
 0x40e   :  { %v1318_v24 = vmul.f32 %v9961_v52, %v10567_v5  ;;  %v2734_v26 = vpop.permute.xlu1 %2733 }
 0x40f   :  { %9517 = vmatpush3.xpose.msk.msra.mxu0 %vm254_vm2, %v2734_v26 }
 0x410   :  { %1330 = vst.msk [vmem:[%s11898_s5 + $0x140] sm:$0xff] %vm254_vm2, %v1318_v24  ;;  %v1402_v23 = vsel %vm254_vm2, %v1318_v24, 0.0  ;;  %9526 = vmatprep.subr.mxu0 %v10181_v30 }
 0x411   :  { %v1403_v27 = vrot.slane %v1402_v23, 4 }
 0x412   :  { %v2732_v1 = vpop.permute.xlu1 %2731 }
 0x413   :  { %v1404_v29 = vadd.f32 %v1403_v27, %v1402_v23  ;;  %9519 = vmatmul.mubr.msk.f32.vlgmr.msra.gmra.mrb[30].mxu0 %vm254_vm2, %v2732_v1 }
 0x414   :  { %9528 = vmatprep.mubr.msk.f32.mxu0 %vm10182_vm1, %v10181_v30 }
 0x415   :  { %v1405_v5 = vrot.slane %v1404_v29, 2 }
 0x416   :  { %v2890_v31 = vpop.permute.xlu1 %2889 }
 0x417   :  { %9527 = vmatpush3.xpose.msk.msra.mxu0 %vm254_vm2, %v2890_v31  ;;  %v1406_v33 = vadd.f32 %v1405_v5, %v1404_v29 }
 0x418   :  { %9536 = vmatprep.subr.mxu0 %v10181_v30 }
 0x419   :  { %v1407_v35 = vrot.slane %v1406_v33, 1 }
 0x41a   :  { %v2888_v20 = vpop.permute.xlu1 %2887 }
 0x41b   :  { %9529 = vmatmul.mubr.msk.f32.vlgmr.msra.gmra.mrb[32].mxu0 %vm254_vm2, %v2888_v20  ;;  %v1408_v6 = vadd.f32 %v1407_v35, %v1406_v33 }
 0x41c   :  { %9538 = vmatprep.mubr.msk.f32.mxu0 %vm10182_vm1, %v10181_v30 }
 0x41d   :  { %v1427_v41 = vmul.f32 0.125, %v1408_v6 }
 0x41e   :  { %v3046_v48 = vpop.permute.xlu1 %3045 }
 0x41f   :  { %9484 = vmatmul.mubr.msk.f32.vlgmr.msra.gmra.mrb[32].mxu1 %vm254_vm2, %v1427_v41  ;;  %9537 = vmatpush3.xpose.msk.msra.mxu0 %vm254_vm2, %v3046_v48 }
 0x420   :  { %9492 = vmatpush3.xpose.msk.msra.mxu1 %vm254_vm2, %v2344_v15  ;;  %9493 = vmatprep.mubr.msk.f32.mxu1 %vm10182_vm1, %v10181_v30 }
 0x421   :  { %9501 = vmatprep.subr.mxu1 %v10181_v30  ;;  %9546 = vmatprep.subr.mxu0 %v10181_v30 }
 0x422   :  { %v3044_v28 = vpop.permute.xlu1 %3043 }
 0x423   :  { %9494 = vmatmul.mubr.msk.f32.vlgmr.msra.gmra.mrb[34].mxu1 %vm254_vm2, %v2342_v16  ;;  %9539 = vmatmul.mubr.msk.f32.vlgmr.msra.gmra.mrb[34].mxu0 %vm254_vm2, %v3044_v28 }
 0x424   :  { %9502 = vmatpush3.xpose.msk.msra.mxu1 %vm254_vm2, %v2500_v11  ;;  %9503 = vmatprep.mubr.msk.f32.mxu1 %vm10182_vm1, %v10181_v30 }
 0x425   :  { %9511 = vmatprep.subr.mxu1 %v10181_v30  ;;  %9548 = vmatprep.mubr.msk.f32.mxu0 %vm10182_vm1, %v10181_v30 }
 0x426   :  { %v3202_v40 = vpop.permute.xlu1 %3201 }
 0x427   :  { %9504 = vmatmul.mubr.msk.f32.vlgmr.msra.gmra.mrb[36].mxu1 %vm254_vm2, %v2498_v17  ;;  %9547 = vmatpush3.xpose.msk.msra.mxu0 %vm254_vm2, %v3202_v40 }
 0x428   :  { %9512 = vmatpush3.xpose.msk.msra.mxu1 %vm254_vm2, %v2656_v62  ;;  %9513 = vmatprep.mubr.msk.f32.mxu1 %vm10182_vm1, %v10181_v30 }
 0x429   :  { %9521 = vmatprep.subr.mxu1 %v10181_v30  ;;  %9556 = vmatprep.subr.mxu0 %v10181_v30 }
 0x42a   :  { %v3200_v61 = vpop.permute.xlu1 %3199 }
 0x42b   :  { %9514 = vmatmul.mubr.msk.f32.vlgmr.msra.gmra.mrb[38].mxu1 %vm254_vm2, %v2654_v18  ;;  %9549 = vmatmul.mubr.msk.f32.vlgmr.msra.gmra.mrb[36].mxu0 %vm254_vm2, %v3200_v61 }
 0x42c   :  { %9522 = vmatpush3.xpose.msk.msra.mxu1 %vm254_vm2, %v2812_v25  ;;  %9557 = vmatpush3.msra.mxu0 %v3607_v56 }
 0x42d   :  { %9523 = vmatprep.mubr.msk.f32.mxu1 %vm10182_vm1, %v10181_v30  ;;  %9531 = vmatprep.subr.mxu1 %v10181_v30 }
 0x42e   :  { %9558 = vmatprep.mubr.msk.f32.mxu0 %vm10182_vm1, %v10181_v30  ;;  %9566 = vmatprep.subr.mxu0 %v10181_v30  ;;  %v3531_v57 = vpop.permute.xlu1 %3530 }
 0x42f   :  { %9524 = vmatmul.mubr.msk.f32.vlgmr.msra.gmra.mrb[40].mxu1 %vm254_vm2, %v2810_v53 }
 0x430   :  { %9532 = vmatpush3.xpose.msk.msra.mxu1 %vm254_vm2, %v2968_v8  ;;  %9533 = vmatprep.mubr.msk.f32.mxu1 %vm10182_vm1, %v10181_v30 }
 0x431   :  { %9541 = vmatprep.subr.mxu1 %v10181_v30 }
 0x433   :  { %9534 = vmatmul.mubr.msk.f32.vlgmr.msra.gmra.mrb[42].mxu1 %vm254_vm2, %v2966_v60 }
 0x434   :  { %9542 = vmatpush3.xpose.msk.msra.mxu1 %vm254_vm2, %v3124_v49  ;;  %9543 = vmatprep.mubr.msk.f32.mxu1 %vm10182_vm1, %v10181_v30 }
 0x435   :  { %9551 = vmatprep.subr.mxu1 %v10181_v30 }
 0x437   :  { %9544 = vmatmul.mubr.msk.f32.vlgmr.msra.gmra.mrb[44].mxu1 %vm254_vm2, %v3122_v58 }
 0x438   :  { %9552 = vmatpush3.msra.mxu1 %v3531_v57  ;;  %9553 = vmatprep.mubr.msk.f32.mxu1 %vm10182_vm1, %v10181_v30 }
 0x439   :  { %9561 = vmatprep.subr.mxu1 %v10181_v30 }
 0x48d   :  { %v1501_v36 = vpop.f32.mrb[22].mxu1 }
 0x48e   :  { %v9435_v44 = vpop.f32.mrb[23].mxu1 }
 0x491   :  { %v1577_v9 = vpop.f32.mrb[14].mxu0 }
 0x492   :  { %v8656_v59 = vrot.slane %v1577_v9, 7  ;;  %v9440_v2 = vpop.f32.mrb[15].mxu0 }
 0x494   :  { %v8658_v3 = vsel %vm8657_vm3, %v8656_v59, %v1501_v36 }
 0x495   :  { %v1653_v10 = vpop.f32.mrb[24].mxu1 }
 0x496   :  { %v8659_v4 = vrot.slane %v1653_v10, 6  ;;  %v9445_v45 = vpop.f32.mrb[25].mxu1 }
 0x498   :  { %v8661_v7 = vsel %vm8660_vm4, %v8659_v4, %v8658_v3 }
 0x499   :  { %v1729_v13 = vpop.f32.mrb[16].mxu0 }
 0x49a   :  { %v8662_v63 = vrot.slane %v1729_v13, 5  ;;  %v9450_v32 = vpop.f32.mrb[17].mxu0 }
 0x49c   :  { %v8664_v0 = vsel %vm8663_vm5, %v8662_v63, %v8661_v7 }
 0x49d   :  { %v1805_v12 = vpop.f32.mrb[26].mxu1 }
 0x49e   :  { %v8665_v15 = vrot.slane %v1805_v12, 4  ;;  %v9455_v14 = vpop.f32.mrb[27].mxu1 }
 0x4a0   :  { %v8667_v16 = vsel %vm8666_vm6, %v8665_v15, %v8664_v0 }
 0x4a5   :  { %v1957_v11 = vpop.f32.mrb[28].mxu1 }
 0x4a6   :  { %v9465_v17 = vpop.f32.mrb[29].mxu1  ;;  %v8671_v21 = vrot.slane %v1957_v11, 2 }
 0x4aa   :  { %v1881_v62 = vpop.f32.mrb[18].mxu0 }
 0x4ab   :  { %v8668_v18 = vrot.slane %v1881_v62, 3  ;;  %v9460_v19 = vpop.f32.mrb[19].mxu0 }
 0x4ad   :  { %v8670_v25 = vsel %vm8669_vm7, %v8668_v18, %v8667_v16  ;;  %v2109_v22 = vpop.f32.mrb[30].mxu1 }
 0x4ae   :  { %v2033_v52 = vpop.f32.mrb[20].mxu0  ;;  %v9475_v53 = vpop.f32.mrb[31].mxu1  ;;  %v8673_v24 = vsel %vm8672_vm8, %v8671_v21, %v8670_v25 }
 0x4af   :  { %v8674_v26 = vrot.slane %v2033_v52, 1  ;;  %v9470_v23 = vpop.f32.mrb[21].mxu0 }
 0x4b1   :  { %v10826_v27 = vsel %vm8675_vm9, %v8674_v26, %v8673_v24  ;;  %v10873_v26 = vpop.permute.xlu1 %3682 }
 0x4b2   :  { %v2185_v1 = vpop.f32.mrb[22].mxu0 }
 0x4b3   :  { %v8677_v8 = vrot.slane %v2185_v1, 7  ;;  %v9480_v29 = vpop.f32.mrb[23].mxu0 }
 0x4b5   :  { %v8678_v5 = vsel %vm8657_vm3, %v8677_v8, %v2109_v22  ;;  %v10875_v23 = vpop.permute.xlu1 %3758 }
 0x4b6   :  { %v2337_v31 = vpop.f32.mrb[24].mxu0 }
 0x4b7   :  { %v9490_v33 = vpop.f32.mrb[25].mxu0  ;;  %v8681_v57 = vrot.slane %v2337_v31, 5 }
 0x4b9   :  { %v10877_v1 = vpop.permute.xlu1 %3910 }
 0x4bd   :  { %v10829_v60 = vpop.f32.mrb[26].mxu0  ;;  %v10879_v8 = vpop.permute.xlu1 %4062 }
 0x4be   :  { %v9500_v35 = vpop.f32.mrb[27].mxu0  ;;  %v3280_v20 = vsel %vm254_vm2, %v10829_v60, -inf }
 0x4bf   :  { %3281 = vmax.xlane.f32.xlu1 %v3280_v20 }
 0x4c1   :  { %v10881_v29 = vpop.permute.xlu1 %4214 }
 0x4de   :  { %v10833_v6 = vpop.f32.mrb[28].mxu0 }
 0x4df   :  { %v9510_v41 = vpop.f32.mrb[29].mxu0  ;;  %v3286_v12 = vsel %vm254_vm2, %v10833_v6, -inf }
 0x4e6   :  { %v10835_v48 = vpop.f32.mrb[30].mxu0 }
 0x4e7   :  { %v9520_v49 = vpop.f32.mrb[31].mxu0  ;;  %v3292_v11 = vsel %vm254_vm2, %v10835_v48, -inf }
 0x4e8   :  { %v10890_v49 = vpop.permute.xlu0 %3834 }
 0x4ee   :  { %v10837_v28 = vpop.f32.mrb[32].mxu0 }
 0x4ef   :  { %v9530_v58 = vpop.f32.mrb[33].mxu0  ;;  %v3298_v19 = vsel %vm254_vm2, %v10837_v28, -inf }
 0x4f0   :  { %v10892_v58 = vpop.permute.xlu0 %3986 }
 0x4f2   :  { %v2261_v40 = vpop.f32.mrb[32].mxu1 }
 0x4f3   :  { %v8679_v61 = vrot.slane %v2261_v40, 6  ;;  %v9485_v56 = vpop.f32.mrb[33].mxu1 }
 0x4f4   :  { %v10894_v40 = vpop.permute.xlu0 %4138 }
 0x4f5   :  { %v8680_v36 = vsel %vm8660_vm4, %v8679_v61, %v8678_v5  ;;  %v10883_v5 = vpop.permute.xlu1 %4366 }
 0x4f6   :  { %v2415_v44 = vpop.f32.mrb[34].mxu1  ;;  %v10840_v9 = vpop.f32.mrb[34].mxu0  ;;  %v10843_v59 = vsel %vm8663_vm5, %v8681_v57, %v8680_v36 }
 0x4f7   :  { %v9495_v2 = vpop.f32.mrb[35].mxu1  ;;  %v9540_v3 = vpop.f32.mrb[35].mxu0  ;;  %v3277_v10 = vsel %vm254_vm2, %v2415_v44, -inf  ;;  %v3304_v52 = vsel %vm254_vm2, %v10840_v9, -inf }
 0x4f8   :  { %3278 = vmax.xlane.f32.xlu0 %v3277_v10  ;;  %v10896_v61 = vpop.permute.xlu0 %4290 }
 0x4fa   :  { %v2571_v4 = vpop.f32.mrb[36].mxu1 }
 0x4fb   :  { %v9505_v45 = vpop.f32.mrb[37].mxu1  ;;  %v3283_v7 = vsel %vm254_vm2, %v2571_v4, -inf }
 0x4fc   :  { %3284 = vmax.xlane.f32.xlu0 %v3283_v7 }
 0x4fe   :  { %v2727_v13 = vpop.f32.mrb[38].mxu1  ;;  %v10847_v63 = vpop.f32.mrb[36].mxu0 }
 0x4ff   :  { %v9515_v32 = vpop.f32.mrb[39].mxu1  ;;  %v9550_v0 = vpop.f32.mrb[37].mxu0  ;;  %v3289_v15 = vsel %vm254_vm2, %v2727_v13, -inf  ;;  %v3310_v24 = vsel %vm254_vm2, %v10847_v63, -inf }
 0x500   :  { %3287 = vmax.xlane.f32.xlu0 %v3286_v12  ;;  %3290 = vmax.xlane.f32.xlu1 %v3289_v15 }
 0x502   :  { %v2883_v14 = vpop.f32.mrb[40].mxu1 }
 0x503   :  { %v9525_v16 = vpop.f32.mrb[41].mxu1  ;;  %v3295_v17 = vsel %vm254_vm2, %v2883_v14, -inf }
 0x504   :  { %3293 = vmax.xlane.f32.xlu0 %v3292_v11  ;;  %3296 = vmax.xlane.f32.xlu1 %v3295_v17 }
 0x506   :  { %v10855_v62 = vpop.f32.mrb[42].mxu1 }
 0x507   :  { %v9535_v18 = vpop.f32.mrb[43].mxu1  ;;  %v3301_v21 = vsel %vm254_vm2, %v10855_v62, -inf }
 0x508   :  { %3299 = vmax.xlane.f32.xlu0 %v3298_v19  ;;  %3302 = vmax.xlane.f32.xlu1 %v3301_v21 }
 0x50a   :  { %v10861_v25 = vpop.f32.mrb[44].mxu1 }
 0x50b   :  { %v9545_v22 = vpop.f32.mrb[45].mxu1  ;;  %v3307_v53 = vsel %vm254_vm2, %v10861_v25, -inf }
 0x50c   :  { %3305 = vmax.xlane.f32.xlu0 %v3304_v52  ;;  %3308 = vmax.xlane.f32.xlu1 %v3307_v53 }
 0x510   :  { %3311 = vmax.xlane.f32.xlu0 %v3310_v24 }
 0x51d   :  { %4522 = vrot.lane.b32.xlu1 %v10303_v37, %s10188_s8 }
 0x526   :  { %4444 = vrot.lane.b32.xlu0 %v10299_v34, %s10188_s8 }
 0x54c   :  { %v3282_v31 = vpop.xlane.xlu1 %3281 }
 0x54d   :  { %v3314_v33 = vsub.f32 %v10829_v60, %v3282_v31 }
 0x54f   :  { %v3327_v35 = vmul.f32 1.442695, %v3314_v33 }
 0x551   :  { %9962 = vpow2.f32 %v3327_v35 }
 0x55b   :  { %v10886_v20 = vpop.eup %9962 }
 0x55c   :  { %v3352_v41 = vsel %vm254_vm2, %v10886_v20, 0.0 }
 0x55d   :  { %3353 = vadd.xlane.f32.xlu0 %v3352_v41 }
 0x585   :  { %v3279_v56 = vpop.xlane.xlu0 %3278 }
 0x586   :  { %v3313_v57 = vsub.f32 %v2415_v44, %v3279_v56 }
 0x588   :  { %v3325_v36 = vmul.f32 1.442695, %v3313_v57 }
 0x589   :  { %v3285_v60 = vpop.xlane.xlu0 %3284 }
 0x58a   :  { %9964 = vpow2.f32 %v3325_v36  ;;  %v3315_v2 = vsub.f32 %v2571_v4, %v3285_v60 }
 0x58c   :  { %v3329_v3 = vmul.f32 1.442695, %v3315_v2 }
 0x58d   :  { %v3291_v10 = vpop.xlane.xlu1 %3290  ;;  %v3288_v45 = vpop.xlane.xlu0 %3287 }
 0x58e   :  { %9966 = vpow2.f32 %v3329_v3  ;;  %v3317_v7 = vsub.f32 %v2727_v13, %v3291_v10  ;;  %v3316_v32 = vsub.f32 %v10833_v6, %v3288_v45 }
 0x590   :  { %v3333_v0 = vmul.f32 1.442695, %v3317_v7  ;;  %v3331_v12 = vmul.f32 1.442695, %v3316_v32 }
 0x591   :  { %v3297_v15 = vpop.xlane.xlu1 %3296  ;;  %v3294_v16 = vpop.xlane.xlu0 %3293 }
 0x592   :  { %9968 = vpow2.f32 %v3333_v0  ;;  %v3319_v11 = vsub.f32 %v2883_v14, %v3297_v15  ;;  %v3318_v17 = vsub.f32 %v10835_v48, %v3294_v16 }
 0x593   :  { %9970 = vpow2.f32 %v3331_v12 }
 0x594   :  { %v10900_v44 = vpop.eup %9964  ;;  %v3337_v18 = vmul.f32 1.442695, %v3319_v11  ;;  %v3335_v4 = vmul.f32 1.442695, %v3318_v17 }
 0x595   :  { %v3303_v19 = vpop.xlane.xlu1 %3302  ;;  %v3300_v21 = vpop.xlane.xlu0 %3299  ;;  %v3349_v13 = vsel %vm254_vm2, %v10900_v44, 0.0 }
 0x596   :  { %9972 = vpow2.f32 %v3337_v18  ;;  %v3321_v6 = vsub.f32 %v10855_v62, %v3303_v19  ;;  %v3320_v22 = vsub.f32 %v10837_v28, %v3300_v21  ;;  %3350 = vadd.xlane.f32.xlu1 %v3349_v13 }
 0x597   :  { %9974 = vpow2.f32 %v3335_v4 }
 0x598   :  { %v10906_v14 = vpop.eup %9966  ;;  %v3341_v48 = vmul.f32 1.442695, %v3321_v6  ;;  %v3339_v52 = vmul.f32 1.442695, %v3320_v22 }
 0x599   :  { %v3306_v53 = vpop.xlane.xlu0 %3305  ;;  %v3355_v24 = vsel %vm254_vm2, %v10906_v14, 0.0  ;;  %v3309_v32 = vpop.xlane.xlu1 %3308 }
 0x59a   :  { %9976 = vpow2.f32 %v3341_v48  ;;  %v3322_v31 = vsub.f32 %v10840_v9, %v3306_v53  ;;  %3356 = vadd.xlane.f32.xlu1 %v3355_v24  ;;  %v3323_v0 = vsub.f32 %v10861_v25, %v3309_v32 }
 0x59b   :  { %9978 = vpow2.f32 %v3339_v52 }
 0x59c   :  { %v10911_v33 = vpop.eup %9968  ;;  %v3343_v62 = vmul.f32 1.442695, %v3322_v31  ;;  %v3345_v15 = vmul.f32 1.442695, %v3323_v0 }
 0x59d   :  { %v10913_v35 = vpop.eup %9970  ;;  %v3361_v28 = vsel %vm254_vm2, %v10911_v33, 0.0  ;;  %v3312_v12 = vpop.xlane.xlu0 %3311 }
 0x59e   :  { %3362 = vadd.xlane.f32.xlu1 %v3361_v28  ;;  %v3358_v41 = vsel %vm254_vm2, %v10913_v35, 0.0  ;;  %9980 = vpow2.f32 %v3343_v62  ;;  %v3324_v16 = vsub.f32 %v10847_v63, %v3312_v12 }
 0x59f   :  { %3359 = vadd.xlane.f32.xlu0 %v3358_v41  ;;  %9982 = vpow2.f32 %v3345_v15 }
 0x5a0   :  { %v10919_v56 = vpop.eup %9972  ;;  %v3347_v11 = vmul.f32 1.442695, %v3324_v16 }
 0x5a1   :  { %v10921_v57 = vpop.eup %9974  ;;  %v3367_v9 = vsel %vm254_vm2, %v10919_v56, 0.0  ;;  %v10953_v25 = vpop.permute.xlu0 %4444 }
 0x5a2   :  { %3368 = vadd.xlane.f32.xlu1 %v3367_v9  ;;  %v3364_v36 = vsel %vm254_vm2, %v10921_v57, 0.0  ;;  %9984 = vpow2.f32 %v3347_v11 }
 0x5a3   :  { %3365 = vadd.xlane.f32.xlu0 %v3364_v36 }
 0x5a4   :  { %v10927_v60 = vpop.eup %9976 }
 0x5a5   :  { %v10929_v2 = vpop.eup %9978  ;;  %v3373_v3 = vsel %vm254_vm2, %v10927_v60, 0.0 }
 0x5a6   :  { %3374 = vadd.xlane.f32.xlu1 %v3373_v3  ;;  %v3370_v10 = vsel %vm254_vm2, %v10929_v2, 0.0 }
 0x5a7   :  { %3371 = vadd.xlane.f32.xlu0 %v3370_v10 }
 0x5a8   :  { %v10935_v45 = vpop.eup %9980 }
 0x5a9   :  { %v3376_v7 = vsel %vm254_vm2, %v10935_v45, 0.0  ;;  %v10945_v17 = vpop.eup %9982 }
 0x5aa   :  { %v3379_v18 = vsel %vm254_vm2, %v10945_v17, 0.0 }
 0x5ab   :  { %3377 = vadd.xlane.f32.xlu0 %v3376_v7 }
 0x5ac   :  { %v10949_v4 = vpop.eup %9984 }
 0x5ad   :  { %v3382_v19 = vsel %vm254_vm2, %v10949_v4, 0.0 }
 0x5b7   :  { %4520 = vrot.lane.b32.xlu1 %v10303_v37, %s10189_s9 }
 0x5c1   :  { %4442 = vrot.lane.b32.xlu0 %v10299_v34, %s10189_s9 }
 0x5db   :  { %3380 = vadd.xlane.f32.xlu1 %v3379_v18 }
 0x5e0   :  { %3383 = vadd.xlane.f32.xlu0 %v3382_v19 }
 0x5ea   :  { %v3354_v21 = vpop.xlane.xlu0 %3353 }
 0x5eb   :  { %9986 = vrcp.f32 %v3354_v21 }
 0x5ec   :  { %4678 = vrot.lane.b32.xlu1 %v10307_v39, %s10188_s8 }
 0x5f0   :  { %4676 = vrot.lane.b32.xlu1 %v10307_v39, %s10189_s9 }
 0x5f4   :  { %4834 = vrot.lane.b32.xlu1 %v10317_v43, %s10188_s8 }
 0x5f5   :  { %v9987_v63 = vpop.eup %9986 }
 0x5f6   :  { %v3410_v13 = vmul.f32 %v9987_v63, %v10886_v20  ;;  %4600 = vrot.lane.b32.xlu0 %v10305_v38, %s10188_s8 }
 0x5f8   :  { %8985 = vst.msk [vmem:[%s11898_s5 + $0x28] sm:$0xff] %vm254_vm2, %v3410_v13  ;;  %v3441_v6 = vsel %vm254_vm2, %v3410_v13, 0.0  ;;  %4832 = vrot.lane.b32.xlu1 %v10317_v43, %s10189_s9 }
 0x5f9   :  { %v3442_v22 = vrot.slane %v3441_v6, 4 }
 0x5fa   :  { %4598 = vrot.lane.b32.xlu0 %v10305_v38, %s10189_s9 }
 0x5fb   :  { %v3443_v48 = vadd.f32 %v3442_v22, %v3441_v6 }
 0x5fc   :  { %4990 = vrot.lane.b32.xlu1 %v10325_v47, %s10188_s8 }
 0x5fd   :  { %v3444_v20 = vrot.slane %v3443_v48, 2 }
 0x5fe   :  { %4756 = vrot.lane.b32.xlu0 %v10313_v42, %s10188_s8 }
 0x5ff   :  { %v3445_v52 = vadd.f32 %v3444_v20, %v3443_v48 }
 0x600   :  { %4988 = vrot.lane.b32.xlu1 %v10325_v47, %s10189_s9 }
 0x601   :  { %v3446_v53 = vrot.slane %v3445_v52, 1 }
 0x602   :  { %4754 = vrot.lane.b32.xlu0 %v10313_v42, %s10189_s9 }
 0x603   :  { %v3447_v24 = vadd.f32 %v3446_v53, %v3445_v52 }
 0x604   :  { %5146 = vrot.lane.b32.xlu1 %v10333_v51, %s10188_s8 }
 0x605   :  { %v3519_v31 = vmul.f32 0.125, %v3447_v24 }
 0x606   :  { %4912 = vrot.lane.b32.xlu0 %v10321_v46, %s10188_s8 }
 0x607   :  { %9559 = vmatmul.mubr.msk.f32.vlgmr.msra.gmra.mrb[38].mxu0 %vm254_vm2, %v3519_v31 }
 0x608   :  { %9567 = vmatpush3.msra.mxu0 %v10875_v23  ;;  %5144 = vrot.lane.b32.xlu1 %v10333_v51, %s10189_s9  ;;  %v11014_v23 = vpop.permute.xlu1 %4522 }
 0x609   :  { %9568 = vmatprep.mubr.msk.f32.mxu0 %vm10182_vm1, %v10181_v30  ;;  %9576 = vmatprep.subr.mxu0 %v10181_v30 }
 0x60a   :  { %4910 = vrot.lane.b32.xlu0 %v10321_v46, %s10189_s9 }
 0x60c   :  { %5302 = vrot.lane.b32.xlu1 %v10341_v55, %s10188_s8 }
 0x60e   :  { %5068 = vrot.lane.b32.xlu0 %v10329_v50, %s10188_s8 }
 0x610   :  { %5300 = vrot.lane.b32.xlu1 %v10341_v55, %s10189_s9 }
 0x612   :  { %5066 = vrot.lane.b32.xlu0 %v10329_v50, %s10189_s9 }
 0x614   :  { %5631 = vrot.lane.b32.xlu1 %v10299_v34, %s10190_s12 }
 0x616   :  { %5224 = vrot.lane.b32.xlu0 %v10337_v54, %s10188_s8  ;;  %s10191_s8 = smov 72  }
 0x618   :  { %5783 = vrot.lane.b32.xlu1 %v10305_v38, %s10190_s12 }
 0x61a   :  { %5222 = vrot.lane.b32.xlu0 %v10337_v54, %s10189_s9  ;;  %s10192_s9 = smov 104  }
 0x61c   :  { %5859 = vrot.lane.b32.xlu1 %v10307_v39, %s10190_s12 }
 0x61e   :  { %5707 = vrot.lane.b32.xlu0 %v10303_v37, %s10190_s12 }
 0x620   :  { %6011 = vrot.lane.b32.xlu1 %v10317_v43, %s10190_s12 }
 0x622   :  { %5935 = vrot.lane.b32.xlu0 %v10313_v42, %s10190_s12 }
 0x623   :  { %v3351_v62 = vpop.xlane.xlu1 %3350 }
 0x624   :  { %9988 = vrcp.f32 %v3351_v62 }
 0x627   :  { %v3357_v28 = vpop.xlane.xlu1 %3356 }
 0x628   :  { %9990 = vrcp.f32 %v3357_v28 }
 0x62b   :  { %v3363_v41 = vpop.xlane.xlu1 %3362 }
 0x62c   :  { %9992 = vrcp.f32 %v3363_v41  ;;  %v3360_v9 = vpop.xlane.xlu0 %3359 }
 0x62d   :  { %9994 = vrcp.f32 %v3360_v9 }
 0x62e   :  { %v9989_v36 = vpop.eup %9988 }
 0x62f   :  { %v3409_v3 = vmul.f32 %v9989_v36, %v10900_v44  ;;  %v3369_v10 = vpop.xlane.xlu1 %3368 }
 0x630   :  { %9996 = vrcp.f32 %v3369_v10  ;;  %v3366_v7 = vpop.xlane.xlu0 %3365 }
 0x631   :  { %8984 = vst.msk [vmem:[%s11898_s5 + $0x8] sm:$0xff] %vm254_vm2, %v3409_v3  ;;  %v3434_v32 = vsel %vm254_vm2, %v3409_v3, 0.0  ;;  %9998 = vrcp.f32 %v3366_v7 }
 0x632   :  { %v9991_v0 = vpop.eup %9990  ;;  %v3435_v12 = vrot.slane %v3434_v32, 4 }
 0x633   :  { %v3411_v15 = vmul.f32 %v9991_v0, %v10906_v14  ;;  %v3375_v16 = vpop.xlane.xlu1 %3374 }
 0x634   :  { %v3436_v11 = vadd.f32 %v3435_v12, %v3434_v32  ;;  %10000 = vrcp.f32 %v3375_v16  ;;  %v3372_v18 = vpop.xlane.xlu0 %3371 }
 0x635   :  { %8986 = vst.msk [vmem:[%s11898_s5 + $0x48] sm:$0xff] %vm254_vm2, %v3411_v15  ;;  %v3448_v44 = vsel %vm254_vm2, %v3411_v15, 0.0  ;;  %10002 = vrcp.f32 %v3372_v18 }
 0x636   :  { %v9993_v19 = vpop.eup %9992  ;;  %v3449_v21 = vrot.slane %v3448_v44, 4  ;;  %v3437_v63 = vrot.slane %v3436_v11, 2 }
 0x637   :  { %v9995_v13 = vpop.eup %9994  ;;  %v3413_v6 = vmul.f32 %v9993_v19, %v10911_v33 }
 0x638   :  { %v3450_v22 = vadd.f32 %v3449_v21, %v3448_v44  ;;  %v3412_v14 = vmul.f32 %v9995_v13, %v10913_v35  ;;  %v3378_v48 = vpop.xlane.xlu0 %3377  ;;  %v3438_v20 = vadd.f32 %v3437_v63, %v3436_v11 }
 0x639   :  { %8988 = vst.msk [vmem:[%s11898_s5 + $0x88] sm:$0xff] %vm254_vm2, %v3413_v6  ;;  %v3462_v52 = vsel %vm254_vm2, %v3413_v6, 0.0  ;;  %10004 = vrcp.f32 %v3378_v48 }
 0x63a   :  { %v9997_v53 = vpop.eup %9996  ;;  %v3463_v24 = vrot.slane %v3462_v52, 4  ;;  %8987 = vst.msk [vmem:[%s11898_s5 + $0x68] sm:$0xff] %vm254_vm2, %v3412_v14  ;;  %v3455_v33 = vsel %vm254_vm2, %v3412_v14, 0.0  ;;  %v3439_v35 = vrot.slane %v3438_v20, 1  ;;  %v3451_v31 = vrot.slane %v3450_v22, 2 }
 0x63b   :  { %v9999_v62 = vpop.eup %9998  ;;  %v3456_v28 = vrot.slane %v3455_v33, 4  ;;  %v3415_v41 = vmul.f32 %v9997_v53, %v10919_v56 }
 0x63c   :  { %v3464_v9 = vadd.f32 %v3463_v24, %v3462_v52  ;;  %v3414_v36 = vmul.f32 %v9999_v62, %v10921_v57  ;;  %v3440_v3 = vadd.f32 %v3439_v35, %v3438_v20  ;;  %v3452_v10 = vadd.f32 %v3451_v31, %v3450_v22 }
 0x63d   :  { %v3457_v7 = vadd.f32 %v3456_v28, %v3455_v33  ;;  %8990 = vst.msk [vmem:[%s11898_s5 + $0xc8] sm:$0xff] %vm254_vm2, %v3415_v41  ;;  %v3476_v32 = vsel %vm254_vm2, %v3415_v41, 0.0 }
 0x63e   :  { %v10001_v0 = vpop.eup %10000  ;;  %v3477_v12 = vrot.slane %v3476_v32, 4  ;;  %8989 = vst.msk [vmem:[%s11898_s5 + $0xa8] sm:$0xff] %vm254_vm2, %v3414_v36  ;;  %v3469_v56 = vsel %vm254_vm2, %v3414_v36, 0.0  ;;  %v3518_v57 = vmul.f32 0.125, %v3440_v3  ;;  %v3453_v15 = vrot.slane %v3452_v10, 1 }
 0x63f   :  { %v10003_v16 = vpop.eup %10002  ;;  %v3470_v11 = vrot.slane %v3469_v56, 4  ;;  %v3417_v18 = vmul.f32 %v10001_v0, %v10927_v60  ;;  %v3458_v44 = vrot.slane %v3457_v7, 2  ;;  %v3465_v19 = vrot.slane %v3464_v9, 2 }
 0x640   :  { %v3478_v21 = vadd.f32 %v3477_v12, %v3476_v32  ;;  %v3416_v63 = vmul.f32 %v10003_v16, %v10929_v2  ;;  %9554 = vmatmul.mubr.msk.f32.vlgmr.msra.gmra.mrb[46].mxu1 %vm254_vm2, %v3518_v57  ;;  %v3454_v13 = vadd.f32 %v3453_v15, %v3452_v10 }
 0x641   :  { %v3471_v6 = vadd.f32 %v3470_v11, %v3469_v56  ;;  %8992 = vst.msk [vmem:[%s11898_s5 + $0x108] sm:$0xff] %vm254_vm2, %v3417_v18  ;;  %v3490_v22 = vsel %vm254_vm2, %v3417_v18, 0.0  ;;  %9562 = vmatpush3.msra.mxu1 %v10873_v26  ;;  %9563 = vmatprep.mubr.msk.f32.mxu1 %vm10182_vm1, %v10181_v30  ;;  %v3459_v60 = vadd.f32 %v3458_v44, %v3457_v7 }
 0x642   :  { %v3466_v14 = vadd.f32 %v3465_v19, %v3464_v9  ;;  %v3491_v48 = vrot.slane %v3490_v22, 4  ;;  %8991 = vst.msk [vmem:[%s11898_s5 + $0xe8] sm:$0xff] %vm254_vm2, %v3416_v63  ;;  %v3483_v2 = vsel %vm254_vm2, %v3416_v63, 0.0  ;;  %9571 = vmatprep.subr.mxu1 %v10181_v30  ;;  %v3520_v20 = vmul.f32 0.125, %v3454_v13 }
 0x643   :  { %v3479_v52 = vrot.slane %v3478_v21, 2  ;;  %v10005_v53 = vpop.eup %10004  ;;  %v3484_v24 = vrot.slane %v3483_v2, 4  ;;  %v3460_v26 = vrot.slane %v3459_v60, 1  ;;  %v3472_v35 = vrot.slane %v3471_v6, 2 }
 0x644   :  { %v3467_v33 = vrot.slane %v3466_v14, 1  ;;  %v3492_v31 = vadd.f32 %v3491_v48, %v3490_v22  ;;  %v3418_v62 = vmul.f32 %v10005_v53, %v10935_v45  ;;  %9564 = vmatmul.mubr.msk.f32.vlgmr.msra.gmra.mrb[48].mxu1 %vm254_vm2, %v3520_v20 }
 0x645   :  { %v3480_v28 = vadd.f32 %v3479_v52, %v3478_v21  ;;  %v3485_v41 = vadd.f32 %v3484_v24, %v3483_v2  ;;  %9572 = vmatpush3.msra.mxu1 %v10890_v49  ;;  %9573 = vmatprep.mubr.msk.f32.mxu1 %vm10182_vm1, %v10181_v30  ;;  %v3461_v9 = vadd.f32 %v3460_v26, %v3459_v60 }
 0x646   :  { %v3468_v36 = vadd.f32 %v3467_v33, %v3466_v14  ;;  %8993 = vst.msk [vmem:[%s11898_s5 + $0x128] sm:$0xff] %vm254_vm2, %v3418_v62  ;;  %v3497_v3 = vsel %vm254_vm2, %v3418_v62, 0.0  ;;  %9581 = vmatprep.subr.mxu1 %v10181_v30  ;;  %v3473_v45 = vadd.f32 %v3472_v35, %v3471_v6  ;;  %v3493_v7 = vrot.slane %v3492_v31, 2 }
 0x647   :  { %v3481_v10 = vrot.slane %v3480_v28, 1  ;;  %v3498_v32 = vrot.slane %v3497_v3, 4  ;;  %v3521_v0 = vmul.f32 0.125, %v3461_v9  ;;  %v3486_v12 = vrot.slane %v3485_v41, 2 }
 0x648   :  { %v3522_v49 = vmul.f32 0.125, %v3468_v36  ;;  %v3474_v56 = vrot.slane %v3473_v45, 1  ;;  %v3494_v15 = vadd.f32 %v3493_v7, %v3492_v31 }
 0x649   :  { %v3482_v57 = vadd.f32 %v3481_v10, %v3480_v28  ;;  %v3499_v16 = vadd.f32 %v3498_v32, %v3497_v3  ;;  %9569 = vmatmul.mubr.msk.f32.vlgmr.msra.gmra.mrb[40].mxu0 %vm254_vm2, %v3521_v0  ;;  %v3487_v11 = vadd.f32 %v3486_v12, %v3485_v41 }
 0x64a   :  { %9574 = vmatmul.mubr.msk.f32.vlgmr.msra.gmra.mrb[50].mxu1 %vm254_vm2, %v3522_v49  ;;  %9577 = vmatpush3.msra.mxu0 %v10877_v1  ;;  %v3475_v18 = vadd.f32 %v3474_v56, %v3473_v45  ;;  %v3495_v19 = vrot.slane %v3494_v15, 1 }
 0x64b   :  { %9582 = vmatpush3.msra.mxu1 %v10892_v58  ;;  %v3524_v44 = vmul.f32 0.125, %v3482_v57  ;;  %9578 = vmatprep.mubr.msk.f32.mxu0 %vm10182_vm1, %v10181_v30  ;;  %v3488_v21 = vrot.slane %v3487_v11, 1  ;;  %v3500_v63 = vrot.slane %v3499_v16, 2 }
 0x64c   :  { %9583 = vmatprep.mubr.msk.f32.mxu1 %vm10182_vm1, %v10181_v30  ;;  %9586 = vmatprep.subr.mxu0 %v10181_v30  ;;  %v3523_v13 = vmul.f32 0.125, %v3475_v18  ;;  %v3496_v6 = vadd.f32 %v3495_v19, %v3494_v15 }
 0x64d   :  { %9591 = vmatprep.subr.mxu1 %v10181_v30  ;;  %v3489_v1 = vadd.f32 %v3488_v21, %v3487_v11  ;;  %v3501_v58 = vadd.f32 %v3500_v63, %v3499_v16 }
 0x64e   :  { %9584 = vmatmul.mubr.msk.f32.vlgmr.msra.gmra.mrb[52].mxu1 %vm254_vm2, %v3524_v44  ;;  %9579 = vmatmul.mubr.msk.f32.vlgmr.msra.gmra.mrb[42].mxu0 %vm254_vm2, %v3523_v13  ;;  %v3526_v22 = vmul.f32 0.125, %v3496_v6 }
 0x64f   :  { %9592 = vmatpush3.msra.mxu1 %v10894_v40  ;;  %9587 = vmatpush3.msra.mxu0 %v10879_v8  ;;  %v3525_v60 = vmul.f32 0.125, %v3489_v1  ;;  %v3502_v14 = vrot.slane %v3501_v58, 1 }
 0x650   :  { %9588 = vmatprep.mubr.msk.f32.mxu0 %vm10182_vm1, %v10181_v30  ;;  %9593 = vmatprep.mubr.msk.f32.mxu1 %vm10182_vm1, %v10181_v30 }
 0x651   :  { %9596 = vmatprep.subr.mxu0 %v10181_v30  ;;  %9601 = vmatprep.subr.mxu1 %v10181_v30  ;;  %v3503_v48 = vadd.f32 %v3502_v14, %v3501_v58 }
 0x652   :  { %9594 = vmatmul.mubr.msk.f32.vlgmr.msra.gmra.mrb[54].mxu1 %vm254_vm2, %v3526_v22  ;;  %9589 = vmatmul.mubr.msk.f32.vlgmr.msra.gmra.mrb[44].mxu0 %vm254_vm2, %v3525_v60 }
 0x653   :  { %9602 = vmatpush3.msra.mxu1 %v10896_v61  ;;  %9597 = vmatpush3.msra.mxu0 %v10881_v29  ;;  %v3527_v8 = vmul.f32 0.125, %v3503_v48  ;;  %v4521_v29 = vpop.permute.xlu1 %4520  ;;  %v4443_v61 = vpop.permute.xlu0 %4442 }
 0x654   :  { %9598 = vmatprep.mubr.msk.f32.mxu0 %vm10182_vm1, %v10181_v30  ;;  %9606 = vmatprep.subr.mxu0 %v10181_v30 }
 0x655   :  { %9603 = vmatprep.mubr.msk.f32.mxu1 %vm10182_vm1, %v10181_v30  ;;  %9611 = vmatprep.subr.mxu1 %v10181_v30 }
 0x656   :  { %9599 = vmatmul.mubr.msk.f32.vlgmr.msra.gmra.mrb[46].mxu0 %vm254_vm2, %v3527_v8 }
 0x657   :  { %9607 = vmatpush3.msra.mxu0 %v10883_v5  ;;  %9608 = vmatprep.mubr.msk.f32.mxu0 %vm10182_vm1, %v10181_v30 }
 0x658   :  { %9616 = vmatprep.subr.mxu0 %v10181_v30 }
 0x668   :  { %v3381_v40 = vpop.xlane.xlu1 %3380 }
 0x669   :  { %10006 = vrcp.f32 %v3381_v40 }
 0x66c   :  { %v4679_v2 = vpop.permute.xlu1 %4678 }
 0x66d   :  { %v3384_v20 = vpop.xlane.xlu0 %3383 }
 0x66e   :  { %10008 = vrcp.f32 %v3384_v20 }
 0x670   :  { %v4677_v52 = vpop.permute.xlu1 %4676 }
 0x671   :  { %v4601_v53 = vpop.permute.xlu0 %4600 }
 0x673   :  { %v10007_v24 = vpop.eup %10006 }
 0x674   :  { %v3419_v26 = vmul.f32 %v10007_v24, %v10945_v17  ;;  %v4835_v33 = vpop.permute.xlu1 %4834 }
 0x675   :  { %v4599_v35 = vpop.permute.xlu0 %4598 }
 0x676   :  { %8994 = vst.msk [vmem:[%s11898_s5 + $0x148] sm:$0xff] %vm254_vm2, %v3419_v26  ;;  %v3504_v5 = vsel %vm254_vm2, %v3419_v26, 0.0 }
 0x677   :  { %v3505_v31 = vrot.slane %v3504_v5, 4 }
 0x678   :  { %v10009_v62 = vpop.eup %10008  ;;  %v4833_v28 = vpop.permute.xlu1 %4832 }
 0x679   :  { %v3506_v41 = vadd.f32 %v3505_v31, %v3504_v5  ;;  %v3420_v9 = vmul.f32 %v10009_v62, %v10949_v4  ;;  %v4757_v36 = vpop.permute.xlu0 %4756 }
 0x67b   :  { %8995 = vst.msk [vmem:[%s11898_s5 + $0x168] sm:$0xff] %vm254_vm2, %v3420_v9  ;;  %v3511_v17 = vsel %vm254_vm2, %v3420_v9, 0.0  ;;  %v3507_v3 = vrot.slane %v3506_v41, 2 }
 0x67c   :  { %v3512_v45 = vrot.slane %v3511_v17, 4  ;;  %v4991_v10 = vpop.permute.xlu1 %4990 }
 0x67d   :  { %v4755_v7 = vpop.permute.xlu0 %4754  ;;  %v3508_v32 = vadd.f32 %v3507_v3, %v3506_v41 }
 0x67e   :  { %v3513_v0 = vadd.f32 %v3512_v45, %v3511_v17 }
 0x67f   :  { %v3509_v49 = vrot.slane %v3508_v32, 1 }
 0x680   :  { %v4989_v12 = vpop.permute.xlu1 %4988  ;;  %v3514_v56 = vrot.slane %v3513_v0, 2 }
 0x681   :  { %v4913_v57 = vpop.permute.xlu0 %4912  ;;  %v3510_v15 = vadd.f32 %v3509_v49, %v3508_v32 }
 0x682   :  { %v3515_v4 = vadd.f32 %v3514_v56, %v3513_v0 }
 0x683   :  { %v3528_v16 = vmul.f32 0.125, %v3510_v15 }
 0x684   :  { %v3516_v11 = vrot.slane %v3515_v4, 1  ;;  %v5147_v18 = vpop.permute.xlu1 %5146 }
 0x685   :  { %v4911_v44 = vpop.permute.xlu0 %4910  ;;  %9604 = vmatmul.mubr.msk.f32.vlgmr.msra.gmra.mrb[56].mxu1 %vm254_vm2, %v3528_v16 }
 0x686   :  { %9612 = vmatpush3.xpose.msk.msra.mxu1 %vm254_vm2, %v10953_v25  ;;  %9613 = vmatprep.mubr.msk.f32.mxu1 %vm10182_vm1, %v10181_v30  ;;  %v3517_v19 = vadd.f32 %v3516_v11, %v3515_v4 }
 0x687   :  { %9621 = vmatprep.subr.mxu1 %v10181_v30 }
 0x688   :  { %v3529_v21 = vmul.f32 0.125, %v3517_v19  ;;  %v5145_v13 = vpop.permute.xlu1 %5144 }
 0x689   :  { %9614 = vmatmul.mubr.msk.f32.vlgmr.msra.gmra.mrb[58].mxu1 %vm254_vm2, %v4443_v61  ;;  %v5069_v63 = vpop.permute.xlu0 %5068 }
 0x68a   :  { %9609 = vmatmul.mubr.msk.f32.vlgmr.msra.gmra.mrb[48].mxu0 %vm254_vm2, %v3529_v21  ;;  %9622 = vmatpush3.xpose.msk.msra.mxu1 %vm254_vm2, %v4601_v53 }
 0x68b   :  { %9617 = vmatpush3.xpose.msk.msra.mxu0 %vm254_vm2, %v11014_v23  ;;  %9618 = vmatprep.mubr.msk.f32.mxu0 %vm10182_vm1, %v10181_v30 }
 0x68c   :  { %9623 = vmatprep.mubr.msk.f32.mxu1 %vm10182_vm1, %v10181_v30  ;;  %9626 = vmatprep.subr.mxu0 %v10181_v30  ;;  %v5303_v23 = vpop.permute.xlu1 %5302 }
 0x68d   :  { %9631 = vmatprep.subr.mxu1 %v10181_v30  ;;  %9624 = vmatmul.mubr.msk.f32.vlgmr.msra.gmra.mrb[60].mxu1 %vm254_vm2, %v4599_v35  ;;  %v5067_v25 = vpop.permute.xlu0 %5066 }
 0x68e   :  { %9619 = vmatmul.mubr.msk.f32.vlgmr.msra.gmra.mrb[50].mxu0 %vm254_vm2, %v4521_v29  ;;  %9632 = vmatpush3.xpose.msk.msra.mxu1 %vm254_vm2, %v4757_v36 }
 0x68f   :  { %9627 = vmatpush3.xpose.msk.msra.mxu0 %vm254_vm2, %v4679_v2  ;;  %9628 = vmatprep.mubr.msk.f32.mxu0 %vm10182_vm1, %v10181_v30 }
 0x690   :  { %9633 = vmatprep.mubr.msk.f32.mxu1 %vm10182_vm1, %v10181_v30  ;;  %9636 = vmatprep.subr.mxu0 %v10181_v30  ;;  %v5301_v1 = vpop.permute.xlu1 %5300 }
 0x691   :  { %9641 = vmatprep.subr.mxu1 %v10181_v30  ;;  %9634 = vmatmul.mubr.msk.f32.vlgmr.msra.gmra.mrb[62].mxu1 %vm254_vm2, %v4755_v7  ;;  %v5225_v6 = vpop.permute.xlu0 %5224 }
 0x692   :  { %9629 = vmatmul.mubr.msk.f32.vlgmr.msra.gmra.mrb[52].mxu0 %vm254_vm2, %v4677_v52  ;;  %9642 = vmatpush3.xpose.msk.msra.mxu1 %vm254_vm2, %v4913_v57 }
 0x693   :  { %9637 = vmatpush3.xpose.msk.msra.mxu0 %vm254_vm2, %v4835_v33  ;;  %9638 = vmatprep.mubr.msk.f32.mxu0 %vm10182_vm1, %v10181_v30 }
 0x694   :  { %9643 = vmatprep.mubr.msk.f32.mxu1 %vm10182_vm1, %v10181_v30  ;;  %9646 = vmatprep.subr.mxu0 %v10181_v30  ;;  %v5632_v22 = vpop.permute.xlu1 %5631 }
 0x695   :  { %9651 = vmatprep.subr.mxu1 %v10181_v30  ;;  %9644 = vmatmul.mubr.msk.f32.vlgmr.msra.gmra.mrb[64].mxu1 %vm254_vm2, %v4911_v44  ;;  %v5223_v58 = vpop.permute.xlu0 %5222 }
 0x696   :  { %9639 = vmatmul.mubr.msk.f32.vlgmr.msra.gmra.mrb[54].mxu0 %vm254_vm2, %v4833_v28  ;;  %9652 = vmatpush3.xpose.msk.msra.mxu1 %vm254_vm2, %v5069_v63 }
 0x697   :  { %9647 = vmatpush3.xpose.msk.msra.mxu0 %vm254_vm2, %v4991_v10  ;;  %9648 = vmatprep.mubr.msk.f32.mxu0 %vm10182_vm1, %v10181_v30 }
 0x698   :  { %9653 = vmatprep.mubr.msk.f32.mxu1 %vm10182_vm1, %v10181_v30  ;;  %9656 = vmatprep.subr.mxu0 %v10181_v30 }
 0x699   :  { %9661 = vmatprep.subr.mxu1 %v10181_v30  ;;  %9654 = vmatmul.mubr.msk.f32.vlgmr.msra.gmra.mrb[66].mxu1 %vm254_vm2, %v5067_v25  ;;  %v5708_v60 = vpop.permute.xlu0 %5707 }
 0x69a   :  { %9649 = vmatmul.mubr.msk.f32.vlgmr.msra.gmra.mrb[56].mxu0 %vm254_vm2, %v4989_v12  ;;  %9662 = vmatpush3.xpose.msk.msra.mxu1 %vm254_vm2, %v5225_v6 }
 0x69b   :  { %9657 = vmatpush3.xpose.msk.msra.mxu0 %vm254_vm2, %v5147_v18  ;;  %9658 = vmatprep.mubr.msk.f32.mxu0 %vm10182_vm1, %v10181_v30 }
 0x69c   :  { %9663 = vmatprep.mubr.msk.f32.mxu1 %vm10182_vm1, %v10181_v30  ;;  %9666 = vmatprep.subr.mxu0 %v10181_v30 }
 0x69d   :  { %9671 = vmatprep.subr.mxu1 %v10181_v30  ;;  %9664 = vmatmul.mubr.msk.f32.vlgmr.msra.gmra.mrb[68].mxu1 %vm254_vm2, %v5223_v58 }
 0x69e   :  { %9659 = vmatmul.mubr.msk.f32.vlgmr.msra.gmra.mrb[58].mxu0 %vm254_vm2, %v5145_v13  ;;  %9672 = vmatpush3.msra.mxu1 %v5632_v22 }
 0x69f   :  { %9667 = vmatpush3.xpose.msk.msra.mxu0 %vm254_vm2, %v5303_v23  ;;  %9668 = vmatprep.mubr.msk.f32.mxu0 %vm10182_vm1, %v10181_v30 }
 0x6a0   :  { %9676 = vmatprep.subr.mxu0 %v10181_v30  ;;  %9673 = vmatprep.mubr.msk.f32.mxu1 %vm10182_vm1, %v10181_v30 }
 0x6a1   :  { %9681 = vmatprep.subr.mxu1 %v10181_v30 }
 0x6a2   :  { %9669 = vmatmul.mubr.msk.f32.vlgmr.msra.gmra.mrb[60].mxu0 %vm254_vm2, %v5301_v1 }
 0x6a3   :  { %9677 = vmatpush3.msra.mxu0 %v5708_v60  ;;  %9678 = vmatprep.mubr.msk.f32.mxu0 %vm10182_vm1, %v10181_v30 }
 0x6a4   :  { %9686 = vmatprep.subr.mxu0 %v10181_v30 }
 0x6da   :  { %v3678_v14 = vpop.f32.mrb[38].mxu0 }
 0x6db   :  { %v9560_v48 = vpop.f32.mrb[39].mxu0  ;;  %v8697_v8 = vrot.slane %v3678_v14, 7 }
 0x713   :  { %v3602_v29 = vpop.f32.mrb[46].mxu1 }
 0x714   :  { %v8698_v40 = vsel %vm8657_vm3, %v8697_v8, %v3602_v29  ;;  %v9555_v61 = vpop.f32.mrb[47].mxu1 }
 0x717   :  { %v3754_v2 = vpop.f32.mrb[48].mxu1 }
 0x718   :  { %v8699_v20 = vrot.slane %v3754_v2, 6  ;;  %v9565_v52 = vpop.f32.mrb[49].mxu1 }
 0x71a   :  { %v8700_v53 = vsel %vm8660_vm4, %v8699_v20, %v8698_v40 }
 0x71c   :  { %v3830_v24 = vpop.f32.mrb[40].mxu0 }
 0x71d   :  { %v3906_v26 = vpop.f32.mrb[50].mxu1  ;;  %v8701_v33 = vrot.slane %v3830_v24, 5  ;;  %v9570_v5 = vpop.f32.mrb[41].mxu0 }
 0x71e   :  { %v8703_v35 = vrot.slane %v3906_v26, 4  ;;  %v9575_v31 = vpop.f32.mrb[51].mxu1 }
 0x71f   :  { %v8702_v62 = vsel %vm8663_vm5, %v8701_v33, %v8700_v53 }
 0x720   :  { %v8704_v28 = vsel %vm8666_vm6, %v8703_v35, %v8702_v62 }
 0x721   :  { %v4058_v41 = vpop.f32.mrb[52].mxu1  ;;  %v3982_v9 = vpop.f32.mrb[42].mxu0 }
 0x722   :  { %v8707_v36 = vrot.slane %v4058_v41, 2  ;;  %v9585_v17 = vpop.f32.mrb[53].mxu1  ;;  %v8705_v3 = vrot.slane %v3982_v9, 3  ;;  %v9580_v45 = vpop.f32.mrb[43].mxu0 }
 0x724   :  { %v8706_v10 = vsel %vm8669_vm7, %v8705_v3, %v8704_v28 }
 0x725   :  { %v4210_v7 = vpop.f32.mrb[54].mxu1  ;;  %v4134_v32 = vpop.f32.mrb[44].mxu0  ;;  %v8708_v49 = vsel %vm8672_vm8, %v8707_v36, %v8706_v10 }
 0x726   :  { %v9595_v0 = vpop.f32.mrb[55].mxu1  ;;  %v8709_v12 = vrot.slane %v4134_v32, 1  ;;  %v9590_v56 = vpop.f32.mrb[45].mxu0 }
 0x728   :  { %v11208_v57 = vsel %vm8675_vm9, %v8709_v12, %v8708_v49 }
 0x729   :  { %v4286_v15 = vpop.f32.mrb[46].mxu0 }
 0x72a   :  { %v8711_v4 = vrot.slane %v4286_v15, 7  ;;  %v9600_v16 = vpop.f32.mrb[47].mxu0  ;;  %v11283_v15 = vpop.permute.xlu1 %5783 }
 0x72b   :  { %v11287_v16 = vpop.permute.xlu0 %5935 }
 0x72c   :  { %v8712_v11 = vsel %vm8657_vm3, %v8711_v4, %v4210_v7 }
 0x72e   :  { %v11285_v4 = vpop.permute.xlu1 %5859 }
 0x758   :  { %v4362_v18 = vpop.f32.mrb[56].mxu1 }
 0x759   :  { %v8713_v44 = vrot.slane %v4362_v18, 6  ;;  %v9605_v19 = vpop.f32.mrb[57].mxu1  ;;  %v11289_v18 = vpop.permute.xlu1 %6011 }
 0x75b   :  { %v8714_v21 = vsel %vm8660_vm4, %v8713_v44, %v8712_v11 }
 0x75c   :  { %v11212_v63 = vpop.f32.mrb[58].mxu1 }
 0x75d   :  { %v4438_v13 = vpop.f32.mrb[48].mxu0  ;;  %v9615_v25 = vpop.f32.mrb[59].mxu1  ;;  %v5378_v23 = vsel %vm254_vm2, %v11212_v63, -inf }
 0x75e   :  { %v8715_v6 = vrot.slane %v4438_v13, 5  ;;  %v9610_v1 = vpop.f32.mrb[49].mxu0  ;;  %5379 = vmax.xlane.f32.xlu0 %v5378_v23 }
 0x760   :  { %v11216_v58 = vpop.f32.mrb[60].mxu1  ;;  %v11219_v22 = vsel %vm8663_vm5, %v8715_v6, %v8714_v21 }
 0x761   :  { %v11221_v60 = vpop.f32.mrb[50].mxu0  ;;  %v9625_v14 = vpop.f32.mrb[61].mxu1  ;;  %v5384_v48 = vsel %vm254_vm2, %v11216_v58, -inf }
 0x762   :  { %v9620_v8 = vpop.f32.mrb[51].mxu0  ;;  %v5381_v29 = vsel %vm254_vm2, %v11221_v60, -inf  ;;  %5385 = vmax.xlane.f32.xlu0 %v5384_v48 }
 0x763   :  { %5382 = vmax.xlane.f32.xlu1 %v5381_v29 }
 0x764   :  { %v11227_v40 = vpop.f32.mrb[62].mxu1 }
 0x765   :  { %v11229_v61 = vpop.f32.mrb[52].mxu0  ;;  %v9635_v2 = vpop.f32.mrb[63].mxu1  ;;  %v5390_v20 = vsel %vm254_vm2, %v11227_v40, -inf }
 0x766   :  { %v9630_v52 = vpop.f32.mrb[53].mxu0  ;;  %v5387_v53 = vsel %vm254_vm2, %v11229_v61, -inf }
 0x767   :  { %5388 = vmax.xlane.f32.xlu0 %v5387_v53  ;;  %5391 = vmax.xlane.f32.xlu1 %v5390_v20 }
 0x768   :  { %v11235_v24 = vpop.f32.mrb[64].mxu1 }
 0x769   :  { %v11237_v26 = vpop.f32.mrb[54].mxu0  ;;  %v9645_v33 = vpop.f32.mrb[65].mxu1  ;;  %v5396_v35 = vsel %vm254_vm2, %v11235_v24, -inf }
 0x76a   :  { %v9640_v5 = vpop.f32.mrb[55].mxu0  ;;  %v5393_v31 = vsel %vm254_vm2, %v11237_v26, -inf }
 0x76b   :  { %5394 = vmax.xlane.f32.xlu0 %v5393_v31  ;;  %5397 = vmax.xlane.f32.xlu1 %v5396_v35 }
 0x76c   :  { %v11243_v62 = vpop.f32.mrb[66].mxu1 }
 0x76d   :  { %v11245_v28 = vpop.f32.mrb[56].mxu0  ;;  %v9655_v41 = vpop.f32.mrb[67].mxu1  ;;  %v5402_v9 = vsel %vm254_vm2, %v11243_v62, -inf }
 0x76e   :  { %v9650_v36 = vpop.f32.mrb[57].mxu0  ;;  %v5399_v17 = vsel %vm254_vm2, %v11245_v28, -inf }
 0x76f   :  { %5400 = vmax.xlane.f32.xlu0 %v5399_v17  ;;  %5403 = vmax.xlane.f32.xlu1 %v5402_v9 }
 0x770   :  { %v11251_v3 = vpop.f32.mrb[68].mxu1 }
 0x771   :  { %v11253_v45 = vpop.f32.mrb[58].mxu0  ;;  %v9665_v10 = vpop.f32.mrb[69].mxu1  ;;  %v5408_v7 = vsel %vm254_vm2, %v11251_v3, -inf }
 0x772   :  { %v9660_v32 = vpop.f32.mrb[59].mxu0  ;;  %v5405_v0 = vsel %vm254_vm2, %v11253_v45, -inf }
 0x773   :  { %5406 = vmax.xlane.f32.xlu0 %v5405_v0  ;;  %5409 = vmax.xlane.f32.xlu1 %v5408_v7 }
 0x775   :  { %v11259_v49 = vpop.f32.mrb[60].mxu0 }
 0x776   :  { %v9670_v12 = vpop.f32.mrb[61].mxu0  ;;  %v5411_v56 = vsel %vm254_vm2, %v11259_v49, -inf }
 0x777   :  { %5412 = vmax.xlane.f32.xlu0 %v5411_v56 }
 0x784   :  { %6163 = vrot.lane.b32.xlu1 %v10325_v47, %s10190_s12 }
 0x788   :  { %6315 = vrot.lane.b32.xlu1 %v10333_v51, %s10190_s12 }
 0x78c   :  { %6467 = vrot.lane.b32.xlu1 %v10341_v55, %s10190_s12 }
 0x78d   :  { %6087 = vrot.lane.b32.xlu0 %v10321_v46, %s10190_s12 }
 0x790   :  { %6623 = vrot.lane.b32.xlu1 %v10303_v37, %s10191_s8 }
 0x791   :  { %6239 = vrot.lane.b32.xlu0 %v10329_v50, %s10190_s12 }
 0x794   :  { %6621 = vrot.lane.b32.xlu1 %v10303_v37, %s10192_s9 }
 0x795   :  { %6391 = vrot.lane.b32.xlu0 %v10337_v54, %s10190_s12 }
 0x799   :  { %6545 = vrot.lane.b32.xlu0 %v10299_v34, %s10191_s8 }
 0x79d   :  { %6543 = vrot.lane.b32.xlu0 %v10299_v34, %s10192_s9 }
 0x7eb   :  { %v5380_v11 = vpop.xlane.xlu0 %5379 }
 0x7ec   :  { %v5414_v44 = vsub.f32 %v11212_v63, %v5380_v11 }
 0x7ee   :  { %v5426_v19 = vmul.f32 1.442695, %v5414_v44 }
 0x7ef   :  { %v5386_v21 = vpop.xlane.xlu0 %5385 }
 0x7f0   :  { %10010 = vpow2.f32 %v5426_v19  ;;  %v5383_v13 = vpop.xlane.xlu1 %5382  ;;  %v5416_v25 = vsub.f32 %v11216_v58, %v5386_v21 }
 0x7f1   :  { %v5415_v23 = vsub.f32 %v11221_v60, %v5383_v13 }
 0x7f2   :  { %v5430_v6 = vmul.f32 1.442695, %v5416_v25 }
 0x7f3   :  { %v5428_v1 = vmul.f32 1.442695, %v5415_v23 }
 0x7f4   :  { %10012 = vpow2.f32 %v5430_v6  ;;  %v5392_v14 = vpop.xlane.xlu1 %5391  ;;  %v5389_v48 = vpop.xlane.xlu0 %5388 }
 0x7f5   :  { %10014 = vpow2.f32 %v5428_v1  ;;  %v5418_v8 = vsub.f32 %v11227_v40, %v5392_v14  ;;  %v5417_v29 = vsub.f32 %v11229_v61, %v5389_v48 }
 0x7f7   :  { %v5434_v2 = vmul.f32 1.442695, %v5418_v8  ;;  %v5432_v63 = vmul.f32 1.442695, %v5417_v29 }
 0x7f8   :  { %v5398_v20 = vpop.xlane.xlu1 %5397  ;;  %v5395_v52 = vpop.xlane.xlu0 %5394 }
 0x7f9   :  { %10016 = vpow2.f32 %v5434_v2  ;;  %v5420_v53 = vsub.f32 %v11235_v24, %v5398_v20  ;;  %v5419_v58 = vsub.f32 %v11237_v26, %v5395_v52 }
 0x7fa   :  { %v11298_v60 = vpop.eup %10010  ;;  %10018 = vpow2.f32 %v5432_v63 }
 0x7fb   :  { %v5438_v33 = vmul.f32 1.442695, %v5420_v53  ;;  %v5436_v35 = vmul.f32 1.442695, %v5419_v58  ;;  %v5450_v5 = vsel %vm254_vm2, %v11298_v60, 0.0 }
 0x7fc   :  { %v5404_v40 = vpop.xlane.xlu1 %5403  ;;  %v5401_v31 = vpop.xlane.xlu0 %5400  ;;  %5451 = vadd.xlane.f32.xlu1 %v5450_v5 }
 0x7fd   :  { %10020 = vpow2.f32 %v5438_v33  ;;  %v5422_v61 = vsub.f32 %v11243_v62, %v5404_v40  ;;  %v5421_v41 = vsub.f32 %v11245_v28, %v5401_v31 }
 0x7fe   :  { %v11304_v9 = vpop.eup %10012  ;;  %10022 = vpow2.f32 %v5436_v35 }
 0x7ff   :  { %v11306_v24 = vpop.eup %10014  ;;  %v5442_v26 = vmul.f32 1.442695, %v5422_v61  ;;  %v5440_v36 = vmul.f32 1.442695, %v5421_v41  ;;  %v5456_v17 = vsel %vm254_vm2, %v11304_v9, 0.0 }
 0x800   :  { %v5410_v10 = vpop.xlane.xlu1 %5409  ;;  %v5407_v7 = vpop.xlane.xlu0 %5406  ;;  %v5453_v32 = vsel %vm254_vm2, %v11306_v24, 0.0  ;;  %5457 = vadd.xlane.f32.xlu1 %v5456_v17 }
 0x801   :  { %10024 = vpow2.f32 %v5442_v26  ;;  %v5424_v62 = vsub.f32 %v11251_v3, %v5410_v10  ;;  %v5423_v28 = vsub.f32 %v11253_v45, %v5407_v7  ;;  %5454 = vadd.xlane.f32.xlu0 %v5453_v32 }
 0x802   :  { %10026 = vpow2.f32 %v5440_v36 }
 0x803   :  { %v11314_v0 = vpop.eup %10016  ;;  %v5446_v12 = vmul.f32 1.442695, %v5424_v62  ;;  %v5444_v56 = vmul.f32 1.442695, %v5423_v28 }
 0x804   :  { %v11316_v11 = vpop.eup %10018  ;;  %v5413_v44 = vpop.xlane.xlu0 %5412  ;;  %v5462_v19 = vsel %vm254_vm2, %v11314_v0, 0.0 }
 0x805   :  { %10028 = vpow2.f32 %v5446_v12  ;;  %v5425_v21 = vsub.f32 %v11259_v49, %v5413_v44  ;;  %5463 = vadd.xlane.f32.xlu1 %v5462_v19  ;;  %v5459_v3 = vsel %vm254_vm2, %v11316_v11, 0.0  ;;  %v11391_v53 = vpop.permute.xlu1 %6163 }
 0x806   :  { %10030 = vpow2.f32 %v5444_v56  ;;  %5460 = vadd.xlane.f32.xlu0 %v5459_v3 }
 0x807   :  { %v11323_v45 = vpop.eup %10020  ;;  %v5448_v13 = vmul.f32 1.442695, %v5425_v21 }
 0x808   :  { %v11325_v25 = vpop.eup %10022  ;;  %v5468_v23 = vsel %vm254_vm2, %v11323_v45, 0.0  ;;  %v11393_v58 = vpop.permute.xlu0 %6087 }
 0x809   :  { %10032 = vpow2.f32 %v5448_v13  ;;  %5469 = vadd.xlane.f32.xlu1 %v5468_v23  ;;  %v5465_v6 = vsel %vm254_vm2, %v11325_v25, 0.0  ;;  %v11395_v33 = vpop.permute.xlu1 %6315 }
 0x80a   :  { %5466 = vadd.xlane.f32.xlu0 %v5465_v6 }
 0x80b   :  { %v11331_v49 = vpop.eup %10024 }
 0x80c   :  { %v11333_v1 = vpop.eup %10026  ;;  %v5474_v14 = vsel %vm254_vm2, %v11331_v49, 0.0  ;;  %v11397_v35 = vpop.permute.xlu0 %6239 }
 0x80d   :  { %5475 = vadd.xlane.f32.xlu1 %v5474_v14  ;;  %v5471_v48 = vsel %vm254_vm2, %v11333_v1, 0.0  ;;  %v11399_v5 = vpop.permute.xlu1 %6467 }
 0x80e   :  { %5472 = vadd.xlane.f32.xlu0 %v5471_v48 }
 0x80f   :  { %v11339_v8 = vpop.eup %10028 }
 0x810   :  { %v11341_v29 = vpop.eup %10030  ;;  %v5480_v2 = vsel %vm254_vm2, %v11339_v8, 0.0  ;;  %v11401_v40 = vpop.permute.xlu0 %6391 }
 0x811   :  { %5481 = vadd.xlane.f32.xlu1 %v5480_v2  ;;  %v5477_v63 = vsel %vm254_vm2, %v11341_v29, 0.0  ;;  %v11403_v31 = vpop.permute.xlu1 %6623 }
 0x812   :  { %5478 = vadd.xlane.f32.xlu0 %v5477_v63 }
 0x813   :  { %v11347_v20 = vpop.eup %10032 }
 0x814   :  { %v5483_v52 = vsel %vm254_vm2, %v11347_v20, 0.0  ;;  %v11405_v61 = vpop.permute.xlu0 %6545 }
 0x815   :  { %v11407_v41 = vpop.permute.xlu1 %6621 }
 0x816   :  { %5484 = vadd.xlane.f32.xlu0 %v5483_v52 }
 0x818   :  { %v11409_v36 = vpop.permute.xlu0 %6543 }
 0x822   :  { %6779 = vrot.lane.b32.xlu1 %v10307_v39, %s10191_s8 }
 0x826   :  { %6777 = vrot.lane.b32.xlu1 %v10307_v39, %s10192_s9 }
 0x82a   :  { %6935 = vrot.lane.b32.xlu1 %v10317_v43, %s10191_s8 }
 0x82c   :  { %6701 = vrot.lane.b32.xlu0 %v10305_v38, %s10191_s8 }
 0x82e   :  { %6933 = vrot.lane.b32.xlu1 %v10317_v43, %s10192_s9 }
 0x830   :  { %6699 = vrot.lane.b32.xlu0 %v10305_v38, %s10192_s9 }
 0x832   :  { %7091 = vrot.lane.b32.xlu1 %v10325_v47, %s10191_s8 }
 0x834   :  { %6857 = vrot.lane.b32.xlu0 %v10313_v42, %s10191_s8 }
 0x836   :  { %7089 = vrot.lane.b32.xlu1 %v10325_v47, %s10192_s9 }
 0x838   :  { %6855 = vrot.lane.b32.xlu0 %v10313_v42, %s10192_s9 }
 0x83a   :  { %7247 = vrot.lane.b32.xlu1 %v10333_v51, %s10191_s8 }
 0x83c   :  { %7013 = vrot.lane.b32.xlu0 %v10321_v46, %s10191_s8 }
 0x83e   :  { %7245 = vrot.lane.b32.xlu1 %v10333_v51, %s10192_s9 }
 0x840   :  { %7011 = vrot.lane.b32.xlu0 %v10321_v46, %s10192_s9 }
 0x842   :  { %7403 = vrot.lane.b32.xlu1 %v10341_v55, %s10191_s8 }
 0x844   :  { %7169 = vrot.lane.b32.xlu0 %v10329_v50, %s10191_s8 }
 0x846   :  { %7401 = vrot.lane.b32.xlu1 %v10341_v55, %s10192_s9 }
 0x848   :  { %7167 = vrot.lane.b32.xlu0 %v10329_v50, %s10192_s9 }
 0x84c   :  { %7325 = vrot.lane.b32.xlu0 %v10337_v54, %s10191_s8  ;;  %s10194_s8 = smov 16  }
 0x850   :  { %7323 = vrot.lane.b32.xlu0 %v10337_v54, %s10192_s9 }
 0x889   :  { %v5452_v26 = vpop.xlane.xlu1 %5451 }
 0x88a   :  { %10034 = vrcp.f32 %v5452_v26 }
 0x88d   :  { %v5458_v17 = vpop.xlane.xlu1 %5457 }
 0x88e   :  { %10036 = vrcp.f32 %v5458_v17  ;;  %v5455_v10 = vpop.xlane.xlu0 %5454 }
 0x88f   :  { %10038 = vrcp.f32 %v5455_v10 }
 0x892   :  { %v5464_v7 = vpop.xlane.xlu1 %5463 }
 0x893   :  { %10040 = vrcp.f32 %v5464_v7  ;;  %v5461_v32 = vpop.xlane.xlu0 %5460 }
 0x894   :  { %v10035_v62 = vpop.eup %10034  ;;  %10042 = vrcp.f32 %v5461_v32 }
 0x895   :  { %v5510_v28 = vmul.f32 %v10035_v62, %v11298_v60 }
 0x896   :  { %v5470_v12 = vpop.xlane.xlu1 %5469 }
 0x897   :  { %9032 = vst.msk [vmem:[%s11898_s5 + $0x10] sm:$0xff] %vm254_vm2, %v5510_v28  ;;  %v5535_v56 = vsel %vm254_vm2, %v5510_v28, 0.0  ;;  %10044 = vrcp.f32 %v5470_v12  ;;  %v5467_v44 = vpop.xlane.xlu0 %5466 }
 0x898   :  { %v10037_v19 = vpop.eup %10036  ;;  %v5536_v21 = vrot.slane %v5535_v56, 4  ;;  %10046 = vrcp.f32 %v5467_v44 }
 0x899   :  { %v10039_v3 = vpop.eup %10038  ;;  %v5512_v13 = vmul.f32 %v10037_v19, %v11304_v9 }
 0x89a   :  { %v5537_v23 = vadd.f32 %v5536_v21, %v5535_v56  ;;  %v5511_v6 = vmul.f32 %v10039_v3, %v11306_v24  ;;  %v5476_v60 = vpop.xlane.xlu1 %5475 }
 0x89b   :  { %9034 = vst.msk [vmem:[%s11898_s5 + $0x50] sm:$0xff] %vm254_vm2, %v5512_v13  ;;  %v5549_v14 = vsel %vm254_vm2, %v5512_v13, 0.0  ;;  %10048 = vrcp.f32 %v5476_v60  ;;  %v5473_v48 = vpop.xlane.xlu0 %5472 }
 0x89c   :  { %v5550_v2 = vrot.slane %v5549_v14, 4  ;;  %9033 = vst.msk [vmem:[%s11898_s5 + $0x30] sm:$0xff] %vm254_vm2, %v5511_v6  ;;  %v5542_v9 = vsel %vm254_vm2, %v5511_v6, 0.0  ;;  %10050 = vrcp.f32 %v5473_v48  ;;  %v5538_v24 = vrot.slane %v5537_v23, 2 }
 0x89d   :  { %v10041_v63 = vpop.eup %10040  ;;  %v5543_v52 = vrot.slane %v5542_v9, 4 }
 0x89e   :  { %v10043_v26 = vpop.eup %10042  ;;  %v5551_v17 = vadd.f32 %v5550_v2, %v5549_v14  ;;  %v5514_v10 = vmul.f32 %v10041_v63, %v11314_v0  ;;  %v5482_v7 = vpop.xlane.xlu1 %5481  ;;  %v5539_v32 = vadd.f32 %v5538_v24, %v5537_v23 }
 0x89f   :  { %v5544_v62 = vadd.f32 %v5543_v52, %v5542_v9  ;;  %v5513_v28 = vmul.f32 %v10043_v26, %v11316_v11  ;;  %10052 = vrcp.f32 %v5482_v7  ;;  %v5479_v12 = vpop.xlane.xlu0 %5478 }
 0x8a0   :  { %9036 = vst.msk [vmem:[%s11898_s5 + $0x90] sm:$0xff] %vm254_vm2, %v5514_v10  ;;  %v5563_v56 = vsel %vm254_vm2, %v5514_v10, 0.0  ;;  %10054 = vrcp.f32 %v5479_v12  ;;  %v5540_v44 = vrot.slane %v5539_v32, 1  ;;  %v5552_v19 = vrot.slane %v5551_v17, 2 }
 0x8a1   :  { %v10045_v21 = vpop.eup %10044  ;;  %v5564_v3 = vrot.slane %v5563_v56, 4  ;;  %9035 = vst.msk [vmem:[%s11898_s5 + $0x70] sm:$0xff] %vm254_vm2, %v5513_v28  ;;  %v5556_v0 = vsel %vm254_vm2, %v5513_v28, 0.0  ;;  %v5545_v11 = vrot.slane %v5544_v62, 2 }
 0x8a2   :  { %v10047_v13 = vpop.eup %10046  ;;  %v5557_v23 = vrot.slane %v5556_v0, 4  ;;  %v5516_v6 = vmul.f32 %v10045_v21, %v11323_v45  ;;  %v5541_v60 = vadd.f32 %v5540_v44, %v5539_v32  ;;  %v5553_v14 = vadd.f32 %v5552_v19, %v5551_v17 }
 0x8a3   :  { %v5565_v48 = vadd.f32 %v5564_v3, %v5563_v56  ;;  %v5515_v2 = vmul.f32 %v10047_v13, %v11325_v25  ;;  %v5485_v9 = vpop.xlane.xlu0 %5484  ;;  %v5546_v24 = vadd.f32 %v5545_v11, %v5544_v62  ;;  %v11453_v25 = vpop.permute.xlu1 %6779 }
 0x8a4   :  { %v5558_v63 = vadd.f32 %v5557_v23, %v5556_v0  ;;  %9038 = vst.msk [vmem:[%s11898_s5 + $0xd0] sm:$0xff] %vm254_vm2, %v5516_v6  ;;  %v5577_v52 = vsel %vm254_vm2, %v5516_v6, 0.0  ;;  %10056 = vrcp.f32 %v5485_v9  ;;  %v5619_v26 = vmul.f32 0.125, %v5541_v60 }
 0x8a5   :  { %v10049_v10 = vpop.eup %10048  ;;  %v5578_v7 = vrot.slane %v5577_v52, 4  ;;  %9037 = vst.msk [vmem:[%s11898_s5 + $0xb0] sm:$0xff] %vm254_vm2, %v5515_v2  ;;  %v5570_v45 = vsel %vm254_vm2, %v5515_v2, 0.0  ;;  %v5547_v17 = vrot.slane %v5546_v24, 1  ;;  %v5554_v32 = vrot.slane %v5553_v14, 1 }
 0x8a6   :  { %v10051_v62 = vpop.eup %10050  ;;  %v5571_v28 = vrot.slane %v5570_v45, 4  ;;  %v5518_v12 = vmul.f32 %v10049_v10, %v11331_v49  ;;  %9674 = vmatmul.mubr.msk.f32.vlgmr.msra.gmra.mrb[70].mxu1 %vm254_vm2, %v5619_v26  ;;  %v5559_v56 = vrot.slane %v5558_v63, 2  ;;  %v5566_v44 = vrot.slane %v5565_v48, 2 }
 0x8a7   :  { %v5579_v19 = vadd.f32 %v5578_v7, %v5577_v52  ;;  %v5517_v21 = vmul.f32 %v10051_v62, %v11333_v1  ;;  %v11458_v3 = vpop.permute.xlu0 %6701  ;;  %9682 = vmatpush3.msra.mxu1 %v11283_v15  ;;  %9683 = vmatprep.mubr.msk.f32.mxu1 %vm10182_vm1, %v10181_v30  ;;  %v5548_v0 = vadd.f32 %v5547_v17, %v5546_v24 }
 0x8a8   :  { %v5572_v11 = vadd.f32 %v5571_v28, %v5570_v45  ;;  %9040 = vst.msk [vmem:[%s11898_s5 + $0x110] sm:$0xff] %vm254_vm2, %v5518_v12  ;;  %v5591_v49 = vsel %vm254_vm2, %v5518_v12, 0.0  ;;  %9691 = vmatprep.subr.mxu1 %v10181_v30  ;;  %v5555_v13 = vadd.f32 %v5554_v32, %v5553_v14  ;;  %v5560_v1 = vadd.f32 %v5559_v56, %v5558_v63  ;;  %v11476_v63 = vpop.permute.xlu1 %6777 }
 0x8a9   :  { %v10053_v23 = vpop.eup %10052  ;;  %v5592_v6 = vrot.slane %v5591_v49, 4  ;;  %9039 = vst.msk [vmem:[%s11898_s5 + $0xf0] sm:$0xff] %vm254_vm2, %v5517_v21  ;;  %v5584_v15 = vsel %vm254_vm2, %v5517_v21, 0.0  ;;  %v5620_v60 = vmul.f32 0.125, %v5548_v0  ;;  %v5567_v2 = vadd.f32 %v5566_v44, %v5565_v48 }
 0x8aa   :  { %v10055_v9 = vpop.eup %10054  ;;  %v5585_v24 = vrot.slane %v5584_v15, 4  ;;  %v5520_v52 = vmul.f32 %v10053_v23, %v11339_v8  ;;  %v5621_v26 = vmul.f32 0.125, %v5555_v13  ;;  %v5561_v10 = vrot.slane %v5560_v1, 1 }
 0x8ab   :  { %v5593_v7 = vadd.f32 %v5592_v6, %v5591_v49  ;;  %v5519_v14 = vmul.f32 %v10055_v9, %v11341_v29  ;;  %v11478_v45 = vpop.permute.xlu0 %6699  ;;  %9679 = vmatmul.mubr.msk.f32.vlgmr.msra.gmra.mrb[62].mxu0 %vm254_vm2, %v5620_v60  ;;  %v5568_v17 = vrot.slane %v5567_v2, 1  ;;  %v5573_v32 = vrot.slane %v5572_v11, 2 }
 0x8ac   :  { %v5586_v62 = vadd.f32 %v5585_v24, %v5584_v15  ;;  %9042 = vst.msk [vmem:[%s11898_s5 + $0x150] sm:$0xff] %vm254_vm2, %v5520_v52  ;;  %v5605_v8 = vsel %vm254_vm2, %v5520_v52, 0.0  ;;  %9684 = vmatmul.mubr.msk.f32.vlgmr.msra.gmra.mrb[72].mxu1 %vm254_vm2, %v5621_v26  ;;  %9687 = vmatpush3.msra.mxu0 %v11285_v4  ;;  %v5562_v29 = vadd.f32 %v5561_v10, %v5560_v1  ;;  %v5580_v48 = vrot.slane %v5579_v19, 2 }
 0x8ad   :  { %v5606_v28 = vrot.slane %v5605_v8, 4  ;;  %9041 = vst.msk [vmem:[%s11898_s5 + $0x130] sm:$0xff] %vm254_vm2, %v5519_v14  ;;  %v5598_v12 = vsel %vm254_vm2, %v5519_v14, 0.0  ;;  %9692 = vmatpush3.msra.mxu1 %v11287_v16  ;;  %9693 = vmatprep.mubr.msk.f32.mxu1 %vm10182_vm1, %v10181_v30  ;;  %v5569_v56 = vadd.f32 %v5568_v17, %v5567_v2  ;;  %v5574_v44 = vadd.f32 %v5573_v32, %v5572_v11 }
 0x8ae   :  { %v10057_v21 = vpop.eup %10056  ;;  %v5599_v0 = vrot.slane %v5598_v12, 4  ;;  %9701 = vmatprep.subr.mxu1 %v10181_v30  ;;  %9688 = vmatprep.mubr.msk.f32.mxu0 %vm10182_vm1, %v10181_v30  ;;  %v5622_v4 = vmul.f32 0.125, %v5562_v29  ;;  %v5581_v49 = vadd.f32 %v5580_v48, %v5579_v19  ;;  %v5587_v13 = vrot.slane %v5586_v62, 2 }
 0x8af   :  { %v5607_v1 = vadd.f32 %v5606_v28, %v5605_v8  ;;  %v5521_v23 = vmul.f32 %v10057_v21, %v11347_v20  ;;  %9696 = vmatprep.subr.mxu0 %v10181_v30  ;;  %v11501_v16 = vpop.permute.xlu0 %6857  ;;  %v5623_v6 = vmul.f32 0.125, %v5569_v56  ;;  %v5575_v15 = vrot.slane %v5574_v44, 1  ;;  %v11509_v20 = vpop.permute.xlu1 %6935 }
 0x8b0   :  { %v5600_v11 = vadd.f32 %v5599_v0, %v5598_v12  ;;  %9689 = vmatmul.mubr.msk.f32.vlgmr.msra.gmra.mrb[64].mxu0 %vm254_vm2, %v5622_v4  ;;  %v5582_v60 = vrot.slane %v5581_v49, 1  ;;  %v5588_v2 = vadd.f32 %v5587_v13, %v5586_v62  ;;  %v5594_v9 = vrot.slane %v5593_v7, 2 }
 0x8b1   :  { %9043 = vst.msk [vmem:[%s11898_s5 + $0x170] sm:$0xff] %vm254_vm2, %v5521_v23  ;;  %v5612_v19 = vsel %vm254_vm2, %v5521_v23, 0.0  ;;  %9694 = vmatmul.mubr.msk.f32.vlgmr.msra.gmra.mrb[74].mxu1 %vm254_vm2, %v5623_v6  ;;  %9697 = vmatpush3.msra.mxu0 %v11289_v18  ;;  %v5576_v24 = vadd.f32 %v5575_v15, %v5574_v44  ;;  %v5608_v52 = vrot.slane %v5607_v1, 2 }
 0x8b2   :  { %v5613_v26 = vrot.slane %v5612_v19, 4  ;;  %9702 = vmatpush3.msra.mxu1 %v11393_v58  ;;  %9703 = vmatprep.mubr.msk.f32.mxu1 %vm10182_vm1, %v10181_v30  ;;  %v5583_v10 = vadd.f32 %v5582_v60, %v5581_v49  ;;  %v5589_v14 = vrot.slane %v5588_v2, 1  ;;  %v5595_v17 = vadd.f32 %v5594_v9, %v5593_v7 }
 0x8b3   :  { %9698 = vmatprep.mubr.msk.f32.mxu0 %vm10182_vm1, %v10181_v30  ;;  %9706 = vmatprep.subr.mxu0 %v10181_v30  ;;  %v5624_v32 = vmul.f32 0.125, %v5576_v24  ;;  %v5601_v62 = vrot.slane %v5600_v11, 2  ;;  %v5609_v8 = vadd.f32 %v5608_v52, %v5607_v1  ;;  %v11520_v29 = vpop.permute.xlu0 %6855  ;;  %v11525_v0 = vpop.permute.xlu1 %6933 }
 0x8b4   :  { %v5614_v18 = vadd.f32 %v5613_v26, %v5612_v19  ;;  %9711 = vmatprep.subr.mxu1 %v10181_v30  ;;  %v5625_v58 = vmul.f32 0.125, %v5583_v10  ;;  %v5590_v48 = vadd.f32 %v5589_v14, %v5588_v2  ;;  %v5596_v28 = vrot.slane %v5595_v17, 1 }
 0x8b5   :  { %9699 = vmatmul.mubr.msk.f32.vlgmr.msra.gmra.mrb[66].mxu0 %vm254_vm2, %v5624_v32  ;;  %v5602_v12 = vadd.f32 %v5601_v62, %v5600_v11  ;;  %v5610_v7 = vrot.slane %v5609_v8, 1 }
 0x8b6   :  { %9704 = vmatmul.mubr.msk.f32.vlgmr.msra.gmra.mrb[76].mxu1 %vm254_vm2, %v5625_v58  ;;  %9707 = vmatpush3.msra.mxu0 %v11391_v53  ;;  %v5626_v56 = vmul.f32 0.125, %v5590_v48  ;;  %v5597_v44 = vadd.f32 %v5596_v28, %v5595_v17  ;;  %v5615_v21 = vrot.slane %v5614_v18, 2 }
 0x8b7   :  { %9712 = vmatpush3.msra.mxu1 %v11397_v35  ;;  %9708 = vmatprep.mubr.msk.f32.mxu0 %vm10182_vm1, %v10181_v30  ;;  %v5603_v4 = vrot.slane %v5602_v12, 1  ;;  %v5611_v49 = vadd.f32 %v5610_v7, %v5609_v8  ;;  %v7014_v23 = vpop.permute.xlu0 %7013  ;;  %v7092_v60 = vpop.permute.xlu1 %7091 }
 0x8b8   :  { %9713 = vmatprep.mubr.msk.f32.mxu1 %vm10182_vm1, %v10181_v30  ;;  %9716 = vmatprep.subr.mxu0 %v10181_v30  ;;  %v5627_v13 = vmul.f32 0.125, %v5597_v44  ;;  %v5616_v1 = vadd.f32 %v5615_v21, %v5614_v18 }
 0x8b9   :  { %9721 = vmatprep.subr.mxu1 %v10181_v30  ;;  %9709 = vmatmul.mubr.msk.f32.vlgmr.msra.gmra.mrb[68].mxu0 %vm254_vm2, %v5626_v56  ;;  %v5604_v53 = vadd.f32 %v5603_v4, %v5602_v12  ;;  %v5629_v35 = vmul.f32 0.125, %v5611_v49 }
 0x8ba   :  { %9714 = vmatmul.mubr.msk.f32.vlgmr.msra.gmra.mrb[78].mxu1 %vm254_vm2, %v5627_v13  ;;  %9717 = vmatpush3.msra.mxu0 %v11395_v33  ;;  %v5617_v6 = vrot.slane %v5616_v1, 1 }
 0x8bb   :  { %9722 = vmatpush3.msra.mxu1 %v11401_v40  ;;  %9718 = vmatprep.mubr.msk.f32.mxu0 %vm10182_vm1, %v10181_v30  ;;  %v5628_v15 = vmul.f32 0.125, %v5604_v53  ;;  %v7012_v40 = vpop.permute.xlu0 %7011  ;;  %v7090_v2 = vpop.permute.xlu1 %7089 }
 0x8bc   :  { %9723 = vmatprep.mubr.msk.f32.mxu1 %vm10182_vm1, %v10181_v30  ;;  %9726 = vmatprep.subr.mxu0 %v10181_v30  ;;  %v5618_v11 = vadd.f32 %v5617_v6, %v5616_v1 }
 0x8bd   :  { %9719 = vmatmul.mubr.msk.f32.vlgmr.msra.gmra.mrb[70].mxu0 %vm254_vm2, %v5628_v15  ;;  %9731 = vmatprep.subr.mxu1 %v10181_v30 }
 0x8be   :  { %9724 = vmatmul.mubr.msk.f32.vlgmr.msra.gmra.mrb[80].mxu1 %vm254_vm2, %v5629_v35  ;;  %9727 = vmatpush3.msra.mxu0 %v11399_v5  ;;  %v5630_v33 = vmul.f32 0.125, %v5618_v11 }
 0x8bf   :  { %9728 = vmatprep.mubr.msk.f32.mxu0 %vm10182_vm1, %v10181_v30  ;;  %9733 = vmatprep.mubr.msk.f32.mxu1 %vm10182_vm1, %v10181_v30  ;;  %v7170_v5 = vpop.permute.xlu0 %7169 }
 0x8c0   :  { %9736 = vmatprep.subr.mxu0 %v10181_v30 }
 0x8c1   :  { %9729 = vmatmul.mubr.msk.f32.vlgmr.msra.gmra.mrb[72].mxu0 %vm254_vm2, %v5630_v33 }
 0x8c2   :  { %9732 = vmatpush3.xpose.msk.msra.mxu1 %vm254_vm2, %v11405_v61  ;;  %9738 = vmatprep.mubr.msk.f32.mxu0 %vm10182_vm1, %v10181_v30  ;;  %v7248_v61 = vpop.permute.xlu1 %7247 }
 0x8c3   :  { %9741 = vmatprep.subr.mxu1 %v10181_v30 }
 0x8c5   :  { %9734 = vmatmul.mubr.msk.f32.vlgmr.msra.gmra.mrb[82].mxu1 %vm254_vm2, %v11409_v36  ;;  %9737 = vmatpush3.xpose.msk.msra.mxu0 %vm254_vm2, %v11403_v31  ;;  %v7168_v31 = vpop.permute.xlu0 %7167 }
 0x8c6   :  { %9742 = vmatpush3.xpose.msk.msra.mxu1 %vm254_vm2, %v11458_v3  ;;  %9743 = vmatprep.mubr.msk.f32.mxu1 %vm10182_vm1, %v10181_v30 }
 0x8c7   :  { %9746 = vmatprep.subr.mxu0 %v10181_v30  ;;  %9751 = vmatprep.subr.mxu1 %v10181_v30 }
 0x8c8   :  { %9739 = vmatmul.mubr.msk.f32.vlgmr.msra.gmra.mrb[74].mxu0 %vm254_vm2, %v11407_v41  ;;  %v7246_v41 = vpop.permute.xlu1 %7245 }
 0x8c9   :  { %9744 = vmatmul.mubr.msk.f32.vlgmr.msra.gmra.mrb[84].mxu1 %vm254_vm2, %v11478_v45  ;;  %9747 = vmatpush3.xpose.msk.msra.mxu0 %vm254_vm2, %v11453_v25  ;;  %v7326_v36 = vpop.permute.xlu0 %7325 }
 0x8ca   :  { %9752 = vmatpush3.xpose.msk.msra.mxu1 %vm254_vm2, %v11501_v16  ;;  %9748 = vmatprep.mubr.msk.f32.mxu0 %vm10182_vm1, %v10181_v30 }
 0x8cb   :  { %9753 = vmatprep.mubr.msk.f32.mxu1 %vm10182_vm1, %v10181_v30  ;;  %9756 = vmatprep.subr.mxu0 %v10181_v30 }
 0x8cc   :  { %9749 = vmatmul.mubr.msk.f32.vlgmr.msra.gmra.mrb[76].mxu0 %vm254_vm2, %v11476_v63  ;;  %9761 = vmatprep.subr.mxu1 %v10181_v30  ;;  %v7404_v25 = vpop.permute.xlu1 %7403 }
 0x8cd   :  { %9754 = vmatmul.mubr.msk.f32.vlgmr.msra.gmra.mrb[86].mxu1 %vm254_vm2, %v11520_v29  ;;  %9757 = vmatpush3.xpose.msk.msra.mxu0 %vm254_vm2, %v11509_v20  ;;  %v7324_v3 = vpop.permute.xlu0 %7323 }
 0x8ce   :  { %9762 = vmatpush3.xpose.msk.msra.mxu1 %vm254_vm2, %v7014_v23  ;;  %9758 = vmatprep.mubr.msk.f32.mxu0 %vm10182_vm1, %v10181_v30 }
 0x8cf   :  { %9763 = vmatprep.mubr.msk.f32.mxu1 %vm10182_vm1, %v10181_v30  ;;  %9766 = vmatprep.subr.mxu0 %v10181_v30 }
 0x8d0   :  { %9759 = vmatmul.mubr.msk.f32.vlgmr.msra.gmra.mrb[78].mxu0 %vm254_vm2, %v11525_v0  ;;  %9771 = vmatprep.subr.mxu1 %v10181_v30  ;;  %v7402_v63 = vpop.permute.xlu1 %7401 }
 0x8d1   :  { %9764 = vmatmul.mubr.msk.f32.vlgmr.msra.gmra.mrb[88].mxu1 %vm254_vm2, %v7012_v40  ;;  %9767 = vmatpush3.xpose.msk.msra.mxu0 %vm254_vm2, %v7092_v60 }
 0x8d2   :  { %9772 = vmatpush3.xpose.msk.msra.mxu1 %vm254_vm2, %v7170_v5  ;;  %9768 = vmatprep.mubr.msk.f32.mxu0 %vm10182_vm1, %v10181_v30 }
 0x8d3   :  { %9773 = vmatprep.mubr.msk.f32.mxu1 %vm10182_vm1, %v10181_v30  ;;  %9776 = vmatprep.subr.mxu0 %v10181_v30 }
 0x8d4   :  { %9769 = vmatmul.mubr.msk.f32.vlgmr.msra.gmra.mrb[80].mxu0 %vm254_vm2, %v7090_v2  ;;  %9781 = vmatprep.subr.mxu1 %v10181_v30 }
 0x8d5   :  { %9774 = vmatmul.mubr.msk.f32.vlgmr.msra.gmra.mrb[90].mxu1 %vm254_vm2, %v7168_v31  ;;  %9777 = vmatpush3.xpose.msk.msra.mxu0 %vm254_vm2, %v7248_v61 }
 0x8d6   :  { %9782 = vmatpush3.xpose.msk.msra.mxu1 %vm254_vm2, %v7326_v36  ;;  %9778 = vmatprep.mubr.msk.f32.mxu0 %vm10182_vm1, %v10181_v30 }
 0x8d7   :  { %9783 = vmatprep.mubr.msk.f32.mxu1 %vm10182_vm1, %v10181_v30  ;;  %9786 = vmatprep.subr.mxu0 %v10181_v30 }
 0x8d8   :  { %9779 = vmatmul.mubr.msk.f32.vlgmr.msra.gmra.mrb[82].mxu0 %vm254_vm2, %v7246_v41  ;;  %9791 = vmatprep.subr.mxu1 %v10181_v30 }
 0x8d9   :  { %9784 = vmatmul.mubr.msk.f32.vlgmr.msra.gmra.mrb[92].mxu1 %vm254_vm2, %v7324_v3  ;;  %9787 = vmatpush3.xpose.msk.msra.mxu0 %vm254_vm2, %v7404_v25 }
 0x8da   :  { %9788 = vmatprep.mubr.msk.f32.mxu0 %vm10182_vm1, %v10181_v30  ;;  %9796 = vmatprep.subr.mxu0 %v10181_v30 }
 0x8db   :  { %9793 = vmatprep.mubr.msk.f32.mxu1 %vm10182_vm1, %v10181_v30 }
 0x8dc   :  { %9789 = vmatmul.mubr.msk.f32.vlgmr.msra.gmra.mrb[84].mxu0 %vm254_vm2, %v7402_v63 }
 0x8dd   :  { %9798 = vmatprep.mubr.msk.f32.mxu0 %vm10182_vm1, %v10181_v30 }
 0x979   :  { %v5703_v45 = vpop.f32.mrb[70].mxu1 }
 0x97a   :  { %v9675_v16 = vpop.f32.mrb[71].mxu1 }
 0x97e   :  { %v5779_v9 = vpop.f32.mrb[62].mxu0 }
 0x97f   :  { %v8735_v19 = vrot.slane %v5779_v9, 7  ;;  %v5855_v20 = vpop.f32.mrb[72].mxu1  ;;  %v9680_v24 = vpop.f32.mrb[63].mxu0 }
 0x980   :  { %v8737_v52 = vrot.slane %v5855_v20, 6  ;;  %v9685_v26 = vpop.f32.mrb[73].mxu1 }
 0x981   :  { %v8736_v10 = vsel %vm8657_vm3, %v8735_v19, %v5703_v45 }
 0x982   :  { %v8738_v14 = vsel %vm8660_vm4, %v8737_v52, %v8736_v10 }
 0x983   :  { %v5931_v17 = vpop.f32.mrb[64].mxu0 }
 0x984   :  { %v8739_v32 = vrot.slane %v5931_v17, 5  ;;  %v6007_v62 = vpop.f32.mrb[74].mxu1  ;;  %v9690_v8 = vpop.f32.mrb[65].mxu0 }
 0x985   :  { %v8741_v18 = vrot.slane %v6007_v62, 4  ;;  %v9695_v29 = vpop.f32.mrb[75].mxu1 }
 0x986   :  { %v8740_v58 = vsel %vm8663_vm5, %v8739_v32, %v8738_v14 }
 0x987   :  { %v8742_v48 = vsel %vm8666_vm6, %v8741_v18, %v8740_v58 }
 0x988   :  { %v6083_v28 = vpop.f32.mrb[66].mxu0 }
 0x989   :  { %v8743_v12 = vrot.slane %v6083_v28, 3  ;;  %v6159_v7 = vpop.f32.mrb[76].mxu1  ;;  %v9700_v56 = vpop.f32.mrb[67].mxu0 }
 0x98a   :  { %v8745_v44 = vrot.slane %v6159_v7, 2  ;;  %v9705_v21 = vpop.f32.mrb[77].mxu1 }
 0x98b   :  { %v8744_v0 = vsel %vm8669_vm7, %v8743_v12, %v8742_v48 }
 0x98c   :  { %v8746_v4 = vsel %vm8672_vm8, %v8745_v44, %v8744_v0  ;;  %v6235_v49 = vpop.f32.mrb[68].mxu0 }
 0x98d   :  { %v8747_v13 = vrot.slane %v6235_v49, 1  ;;  %v6311_v1 = vpop.f32.mrb[78].mxu1  ;;  %v9710_v53 = vpop.f32.mrb[69].mxu0 }
 0x98e   :  { %v9715_v23 = vpop.f32.mrb[79].mxu1 }
 0x98f   :  { %v11634_v35 = vsel %vm8675_vm9, %v8747_v13, %v8746_v4 }
 0x990   :  { %v6387_v6 = vpop.f32.mrb[70].mxu0 }
 0x991   :  { %v8749_v15 = vrot.slane %v6387_v6, 7  ;;  %v6463_v11 = vpop.f32.mrb[80].mxu1  ;;  %v9720_v60 = vpop.f32.mrb[71].mxu0 }
 0x992   :  { %v8751_v33 = vrot.slane %v6463_v11, 6  ;;  %v9725_v40 = vpop.f32.mrb[81].mxu1 }
 0x993   :  { %v8750_v2 = vsel %vm8657_vm3, %v8749_v15, %v6311_v1 }
 0x994   :  { %v8752_v5 = vsel %vm8660_vm4, %v8751_v33, %v8750_v2  ;;  %v6539_v61 = vpop.f32.mrb[72].mxu0 }
 0x995   :  { %v8753_v31 = vrot.slane %v6539_v61, 5  ;;  %v9730_v41 = vpop.f32.mrb[73].mxu0 }
 0x997   :  { %v11639_v36 = vsel %vm8663_vm5, %v8753_v31, %v8752_v5 }
 0x998   :  { %v6617_v25 = vpop.f32.mrb[82].mxu1 }
 0x999   :  { %v9735_v3 = vpop.f32.mrb[83].mxu1  ;;  %v7479_v63 = vsel %vm254_vm2, %v6617_v25, -inf }
 0x99a   :  { %7480 = vmax.xlane.f32.xlu0 %v7479_v63 }
 0x99b   :  { %v6695_v45 = vpop.f32.mrb[74].mxu0 }
 0x99c   :  { %v6773_v16 = vpop.f32.mrb[84].mxu1  ;;  %v9740_v9 = vpop.f32.mrb[75].mxu0  ;;  %v7482_v19 = vsel %vm254_vm2, %v6695_v45, -inf }
 0x99d   :  { %v9745_v20 = vpop.f32.mrb[85].mxu1  ;;  %7483 = vmax.xlane.f32.xlu1 %v7482_v19  ;;  %v7485_v24 = vsel %vm254_vm2, %v6773_v16, -inf }
 0x99e   :  { %7486 = vmax.xlane.f32.xlu0 %v7485_v24 }
 0x99f   :  { %v6851_v52 = vpop.f32.mrb[76].mxu0 }
 0x9a0   :  { %v6929_v26 = vpop.f32.mrb[86].mxu1  ;;  %v9750_v10 = vpop.f32.mrb[77].mxu0  ;;  %v7488_v14 = vsel %vm254_vm2, %v6851_v52, -inf }
 0x9a1   :  { %v9755_v17 = vpop.f32.mrb[87].mxu1  ;;  %v7491_v32 = vsel %vm254_vm2, %v6929_v26, -inf }
 0x9a2   :  { %7489 = vmax.xlane.f32.xlu0 %v7488_v14  ;;  %7492 = vmax.xlane.f32.xlu1 %v7491_v32 }
 0x9a3   :  { %v7007_v62 = vpop.f32.mrb[78].mxu0 }
 0x9a4   :  { %v7085_v8 = vpop.f32.mrb[88].mxu1  ;;  %v9760_v18 = vpop.f32.mrb[79].mxu0  ;;  %v7494_v29 = vsel %vm254_vm2, %v7007_v62, -inf }
 0x9a5   :  { %v9765_v58 = vpop.f32.mrb[89].mxu1  ;;  %v7497_v48 = vsel %vm254_vm2, %v7085_v8, -inf }
 0x9a6   :  { %7495 = vmax.xlane.f32.xlu0 %v7494_v29  ;;  %7498 = vmax.xlane.f32.xlu1 %v7497_v48 }
 0x9a7   :  { %v11648_v28 = vpop.f32.mrb[80].mxu0 }
 0x9a8   :  { %v7241_v12 = vpop.f32.mrb[90].mxu1  ;;  %v9770_v7 = vpop.f32.mrb[81].mxu0  ;;  %v7500_v56 = vsel %vm254_vm2, %v11648_v28, -inf }
 0x9a9   :  { %v9775_v44 = vpop.f32.mrb[91].mxu1  ;;  %v7503_v21 = vsel %vm254_vm2, %v7241_v12, -inf }
 0x9aa   :  { %7501 = vmax.xlane.f32.xlu0 %v7500_v56  ;;  %7504 = vmax.xlane.f32.xlu1 %v7503_v21 }
 0x9ab   :  { %v11653_v0 = vpop.f32.mrb[82].mxu0 }
 0x9ac   :  { %v11655_v4 = vpop.f32.mrb[92].mxu1  ;;  %v9780_v49 = vpop.f32.mrb[83].mxu0  ;;  %v7506_v13 = vsel %vm254_vm2, %v11653_v0, -inf }
 0x9ad   :  { %v9785_v1 = vpop.f32.mrb[93].mxu1  ;;  %v7509_v53 = vsel %vm254_vm2, %v11655_v4, -inf }
 0x9ae   :  { %7507 = vmax.xlane.f32.xlu0 %v7506_v13  ;;  %7510 = vmax.xlane.f32.xlu1 %v7509_v53 }
 0x9af   :  { %v11661_v23 = vpop.f32.mrb[84].mxu0 }
 0x9b0   :  { %v9790_v6 = vpop.f32.mrb[85].mxu0  ;;  %v7512_v15 = vsel %vm254_vm2, %v11661_v23, -inf }
 0x9b2   :  { %7513 = vmax.xlane.f32.xlu0 %v7512_v15 }
 0x9bf   :  { %7732 = vrot.lane.b32.xlu1 %v10299_v34, %s10193_s7 }
 0x9c3   :  { %7884 = vrot.lane.b32.xlu1 %v10305_v38, %s10193_s7 }
 0x9c7   :  { %7960 = vrot.lane.b32.xlu1 %v10307_v39, %s10193_s7 }
 0x9c8   :  { %7808 = vrot.lane.b32.xlu0 %v10303_v37, %s10193_s7 }
 0xa27   :  { %v7481_v11 = vpop.xlane.xlu0 %7480 }
 0xa28   :  { %v7515_v60 = vsub.f32 %v6617_v25, %v7481_v11 }
 0xa2a   :  { %v7527_v33 = vmul.f32 1.442695, %v7515_v60  ;;  %v7484_v40 = vpop.xlane.xlu1 %7483 }
 0xa2b   :  { %v7516_v2 = vsub.f32 %v6695_v45, %v7484_v40  ;;  %v7487_v5 = vpop.xlane.xlu0 %7486 }
 0xa2c   :  { %10058 = vpow2.f32 %v7527_v33  ;;  %v7517_v61 = vsub.f32 %v6773_v16, %v7487_v5 }
 0xa2d   :  { %v7529_v31 = vmul.f32 1.442695, %v7516_v2 }
 0xa2e   :  { %v7531_v41 = vmul.f32 1.442695, %v7517_v61 }
 0xa2f   :  { %10060 = vpow2.f32 %v7529_v31  ;;  %v7493_v34 = vpop.xlane.xlu1 %7492  ;;  %v7490_v3 = vpop.xlane.xlu0 %7489 }
 0xa30   :  { %10062 = vpow2.f32 %v7531_v41  ;;  %v7519_v38 = vsub.f32 %v6929_v26, %v7493_v34  ;;  %v7518_v63 = vsub.f32 %v6851_v52, %v7490_v3 }
 0xa32   :  { %v7535_v39 = vmul.f32 1.442695, %v7519_v38  ;;  %v7533_v9 = vmul.f32 1.442695, %v7518_v63 }
 0xa33   :  { %v7499_v19 = vpop.xlane.xlu1 %7498  ;;  %v7496_v37 = vpop.xlane.xlu0 %7495 }
 0xa34   :  { %10064 = vpow2.f32 %v7535_v39  ;;  %v7521_v25 = vsub.f32 %v7085_v8, %v7499_v19  ;;  %v7520_v20 = vsub.f32 %v7007_v62, %v7496_v37 }
 0xa35   :  { %10066 = vpow2.f32 %v7533_v9 }
 0xa36   :  { %v11673_v45 = vpop.eup %10058  ;;  %v7539_v24 = vmul.f32 1.442695, %v7521_v25  ;;  %v7537_v16 = vmul.f32 1.442695, %v7520_v20 }
 0xa37   :  { %v7505_v10 = vpop.xlane.xlu1 %7504  ;;  %v7502_v14 = vpop.xlane.xlu0 %7501  ;;  %v7551_v17 = vsel %vm254_vm2, %v11673_v45, 0.0 }
 0xa38   :  { %10068 = vpow2.f32 %v7539_v24  ;;  %v7523_v26 = vsub.f32 %v7241_v12, %v7505_v10  ;;  %v7522_v52 = vsub.f32 %v11648_v28, %v7502_v14  ;;  %7552 = vadd.xlane.f32.xlu1 %v7551_v17 }
 0xa39   :  { %v11678_v32 = vpop.eup %10060  ;;  %10070 = vpow2.f32 %v7537_v16 }
 0xa3a   :  { %v11680_v8 = vpop.eup %10062  ;;  %v7543_v62 = vmul.f32 1.442695, %v7523_v26  ;;  %v7541_v18 = vmul.f32 1.442695, %v7522_v52  ;;  %v7554_v29 = vsel %vm254_vm2, %v11678_v32, 0.0 }
 0xa3b   :  { %v7511_v58 = vpop.xlane.xlu1 %7510  ;;  %v7508_v48 = vpop.xlane.xlu0 %7507  ;;  %7555 = vadd.xlane.f32.xlu0 %v7554_v29  ;;  %v7557_v7 = vsel %vm254_vm2, %v11680_v8, 0.0 }
 0xa3c   :  { %10072 = vpow2.f32 %v7543_v62  ;;  %v7525_v28 = vsub.f32 %v11655_v4, %v7511_v58  ;;  %v7524_v12 = vsub.f32 %v11653_v0, %v7508_v48  ;;  %7558 = vadd.xlane.f32.xlu1 %v7557_v7 }
 0xa3d   :  { %10074 = vpow2.f32 %v7541_v18 }
 0xa3e   :  { %v11688_v56 = vpop.eup %10064  ;;  %v7547_v44 = vmul.f32 1.442695, %v7525_v28  ;;  %v7545_v21 = vmul.f32 1.442695, %v7524_v12 }
 0xa3f   :  { %v11690_v49 = vpop.eup %10066  ;;  %v7733_v13 = vpop.permute.xlu1 %7732  ;;  %v7563_v53 = vsel %vm254_vm2, %v11688_v56, 0.0 }
 0xa40   :  { %v7514_v1 = vpop.xlane.xlu0 %7513  ;;  %10076 = vpow2.f32 %v7547_v44  ;;  %9792 = vmatpush3.msra.mxu1 %v7733_v13  ;;  %7564 = vadd.xlane.f32.xlu1 %v7563_v53  ;;  %v7560_v0 = vsel %vm254_vm2, %v11690_v49, 0.0 }
 0xa41   :  { %v7526_v6 = vsub.f32 %v11661_v23, %v7514_v1  ;;  %10078 = vpow2.f32 %v7545_v21  ;;  %7561 = vadd.xlane.f32.xlu0 %v7560_v0  ;;  %9801 = vmatprep.subr.mxu1 %v10181_v30 }
 0xa42   :  { %v11698_v4 = vpop.eup %10068 }
 0xa43   :  { %v7549_v15 = vmul.f32 1.442695, %v7526_v6  ;;  %v11700_v11 = vpop.eup %10070  ;;  %v7569_v33 = vsel %vm254_vm2, %v11698_v4, 0.0 }
 0xa44   :  { %v7809_v60 = vpop.permute.xlu0 %7808  ;;  %7570 = vadd.xlane.f32.xlu1 %v7569_v33  ;;  %v7566_v23 = vsel %vm254_vm2, %v11700_v11, 0.0 }
 0xa45   :  { %10080 = vpow2.f32 %v7549_v15  ;;  %9797 = vmatpush3.msra.mxu0 %v7809_v60  ;;  %7567 = vadd.xlane.f32.xlu0 %v7566_v23 }
 0xa46   :  { %9806 = vmatprep.subr.mxu0 %v10181_v30  ;;  %v11707_v40 = vpop.eup %10072 }
 0xa47   :  { %v11709_v2 = vpop.eup %10074  ;;  %v7575_v5 = vsel %vm254_vm2, %v11707_v40, 0.0 }
 0xa48   :  { %7576 = vadd.xlane.f32.xlu1 %v7575_v5  ;;  %v7572_v61 = vsel %vm254_vm2, %v11709_v2, 0.0 }
 0xa49   :  { %7573 = vadd.xlane.f32.xlu0 %v7572_v61 }
 0xa4a   :  { %v11715_v31 = vpop.eup %10076 }
 0xa4b   :  { %v11717_v41 = vpop.eup %10078  ;;  %v7581_v34 = vsel %vm254_vm2, %v11715_v31, 0.0 }
 0xa4c   :  { %7582 = vadd.xlane.f32.xlu1 %v7581_v34  ;;  %v7578_v3 = vsel %vm254_vm2, %v11717_v41, 0.0 }
 0xa4d   :  { %7579 = vadd.xlane.f32.xlu0 %v7578_v3 }
 0xa4f   :  { %v11723_v38 = vpop.eup %10080 }
 0xa50   :  { %v7584_v63 = vsel %vm254_vm2, %v11723_v38, 0.0 }
 0xa51   :  { %7585 = vadd.xlane.f32.xlu0 %v7584_v63 }
 0xa5d   :  { %8112 = vrot.lane.b32.xlu1 %v10317_v43, %s10193_s7 }
 0xa61   :  { %8264 = vrot.lane.b32.xlu1 %v10325_v47, %s10193_s7 }
 0xa65   :  { %8416 = vrot.lane.b32.xlu1 %v10333_v51, %s10193_s7 }
 0xa67   :  { %8036 = vrot.lane.b32.xlu0 %v10313_v42, %s10193_s7  ;;  %v11749_v42 = vpop.permute.xlu1 %7884 }
 0xa69   :  { %8568 = vrot.lane.b32.xlu1 %v10341_v55, %s10193_s7 }
 0xa6b   :  { %8188 = vrot.lane.b32.xlu0 %v10321_v46, %s10193_s7  ;;  %v11751_v43 = vpop.permute.xlu1 %7960 }
 0xa6d   :  { %8719 = vrot.lane.b32.xlu1 %v11219_v22, %s10179_s6 }
 0xa6f   :  { %8340 = vrot.lane.b32.xlu0 %v10329_v50, %s10193_s7 }
 0xa71   :  { %8757 = vrot.lane.b32.xlu1 %v11639_v36, %s10194_s8 }
 0xa73   :  { %8492 = vrot.lane.b32.xlu0 %v10337_v54, %s10193_s7 }
 0xa77   :  { %8717 = vrot.lane.b32.xlu0 %v11208_v57, %s10179_s6 }
 0xa7b   :  { %8755 = vrot.lane.b32.xlu0 %v11634_v35, %s10194_s8 }
 0xac5   :  { %v7553_v46 = vpop.xlane.xlu1 %7552 }
 0xac6   :  { %10082 = vrcp.f32 %v7553_v46 }
 0xac8   :  { %v7556_v47 = vpop.xlane.xlu0 %7555 }
 0xac9   :  { %v7559_v51 = vpop.xlane.xlu1 %7558  ;;  %10084 = vrcp.f32 %v7556_v47 }
 0xaca   :  { %10086 = vrcp.f32 %v7559_v51 }
 0xacd   :  { %v7565_v50 = vpop.xlane.xlu1 %7564 }
 0xace   :  { %10088 = vrcp.f32 %v7565_v50  ;;  %v7562_v55 = vpop.xlane.xlu0 %7561 }
 0xacf   :  { %10090 = vrcp.f32 %v7562_v55 }
 0xad0   :  { %v10083_v54 = vpop.eup %10082 }
 0xad1   :  { %v7611_v22 = vmul.f32 %v10083_v54, %v11673_v45  ;;  %v7571_v57 = vpop.xlane.xlu1 %7570 }
 0xad2   :  { %10092 = vrcp.f32 %v7571_v57  ;;  %v7568_v35 = vpop.xlane.xlu0 %7567 }
 0xad3   :  { %v10085_v36 = vpop.eup %10084  ;;  %9080 = vst.msk [vmem:[%s11898_s5 + $0x18] sm:$0xff] %vm254_vm2, %v7611_v22  ;;  %v7636_v39 = vsel %vm254_vm2, %v7611_v22, 0.0  ;;  %10094 = vrcp.f32 %v7568_v35 }
 0xad4   :  { %v10087_v9 = vpop.eup %10086  ;;  %v7637_v19 = vrot.slane %v7636_v39, 4  ;;  %v7612_v37 = vmul.f32 %v10085_v36, %v11678_v32 }
 0xad5   :  { %v7613_v25 = vmul.f32 %v10087_v9, %v11680_v8  ;;  %v7577_v20 = vpop.xlane.xlu1 %7576 }
 0xad6   :  { %v7638_v45 = vadd.f32 %v7637_v19, %v7636_v39  ;;  %9081 = vst.msk [vmem:[%s11898_s5 + $0x38] sm:$0xff] %vm254_vm2, %v7612_v37  ;;  %v7643_v24 = vsel %vm254_vm2, %v7612_v37, 0.0  ;;  %10096 = vrcp.f32 %v7577_v20  ;;  %v7574_v16 = vpop.xlane.xlu0 %7573 }
 0xad7   :  { %9082 = vst.msk [vmem:[%s11898_s5 + $0x58] sm:$0xff] %vm254_vm2, %v7613_v25  ;;  %v7650_v10 = vsel %vm254_vm2, %v7613_v25, 0.0  ;;  %v7644_v14 = vrot.slane %v7643_v24, 4  ;;  %10098 = vrcp.f32 %v7574_v16 }
 0xad8   :  { %v10089_v17 = vpop.eup %10088  ;;  %v7651_v26 = vrot.slane %v7650_v10, 4  ;;  %v7639_v52 = vrot.slane %v7638_v45, 2 }
 0xad9   :  { %v10091_v32 = vpop.eup %10090  ;;  %v7645_v8 = vadd.f32 %v7644_v14, %v7643_v24  ;;  %v7615_v62 = vmul.f32 %v10089_v17, %v11688_v56  ;;  %v7583_v18 = vpop.xlane.xlu1 %7582 }
 0xada   :  { %v7652_v29 = vadd.f32 %v7651_v26, %v7650_v10  ;;  %v7614_v58 = vmul.f32 %v10091_v32, %v11690_v49  ;;  %10100 = vrcp.f32 %v7583_v18  ;;  %v7580_v48 = vpop.xlane.xlu0 %7579  ;;  %v7640_v7 = vadd.f32 %v7639_v52, %v7638_v45 }
 0xadb   :  { %9084 = vst.msk [vmem:[%s11898_s5 + $0x98] sm:$0xff] %vm254_vm2, %v7615_v62  ;;  %v7664_v28 = vsel %vm254_vm2, %v7615_v62, 0.0  ;;  %10102 = vrcp.f32 %v7580_v48  ;;  %v7646_v12 = vrot.slane %v7645_v8, 2 }
 0xadc   :  { %v10093_v44 = vpop.eup %10092  ;;  %v7665_v21 = vrot.slane %v7664_v28, 4  ;;  %9083 = vst.msk [vmem:[%s11898_s5 + $0x78] sm:$0xff] %vm254_vm2, %v7614_v58  ;;  %v7657_v56 = vsel %vm254_vm2, %v7614_v58, 0.0  ;;  %v7641_v49 = vrot.slane %v7640_v7, 1  ;;  %v7653_v13 = vrot.slane %v7652_v29, 2 }
 0xadd   :  { %v10095_v1 = vpop.eup %10094  ;;  %v7658_v53 = vrot.slane %v7657_v56, 4  ;;  %v7617_v6 = vmul.f32 %v10093_v44, %v11698_v4  ;;  %v7647_v0 = vadd.f32 %v7646_v12, %v7645_v8  ;;  %v8113_v8 = vpop.permute.xlu1 %8112 }
 0xade   :  { %v7666_v15 = vadd.f32 %v7665_v21, %v7664_v28  ;;  %v7616_v60 = vmul.f32 %v10095_v1, %v11700_v11  ;;  %v7586_v33 = vpop.xlane.xlu0 %7585  ;;  %v7642_v23 = vadd.f32 %v7641_v49, %v7640_v7  ;;  %v7654_v5 = vadd.f32 %v7653_v13, %v7652_v29 }
 0xadf   :  { %v7659_v61 = vadd.f32 %v7658_v53, %v7657_v56  ;;  %9086 = vst.msk [vmem:[%s11898_s5 + $0xd8] sm:$0xff] %vm254_vm2, %v7617_v6  ;;  %v7678_v34 = vsel %vm254_vm2, %v7617_v6, 0.0  ;;  %10104 = vrcp.f32 %v7586_v33  ;;  %v7648_v3 = vrot.slane %v7647_v0, 1 }
 0xae0   :  { %v10097_v63 = vpop.eup %10096  ;;  %v7679_v46 = vrot.slane %v7678_v34, 4  ;;  %9085 = vst.msk [vmem:[%s11898_s5 + $0xb8] sm:$0xff] %vm254_vm2, %v7616_v60  ;;  %v7671_v4 = vsel %vm254_vm2, %v7616_v60, 0.0  ;;  %v7720_v11 = vmul.f32 0.125, %v7642_v23  ;;  %v7655_v47 = vrot.slane %v7654_v5, 1 }
 0xae1   :  { %v10099_v51 = vpop.eup %10098  ;;  %v7672_v50 = vrot.slane %v7671_v4, 4  ;;  %v7619_v55 = vmul.f32 %v10097_v63, %v11707_v40  ;;  %v7649_v54 = vadd.f32 %v7648_v3, %v7647_v0  ;;  %v7660_v22 = vrot.slane %v7659_v61, 2 }
 0xae2   :  { %v7680_v57 = vadd.f32 %v7679_v46, %v7678_v34  ;;  %v7618_v35 = vmul.f32 %v10099_v51, %v11709_v2  ;;  %9794 = vmatmul.mubr.msk.f32.vlgmr.msra.gmra.mrb[94].mxu1 %vm254_vm2, %v7720_v11  ;;  %v7656_v36 = vadd.f32 %v7655_v47, %v7654_v5  ;;  %v7667_v39 = vrot.slane %v7666_v15, 2  ;;  %v8037_v37 = vpop.permute.xlu0 %8036 }
 0xae3   :  { %v7673_v9 = vadd.f32 %v7672_v50, %v7671_v4  ;;  %9088 = vst.msk [vmem:[%s11898_s5 + $0x118] sm:$0xff] %vm254_vm2, %v7619_v55  ;;  %v7692_v19 = vsel %vm254_vm2, %v7619_v55, 0.0  ;;  %9802 = vmatpush3.msra.mxu1 %v11749_v42  ;;  %9803 = vmatprep.mubr.msk.f32.mxu1 %vm10182_vm1, %v10181_v30  ;;  %v7721_v40 = vmul.f32 0.125, %v7649_v54  ;;  %v7661_v2 = vadd.f32 %v7660_v22, %v7659_v61  ;;  %v8265_v61 = vpop.permute.xlu1 %8264 }
 0xae4   :  { %v10101_v25 = vpop.eup %10100  ;;  %v7693_v20 = vrot.slane %v7692_v19, 4  ;;  %9087 = vst.msk [vmem:[%s11898_s5 + $0xf8] sm:$0xff] %vm254_vm2, %v7618_v35  ;;  %v7685_v45 = vsel %vm254_vm2, %v7618_v35, 0.0  ;;  %9811 = vmatprep.subr.mxu1 %v10181_v30  ;;  %v7722_v24 = vmul.f32 0.125, %v7656_v36  ;;  %v7668_v16 = vadd.f32 %v7667_v39, %v7666_v15 }
 0xae5   :  { %v10103_v10 = vpop.eup %10102  ;;  %v7686_v42 = vrot.slane %v7685_v45, 4  ;;  %v7621_v14 = vmul.f32 %v10101_v25, %v11715_v31  ;;  %9799 = vmatmul.mubr.msk.f32.vlgmr.msra.gmra.mrb[86].mxu0 %vm254_vm2, %v7721_v40  ;;  %v7662_v17 = vrot.slane %v7661_v2, 1  ;;  %v7674_v26 = vrot.slane %v7673_v9, 2 }
 0xae6   :  { %v7694_v52 = vadd.f32 %v7693_v20, %v7692_v19  ;;  %v7620_v32 = vmul.f32 %v10103_v10, %v11717_v41  ;;  %9804 = vmatmul.mubr.msk.f32.vlgmr.msra.gmra.mrb[96].mxu1 %vm254_vm2, %v7722_v24  ;;  %9807 = vmatpush3.msra.mxu0 %v11751_v43  ;;  %v7669_v62 = vrot.slane %v7668_v16, 1  ;;  %v7681_v18 = vrot.slane %v7680_v57, 2  ;;  %v8189_v21 = vpop.permute.xlu0 %8188 }
 0xae7   :  { %v7687_v29 = vadd.f32 %v7686_v42, %v7685_v45  ;;  %9090 = vst.msk [vmem:[%s11898_s5 + $0x158] sm:$0xff] %vm254_vm2, %v7621_v14  ;;  %v7706_v31 = vsel %vm254_vm2, %v7621_v14, 0.0  ;;  %9812 = vmatpush3.msra.mxu1 %v8037_v37  ;;  %9813 = vmatprep.mubr.msk.f32.mxu1 %vm10182_vm1, %v10181_v30  ;;  %v7663_v41 = vadd.f32 %v7662_v17, %v7661_v2  ;;  %v8417_v19 = vpop.permute.xlu1 %8416 }
 0xae8   :  { %v7675_v58 = vadd.f32 %v7674_v26, %v7673_v9  ;;  %v7707_v48 = vrot.slane %v7706_v31, 4  ;;  %9089 = vst.msk [vmem:[%s11898_s5 + $0x138] sm:$0xff] %vm254_vm2, %v7620_v32  ;;  %v7699_v43 = vsel %vm254_vm2, %v7620_v32, 0.0  ;;  %9808 = vmatprep.mubr.msk.f32.mxu0 %vm10182_vm1, %v10181_v30  ;;  %9816 = vmatprep.subr.mxu0 %v10181_v30  ;;  %v7670_v7 = vadd.f32 %v7669_v62, %v7668_v16 }
 0xae9   :  { %v7682_v28 = vadd.f32 %v7681_v18, %v7680_v57  ;;  %v10105_v12 = vpop.eup %10104  ;;  %v7700_v44 = vrot.slane %v7699_v43, 4  ;;  %9821 = vmatprep.subr.mxu1 %v10181_v30  ;;  %v7723_v56 = vmul.f32 0.125, %v7663_v41  ;;  %v7688_v13 = vrot.slane %v7687_v29, 2 }
 0xaea   :  { %v7676_v49 = vrot.slane %v7675_v58, 1  ;;  %v7708_v1 = vadd.f32 %v7707_v48, %v7706_v31  ;;  %v7622_v53 = vmul.f32 %v10105_v12, %v11723_v38  ;;  %v7724_v6 = vmul.f32 0.125, %v7670_v7  ;;  %v8341_v55 = vpop.permute.xlu0 %8340  ;;  %v8807_v48 = vld [vmem:[#allocation6] sm:$0xff]  ;;  %v8809_v12 = vld [vmem:[#allocation6 + $0x10] sm:$0xff] }
 0xaeb   :  { %v7683_v0 = vrot.slane %v7682_v28, 1  ;;  %v7701_v15 = vadd.f32 %v7700_v44, %v7699_v43  ;;  %9809 = vmatmul.mubr.msk.f32.vlgmr.msra.gmra.mrb[88].mxu0 %vm254_vm2, %v7723_v56  ;;  %v7689_v33 = vadd.f32 %v7688_v13, %v7687_v29  ;;  %v7695_v23 = vrot.slane %v7694_v52, 2  ;;  %v8569_v14 = vpop.permute.xlu1 %8568  ;;  %v8808_v43 = vld [vmem:[#allocation6 + $0x8] sm:$0xff] }
 0xaec   :  { %v7677_v60 = vadd.f32 %v7676_v49, %v7675_v58  ;;  %9091 = vst.msk [vmem:[%s11898_s5 + $0x178] sm:$0xff] %vm254_vm2, %v7622_v53  ;;  %v7713_v5 = vsel %vm254_vm2, %v7622_v53, 0.0  ;;  %9814 = vmatmul.mubr.msk.f32.vlgmr.msra.gmra.mrb[98].mxu1 %vm254_vm2, %v7724_v6  ;;  %9817 = vmatpush3.msra.mxu0 %v8113_v8  ;;  %v7709_v34 = vrot.slane %v7708_v1, 2  ;;  %s10195_s5 = smov 24  }
 0xaed   :  { %v7684_v38 = vadd.f32 %v7683_v0, %v7682_v28  ;;  %v7714_v3 = vrot.slane %v7713_v5, 4  ;;  %9822 = vmatpush3.msra.mxu1 %v8189_v21  ;;  %9818 = vmatprep.mubr.msk.f32.mxu0 %vm10182_vm1, %v10181_v30  ;;  %v7690_v46 = vrot.slane %v7689_v33, 1  ;;  %v7696_v4 = vadd.f32 %v7695_v23, %v7694_v52 }
 0xaee   :  { %v7725_v63 = vmul.f32 0.125, %v7677_v60  ;;  %9823 = vmatprep.mubr.msk.f32.mxu1 %vm10182_vm1, %v10181_v30  ;;  %9826 = vmatprep.subr.mxu0 %v10181_v30  ;;  %v7702_v47 = vrot.slane %v7701_v15, 2  ;;  %v7710_v51 = vadd.f32 %v7709_v34, %v7708_v1  ;;  %v8493_v45 = vpop.permute.xlu0 %8492  ;;  %v9886_v28 = vpack.c.bf16 %v8808_v43, %v8807_v48 }
 0xaef   :  { %v7726_v11 = vmul.f32 0.125, %v7684_v38  ;;  %v7715_v50 = vadd.f32 %v7714_v3, %v7713_v5  ;;  %9831 = vmatprep.subr.mxu1 %v10181_v30  ;;  %v7691_v54 = vadd.f32 %v7690_v46, %v7689_v33  ;;  %v7697_v22 = vrot.slane %v7696_v4, 1 }
 0xaf0   :  { %9819 = vmatmul.mubr.msk.f32.vlgmr.msra.gmra.mrb[90].mxu0 %vm254_vm2, %v7725_v63  ;;  %v7703_v57 = vadd.f32 %v7702_v47, %v7701_v15  ;;  %v7711_v35 = vrot.slane %v7710_v51, 1 }
 0xaf1   :  { %9824 = vmatmul.mubr.msk.f32.vlgmr.msra.gmra.mrb[100].mxu1 %vm254_vm2, %v7726_v11  ;;  %9827 = vmatpush3.msra.mxu0 %v8265_v61  ;;  %v7727_v36 = vmul.f32 0.125, %v7691_v54  ;;  %v7698_v39 = vadd.f32 %v7697_v22, %v7696_v4  ;;  %v7716_v9 = vrot.slane %v7715_v50, 2 }
 0xaf2   :  { %9832 = vmatpush3.msra.mxu1 %v8341_v55  ;;  %9828 = vmatprep.mubr.msk.f32.mxu0 %vm10182_vm1, %v10181_v30  ;;  %v7704_v37 = vrot.slane %v7703_v57, 1  ;;  %v7712_v40 = vadd.f32 %v7711_v35, %v7710_v51 }
 0xaf3   :  { %9833 = vmatprep.mubr.msk.f32.mxu1 %vm10182_vm1, %v10181_v30  ;;  %9836 = vmatprep.subr.mxu0 %v10181_v30  ;;  %v7728_v2 = vmul.f32 0.125, %v7698_v39  ;;  %v7717_v25 = vadd.f32 %v7716_v9, %v7715_v50 }
 0xaf4   :  { %9841 = vmatprep.subr.mxu1 %v10181_v30  ;;  %9829 = vmatmul.mubr.msk.f32.vlgmr.msra.gmra.mrb[92].mxu0 %vm254_vm2, %v7727_v36  ;;  %v7705_v20 = vadd.f32 %v7704_v37, %v7703_v57  ;;  %v7730_v24 = vmul.f32 0.125, %v7712_v40  ;;  %v8718_v37 = vpop.permute.xlu0 %8717 }
 0xaf5   :  { %9837 = vmatpush3.msra.mxu0 %v8417_v19  ;;  %9838 = vmatprep.mubr.msk.f32.mxu0 %vm10182_vm1, %v10181_v30  ;;  %v7718_v16 = vrot.slane %v7717_v25, 1 }
 0xaf6   :  { %9834 = vmatmul.mubr.msk.f32.vlgmr.msra.gmra.mrb[102].mxu1 %vm254_vm2, %v7728_v2  ;;  %9846 = vmatprep.subr.mxu0 %v10181_v30  ;;  %v7729_v10 = vmul.f32 0.125, %v7705_v20  ;;  %v8720_v2 = vpop.permute.xlu1 %8719 }
 0xaf7   :  { %9842 = vmatpush3.msra.mxu1 %v8493_v45  ;;  %9843 = vmatprep.mubr.msk.f32.mxu1 %vm10182_vm1, %v10181_v30  ;;  %v7719_v42 = vadd.f32 %v7718_v16, %v7717_v25  ;;  %v8799_v25 = vsel %vm254_vm2, %v10826_v27, %v8718_v37 }
 0xaf8   :  { %9839 = vmatmul.mubr.msk.f32.vlgmr.msra.gmra.mrb[94].mxu0 %vm254_vm2, %v7729_v10  ;;  %9887 = vmatprep.subr.bf16.mxu1 %v9886_v28  ;;  %v8756_v40 = vpop.permute.xlu0 %8755  ;;  %v8800_v10 = vsel %vm254_vm2, %v10843_v59, %v8720_v2 }
 0xaf9   :  { %9847 = vmatpush3.msra.mxu0 %v8569_v14  ;;  %v7731_v17 = vmul.f32 0.125, %v7719_v42  ;;  %9848 = vmatprep.mubr.msk.f32.mxu0 %vm10182_vm1, %v10181_v30  ;;  %v8810_v30 = vld [vmem:[#allocation6 + $0x18] sm:$0xff]  ;;  %v8802_v20 = vsel %vm8801_vm11, %v8799_v25, %v8756_v40 }
 0xafa   :  { %9844 = vmatmul.mubr.msk.f32.vlgmr.msra.gmra.mrb[104].mxu1 %vm254_vm2, %v7730_v24  ;;  %v9890_v49 = vpack.c.bf16 %v8810_v30, %v8809_v12  ;;  %v8758_v16 = vpop.permute.xlu1 %8757 }
 0xafb   :  { %9889 = vmatpush3.bf16.msra.mxu1 %v9886_v28  ;;  %v8803_v42 = vsel %vm8801_vm11, %v8800_v10, %v8758_v16 }
 0xafc   :  { %9849 = vmatmul.mubr.msk.f32.vlgmr.msra.gmra.mrb[96].mxu0 %vm254_vm2, %v7731_v17  ;;  %9891 = vmatprep.subr.bf16.mxu1 %v9890_v49 }
 0xaff   :  { %9893 = vmatpush3.bf16.msra.mxu1 %v9890_v49 }
 0xbb5   :  { %v7804_v26 = vpop.f32.mrb[94].mxu1 }
 0xbb6   :  { %v9795_v52 = vpop.f32.mrb[95].mxu1 }
 0xbb8   :  { %v7880_v32 = vpop.f32.mrb[86].mxu0 }
 0xbb9   :  { %v8773_v8 = vrot.slane %v7880_v32, 7  ;;  %v7956_v62 = vpop.f32.mrb[96].mxu1  ;;  %v9800_v18 = vpop.f32.mrb[87].mxu0 }
 0xbba   :  { %v8775_v29 = vrot.slane %v7956_v62, 6  ;;  %v9805_v31 = vpop.f32.mrb[97].mxu1 }
 0xbbb   :  { %v8774_v41 = vsel %vm8657_vm3, %v8773_v8, %v7804_v26  ;;  %v9104_v26 = vld [vmem:[%s11896_s3 + $0x1] ss:$0 sm:$0xff] }
 0xbbc   :  { %v8776_v58 = vsel %vm8660_vm4, %v8775_v29, %v8774_v41 }
 0xbbe   :  { %v8032_v7 = vpop.f32.mrb[88].mxu0 }
 0xbbf   :  { %v8777_v44 = vrot.slane %v8032_v7, 5  ;;  %v8108_v21 = vpop.f32.mrb[98].mxu1  ;;  %v9810_v56 = vpop.f32.mrb[89].mxu0 }
 0xbc0   :  { %v8779_v13 = vrot.slane %v8108_v21, 4  ;;  %v9815_v1 = vpop.f32.mrb[99].mxu1 }
 0xbc1   :  { %v8778_v53 = vsel %vm8663_vm5, %v8777_v44, %v8776_v58 }
 0xbc2   :  { %v8780_v6 = vsel %vm8666_vm6, %v8779_v13, %v8778_v53 }
 0xbc3   :  { %v8184_v0 = vpop.f32.mrb[90].mxu0 }
 0xbc4   :  { %v8781_v15 = vrot.slane %v8184_v0, 3  ;;  %v8260_v60 = vpop.f32.mrb[100].mxu1  ;;  %v9820_v33 = vpop.f32.mrb[91].mxu0 }
 0xbc5   :  { %v8783_v23 = vrot.slane %v8260_v60, 2  ;;  %v9825_v5 = vpop.f32.mrb[101].mxu1 }
 0xbc6   :  { %v8782_v61 = vsel %vm8669_vm7, %v8781_v15, %v8780_v6 }
 0xbc7   :  { %v8784_v38 = vsel %vm8672_vm8, %v8783_v23, %v8782_v61  ;;  %v8336_v34 = vpop.f32.mrb[92].mxu0 }
 0xbc8   :  { %v8785_v3 = vrot.slane %v8336_v34, 1  ;;  %v9830_v63 = vpop.f32.mrb[93].mxu0 }
 0xbc9   :  { %v8412_v46 = vpop.f32.mrb[102].mxu1 }
 0xbca   :  { %v9835_v4 = vpop.f32.mrb[103].mxu1  ;;  %v8786_v11 = vsel %vm8675_vm9, %v8785_v3, %v8784_v38 }
 0xbcb   :  { %8793 = vrot.lane.b32.xlu0 %v8786_v11, %s10195_s5  ;;  %v8488_v47 = vpop.f32.mrb[94].mxu0 }
 0xbcc   :  { %v8787_v51 = vrot.slane %v8488_v47, 7  ;;  %v9840_v55 = vpop.f32.mrb[95].mxu0 }
 0xbcd   :  { %v8564_v50 = vpop.f32.mrb[104].mxu1 }
 0xbce   :  { %v8789_v54 = vrot.slane %v8564_v50, 6  ;;  %v9845_v22 = vpop.f32.mrb[105].mxu1  ;;  %v8788_v57 = vsel %vm8657_vm3, %v8787_v51, %v8412_v46 }
 0xbcf   :  { %v8640_v36 = vpop.f32.mrb[96].mxu0 }
 0xbd0   :  { %v8790_v35 = vsel %vm8660_vm4, %v8789_v54, %v8788_v57  ;;  %v8791_v39 = vrot.slane %v8640_v36, 5  ;;  %v9850_v9 = vpop.f32.mrb[97].mxu0 }
 0xbd2   :  { %v8792_v19 = vsel %vm8663_vm5, %v8791_v39, %v8790_v35 }
 0xbd3   :  { %8795 = vrot.lane.b32.xlu1 %v8792_v19, %s10195_s5 }
 0xc3d   :  { %v8794_v45 = vpop.permute.xlu0 %8793 }
 0xc3e   :  { %v8805_v24 = vsel %vm8804_vm10, %v8802_v20, %v8794_v45 }
 0xc3f   :  { %9859 = vmatprep.mubr.msk.f32.mxu1 %vm8816_vm12, %v8805_v24 }
 0xc45   :  { %v8796_v14 = vpop.permute.xlu1 %8795 }
 0xc46   :  { %v8806_v17 = vsel %vm8804_vm10, %v8803_v42, %v8796_v14 }
 0xc47   :  { %9860 = vmatmul.mubr.msk.f32.vlgmr.msra.gmra.mrb[106].mxu1 %vm8816_vm12, %v8806_v17 }
 0xd1a   :  { %v9861_v27 = vpop.f32.mrb[106].mxu1 }
 0xd1b   :  { %v8895_v52 = vadd.f32 %v9861_v27, %v9104_v26  ;;  %v8889_v32 = vpop.f32.mrb[107].mxu1 }
 0xd1c   :  { %v8890_v8 = vadd.f32 %v9104_v26, %v8889_v32 }
 0xd1d   :  { %8900 = vst.msk [vmem:[%s11897_s4 + $0x8] sm:$0xf] %vm8899_vm13, %v8895_v52 }
 0xd1e   :  { %8898 = vst.msk [vmem:[%s11897_s4] sm:$0xff] %vm8816_vm12, %v8890_v8 }
 0xd1f   :  { %8909 = vsyncpa [#allocation3], 1 }
 0xd20   :  { %8910 = vsyncpa [#allocation5], 1 }

</bundles_post_ra>
